<compile_context>
chip_gen: v5e
topology: v5e:2x2
jax: 0.10.0
libtpu: 0.0.40
codegen_flags: <defaults>
</compile_context>

<pallas_src>
import math

import jax
import jax.numpy as jnp
import numpy as np
from jax.experimental import pallas as pl
from jax.experimental.pallas import tpu as pltpu


# ---------------------------------------------------------------------------
# Pallas kernel
# ---------------------------------------------------------------------------
def make_tcn_kernel(T, K, depth, An, mm_dtype, leaky_slope=0.01):
    """Fused TCNEncoder forward for one tile of `An` atoms.

    In-kernel layout: activations are [An*T, C] (time flattened per atom on the
    sublane dim, channels on the lane dim).
    """
    P = T // 3                       # MaxPool1d(kernel_size=3, stride=3) length
    AnT = An * T
    dilations = [(4 ** i, 2 * 4 ** i) for i in range(depth)]
    shift_set = sorted({j * d for d1, d2 in dilations for d in (d1, d2)
                        for j in range(1, K) if 0 < j * d < T})

    def kernel(h_ref, sel_ref, *rest):
        o_ref = rest[-1]
        blk_refs = rest[:8 * depth]
        w_pred_ref, b_pred_ref, w_att_ref, b_att_ref = rest[8 * depth:-1]

        f32 = jnp.float32

        def mm(a, b):
            # MXU matmul; operands optionally bf16 (v6e/v7x), accumulate in f32.
            return jnp.dot(a.astype(mm_dtype), b.astype(mm_dtype),
                           preferred_element_type=f32)

        # Per-row time-within-atom index, built in-kernel (no HBM stream).
        tmod = jax.lax.broadcasted_iota(jnp.int32, (AnT, 1), 0) % T
        # Hoisted causal masks: one broadcast per distinct shift amount.
        masks = {s: (tmod >= s).astype(f32) for s in shift_set}

        def shift(v, s):
            # Causal delay by s timesteps within each length-T atom sequence.
            if s <= 0:
                return v
            if s >= T:
                return jnp.zeros_like(v)
            # roll moves row t-s to row t; the mask kills wrapped / cross-atom rows.
            return pltpu.roll(v, shift=s, axis=0) * masks[s]

        def taps(v, d):
            # K causal taps lane-concatenated: [An*T, K*C].
            return jnp.concatenate(
                [shift(v, (K - 1 - j) * d) for j in range(K)], axis=1)

        h = h_ref[0]                                    # [An*T, 2*n_emb] (f32)

        # Gated residual causal conv blocks.
        for i in range(depth):
            w1f, b1f, bn1s, bn1t, w2f, b2f, bn2s, bn2t = blk_refs[8 * i:8 * i + 8]
            d1, d2 = dilations[i]
            ch = bn1s.shape[-1]

            # conv1 (gate | signal) and the 1x1 skip conv share ONE fused matmul.
            z = mm(taps(h, d1), w1f[...]) + b1f[...]    # [An*T, 3*ch]
            skip = z[:, 2 * ch:]
            u = jax.nn.sigmoid(z[:, :ch]) * jnp.tanh(z[:, ch:2 * ch])
            u = u * bn1s[...] + bn1t[...]               # bn1 (inference affine)

            z2 = mm(taps(u, d2), w2f[...]) + b2f[...]   # [An*T, 2*ch]
            u = jax.nn.sigmoid(z2[:, :ch]) * jnp.tanh(z2[:, ch:])
            u = u * bn2s[...] + bn2t[...]               # bn2 (inference affine)

            h = u + skip

        # MaxPool1d(3): trailing running max.  Only rows t = 3p+2 are picked up
        # by `sel` below, so the wrapped / cross-atom rows (t < 2) never matter
        # and no masks are needed here.
        m = jnp.maximum(h, jnp.maximum(pltpu.roll(h, shift=1, axis=0),
                                       pltpu.roll(h, shift=2, axis=0)))

        # Per-atom epilogue on the P pooled rows only.
        rows = []
        for a in range(An):                             # An is small & static
            ma = m[a * T:(a + 1) * T, :]                # [T, ch]
            mp = mm(sel_ref[...], ma)                   # [P, ch] pooled rows
            pred = mm(mp, w_pred_ref[...]) + b_pred_ref[...]       # [P, n_out]
            logit = (jnp.sum(mp * w_att_ref[...], axis=-1, keepdims=True)
                     + b_att_ref[...])                  # [P, 1]
            mx = jnp.max(logit, axis=0, keepdims=True)  # exact per-atom max
            e = jnp.exp(logit - mx)
            denom = jnp.sum(e, axis=0, keepdims=True) * float(P)
            num = jnp.sum(e * pred, axis=0, keepdims=True)          # [1, n_out]
            pa = num / denom                            # exact division
            rows.append(jnp.where(pa >= 0, pa, leaky_slope * pa))

        # Single lane-contiguous [1, An*n_out] store for this tile.
        o_ref[0] = jnp.concatenate(rows, axis=1).astype(o_ref.dtype)

    return kernel


# ---------------------------------------------------------------------------
# Wrapper: weight fusion + pallas_call
# ---------------------------------------------------------------------------
def build_fused_params(params, K, matmul_dtype=jnp.float32):
    """Fuse gate/signal/skip conv weights into per-block matmul operands."""
    f32 = jnp.float32
    fused = []
    for blk in params["blocks"]:
        c1, c2 = blk["conv1"], blk["conv2"]
        ci, co = c1["wg"].shape[1], c1["wg"].shape[2]

        # conv1: rows are tap-major, columns are [gate | signal | skip].
        w1 = jnp.concatenate(
            [jnp.concatenate([c1["wg"][j], c1["ws"][j]], axis=1)
             for j in range(K)], axis=0)                         # [K*ci, 2*co]
        skip_col = jnp.zeros((K * ci, co), f32)
        skip_col = skip_col.at[(K - 1) * ci:].set(blk["w_skip"])  # shift-0 tap only
        w1f = jnp.concatenate([w1, skip_col], axis=1).astype(matmul_dtype)
        b1f = jnp.concatenate([c1["bg"], c1["bs"], blk["b_skip"]], axis=1)

        w2f = jnp.concatenate(
            [jnp.concatenate([c2["wg"][j], c2["ws"][j]], axis=1)
             for j in range(K)], axis=0).astype(matmul_dtype)     # [K*co, 2*co]
        b2f = jnp.concatenate([c2["bg"], c2["bs"]], axis=1)

        fused += [w1f, b1f, blk["bn1_scale"], blk["bn1_shift"],
                  w2f, b2f, blk["bn2_scale"], blk["bn2_shift"]]
    fused += [params["w_pred"].astype(matmul_dtype), params["b_pred"],
              params["w_att"], params["b_att"]]
    return fused


def tcn_encoder_forward(x, params, cfg, *, atoms_per_tile=None,
                        matmul_dtype=jnp.float32):
    """x: [B, N, T, n_in] -> [B, N, n_out] (matches TCNEncoder.forward)."""
    B, N, T, _ = x.shape
    K, depth, n_out = cfg["kernel_size"], cfg["depth"], cfg["n_out"]
    assert T % 3 == 0
    P = T // 3

    An = atoms_per_tile or N            # atoms per grid step (VMEM / lane knob)
    assert N % An == 0
    n_tiles = N // An
    G = B * n_tiles                     # >= 2 parallel steps feeds both v7x TCs

    # fc_emb as a plain XLA matmul (dense 2*n_emb lanes into the kernel).
    h0 = x @ params["w_emb"] + params["b_emb"][0]       # [B, N, T, 2*n_emb]
    C0 = h0.shape[-1]
    h0 = h0.reshape(G, An * T, C0)

    # Constant [P, T] 0/1 row selection: picks row 3p+2 (the trailing-running-
    # max position of pool window p).  O(P*T), shared by every grid step.
    sel_np = np.zeros((P, T), np.float32)
    sel_np[np.arange(P), 3 * np.arange(P) + 2] = 1.0
    sel = jnp.asarray(sel_np)

    fused = build_fused_params(params, K, matmul_dtype)
    kernel = make_tcn_kernel(T, K, depth, An, matmul_dtype)

    def const_spec(a):
        return pl.BlockSpec(a.shape, lambda g: (0,) * a.ndim)

    in_specs = ([pl.BlockSpec((1, An * T, C0), lambda g: (g, 0, 0)),
                 const_spec(sel)]
                + [const_spec(a) for a in fused])

    out = pl.pallas_call(
        kernel,
        out_shape=jax.ShapeDtypeStruct((G, 1, An * n_out), jnp.float32),
        grid=(G,),
        in_specs=in_specs,
        out_specs=pl.BlockSpec((1, 1, An * n_out), lambda g: (g, 0, 0)),
        compiler_params=pltpu.CompilerParams(
            dimension_semantics=("parallel",),
            vmem_limit_bytes=32 * 1024 * 1024),
    )(h0, sel, *fused)

    return out.reshape(B, N, n_out)


# ---------------------------------------------------------------------------
# Synthetic parameters + pure-JAX reference (numeric sanity check)
# ---------------------------------------------------------------------------
def make_params(key, *, n_in, n_emb, c_hidden, kernel_size, depth, n_out):
    """Synthetic parameters mirroring TCNEncoder's layers (weights stored [in, out])."""
    K = kernel_size
    c0 = 2 * n_emb
    kit = iter(jax.random.split(key, 40))

    def uniform(shape, scale):
        return jax.random.uniform(next(kit), shape, jnp.float32, -scale, scale)

    def conv_taps(in_ch, out_ch, k):
        std = math.sqrt(2.0 / (k * out_ch))
        w = std * jax.random.normal(next(kit), (k, in_ch, out_ch), jnp.float32)
        b = jnp.full((1, out_ch), 0.1, jnp.float32)
        return w, b

    def gated_conv(in_ch, out_ch):
        wg, bg = conv_taps(in_ch, out_ch, K)
        ws, bs = conv_taps(in_ch, out_ch, K)
        return {"wg": wg, "bg": bg, "ws": ws, "bs": bs}

    def batchnorm(ch):
        eps = 1e-5
        gamma = jax.random.uniform(next(kit), (1, ch), jnp.float32, 0.5, 1.5)
        beta = 0.1 * jax.random.normal(next(kit), (1, ch), jnp.float32)
        mean = 0.1 * jax.random.normal(next(kit), (1, ch), jnp.float32)
        var = jax.random.uniform(next(kit), (1, ch), jnp.float32, 0.5, 1.5)
        scale = gamma / jnp.sqrt(var + eps)
        return scale, beta - mean * scale

    blocks = []
    for i in range(depth):
        ci = c0 if i == 0 else c_hidden
        w_sk, b_sk = conv_taps(ci, c_hidden, 1)
        bn1s, bn1t = batchnorm(c_hidden)
        bn2s, bn2t = batchnorm(c_hidden)
        blocks.append({
            "conv1": gated_conv(ci, c_hidden),
            "conv2": gated_conv(c_hidden, c_hidden),
            "w_skip": w_sk[0], "b_skip": b_sk,
            "bn1_scale": bn1s, "bn1_shift": bn1t,
            "bn2_scale": bn2s, "bn2_shift": bn2t,
        })

    s_emb = 1.0 / math.sqrt(n_in)
    s_hid = 1.0 / math.sqrt(c_hidden)
    return {
        "w_emb": uniform((n_in, c0), s_emb), "b_emb": uniform((1, c0), s_emb),
        "blocks": blocks,
        "w_pred": uniform((c_hidden, n_out), s_hid),
        "b_pred": uniform((1, n_out), s_hid),
        "w_att": uniform((1, c_hidden), s_hid),
        "b_att": uniform((1, 1), s_hid),
    }


def tcn_encoder_reference(x, params, *, kernel_size, depth):
    """Pure-JAX reference mirroring TCNEncoder.forward (inference-mode BN)."""
    B, N, T, _ = x.shape
    K = kernel_size
    P = T // 3

    h = x @ params["w_emb"] + params["b_emb"][0]
    h = h.reshape(B * N, T, -1)                      # channels last

    def causal_conv(v, w_taps, b, d):
        Tt = v.shape[1]
        y = jnp.zeros(v.shape[:2] + (w_taps.shape[-1],), jnp.float32) + b[0]
        for j in range(K):
            s = d * (K - 1 - j)
            vs = v if s == 0 else jnp.pad(v, ((0, 0), (s, 0), (0, 0)))[:, :Tt, :]
            y = y + vs @ w_taps[j]
        return y

    def gated(v, p, d):
        return (jax.nn.sigmoid(causal_conv(v, p["wg"], p["bg"], d))
                * jnp.tanh(causal_conv(v, p["ws"], p["bs"], d)))

    for i, blk in enumerate(params["blocks"]):
        d = 2 ** (2 * i)
        skip = h @ blk["w_skip"] + blk["b_skip"][0]
        u = gated(h, blk["conv1"], d)
        u = u * blk["bn1_scale"][0] + blk["bn1_shift"][0]
        u = gated(u, blk["conv2"], 2 * d)
        u = u * blk["bn2_scale"][0] + blk["bn2_shift"][0]
        h = u + skip

    hp = h[:, :3 * P, :].reshape(h.shape[0], P, 3, h.shape[-1]).max(axis=2)
    pred = hp @ params["w_pred"] + params["b_pred"][0]
    logit = (hp * params["w_att"][0]).sum(-1) + params["b_att"][0, 0]
    att = jax.nn.softmax(logit, axis=-1)[..., None]
    pa = (pred * att).mean(axis=1).reshape(B, N, -1)
    return jnp.where(pa >= 0, pa, 0.01 * pa)


if __name__ == "__main__":
    cfg = dict(n_in=4, n_emb=16, c_hidden=32, kernel_size=3, depth=2, n_out=8)
    B, N, T = 2, 8, 24          # batch, atoms, timesteps (T multiple of 3 and 8)
    An = 4                      # atoms per grid step -> grid of 4 parallel steps

    key = jax.random.PRNGKey(0)
    kx, kp = jax.random.split(key)
    x = jax.random.normal(kx, (B, N, T, cfg["n_in"]), dtype=jnp.float32)
    params = make_params(kp, **cfg)

    ref = tcn_encoder_reference(x, params, kernel_size=cfg["kernel_size"],
                                depth=cfg["depth"])
    ref = jax.block_until_ready(ref)

    # f32 MXU operands (exact-parity path, recommended on v5e).
    out = tcn_encoder_forward(x, params, cfg, atoms_per_tile=An)
    out = jax.block_until_ready(out)
    assert out.shape == (B, N, cfg["n_out"])
    assert jnp.allclose(out, ref, rtol=2e-2, atol=2e-2), \
        float(jnp.max(jnp.abs(out - ref)))

    # bf16 MXU operands (v6e/v7x recommendation): smoke-run + loose check.
    out_bf16 = tcn_encoder_forward(x, params, cfg, atoms_per_tile=An,
                                   matmul_dtype=jnp.bfloat16)
    out_bf16 = jax.block_until_ready(out_bf16)
    assert jnp.allclose(out_bf16, ref, rtol=0.25, atol=0.25), \
        float(jnp.max(jnp.abs(out_bf16 - ref)))

    print("KERNEL_OK")
</pallas_src>

<mosaic_0001>
module attributes {stable_mosaic.version = 11 : i64} {
  func.func @kernel(%arg0: i32, %arg1: memref<1x96x32xf32, #tpu.memory_space<vmem>>, %arg2: memref<8x24xf32, #tpu.memory_space<vmem>>, %arg3: memref<96x96xf32, #tpu.memory_space<vmem>>, %arg4: memref<1x96xf32, #tpu.memory_space<vmem>>, %arg5: memref<1x32xf32, #tpu.memory_space<vmem>>, %arg6: memref<1x32xf32, #tpu.memory_space<vmem>>, %arg7: memref<96x64xf32, #tpu.memory_space<vmem>>, %arg8: memref<1x64xf32, #tpu.memory_space<vmem>>, %arg9: memref<1x32xf32, #tpu.memory_space<vmem>>, %arg10: memref<1x32xf32, #tpu.memory_space<vmem>>, %arg11: memref<96x96xf32, #tpu.memory_space<vmem>>, %arg12: memref<1x96xf32, #tpu.memory_space<vmem>>, %arg13: memref<1x32xf32, #tpu.memory_space<vmem>>, %arg14: memref<1x32xf32, #tpu.memory_space<vmem>>, %arg15: memref<96x64xf32, #tpu.memory_space<vmem>>, %arg16: memref<1x64xf32, #tpu.memory_space<vmem>>, %arg17: memref<1x32xf32, #tpu.memory_space<vmem>>, %arg18: memref<1x32xf32, #tpu.memory_space<vmem>>, %arg19: memref<32x8xf32, #tpu.memory_space<vmem>>, %arg20: memref<1x8xf32, #tpu.memory_space<vmem>>, %arg21: memref<1x32xf32, #tpu.memory_space<vmem>>, %arg22: memref<1x1xf32, #tpu.memory_space<vmem>>, %arg23: memref<1x1x32xf32, #tpu.memory_space<vmem>>) attributes {dimension_semantics = [#tpu.dimension_semantics<parallel>], iteration_bounds = array<i64: 4>, scalar_prefetch = 0 : i64, scratch_operands = 0 : i64, tpu.core_type = #tpu.core_type<tc>, window_params = [{transform_indices = @transform_0, window_bounds = array<i64: 1, 96, 32>}, {pipeline_mode = #tpu.pipeline_mode<synchronous>, transform_indices = @transform_1, window_bounds = array<i64: 8, 24>}, {pipeline_mode = #tpu.pipeline_mode<synchronous>, transform_indices = @transform_2, window_bounds = array<i64: 96, 96>}, {pipeline_mode = #tpu.pipeline_mode<synchronous>, transform_indices = @transform_3, window_bounds = array<i64: 1, 96>}, {pipeline_mode = #tpu.pipeline_mode<synchronous>, transform_indices = @transform_4, window_bounds = array<i64: 1, 32>}, {pipeline_mode = #tpu.pipeline_mode<synchronous>, transform_indices = @transform_5, window_bounds = array<i64: 1, 32>}, {pipeline_mode = #tpu.pipeline_mode<synchronous>, transform_indices = @transform_6, window_bounds = array<i64: 96, 64>}, {pipeline_mode = #tpu.pipeline_mode<synchronous>, transform_indices = @transform_7, window_bounds = array<i64: 1, 64>}, {pipeline_mode = #tpu.pipeline_mode<synchronous>, transform_indices = @transform_8, window_bounds = array<i64: 1, 32>}, {pipeline_mode = #tpu.pipeline_mode<synchronous>, transform_indices = @transform_9, window_bounds = array<i64: 1, 32>}, {pipeline_mode = #tpu.pipeline_mode<synchronous>, transform_indices = @transform_10, window_bounds = array<i64: 96, 96>}, {pipeline_mode = #tpu.pipeline_mode<synchronous>, transform_indices = @transform_11, window_bounds = array<i64: 1, 96>}, {pipeline_mode = #tpu.pipeline_mode<synchronous>, transform_indices = @transform_12, window_bounds = array<i64: 1, 32>}, {pipeline_mode = #tpu.pipeline_mode<synchronous>, transform_indices = @transform_13, window_bounds = array<i64: 1, 32>}, {pipeline_mode = #tpu.pipeline_mode<synchronous>, transform_indices = @transform_14, window_bounds = array<i64: 96, 64>}, {pipeline_mode = #tpu.pipeline_mode<synchronous>, transform_indices = @transform_15, window_bounds = array<i64: 1, 64>}, {pipeline_mode = #tpu.pipeline_mode<synchronous>, transform_indices = @transform_16, window_bounds = array<i64: 1, 32>}, {pipeline_mode = #tpu.pipeline_mode<synchronous>, transform_indices = @transform_17, window_bounds = array<i64: 1, 32>}, {pipeline_mode = #tpu.pipeline_mode<synchronous>, transform_indices = @transform_18, window_bounds = array<i64: 32, 8>}, {pipeline_mode = #tpu.pipeline_mode<synchronous>, transform_indices = @transform_19, window_bounds = array<i64: 1, 8>}, {pipeline_mode = #tpu.pipeline_mode<synchronous>, transform_indices = @transform_20, window_bounds = array<i64: 1, 32>}, {pipeline_mode = #tpu.pipeline_mode<synchronous>, transform_indices = @transform_21, window_bounds = array<i64: 1, 1>}, {transform_indices = @transform_22, window_bounds = array<i64: 1, 1, 32>}]} {
    %0 = tpu.iota {dimensions = array<i32: 0>} : vector<96x1xi32>
    %c24_i32 = arith.constant 24 : i32
    %c0_i32 = arith.constant 0 : i32
    %1 = arith.cmpi eq, %c24_i32, %c0_i32 : i32
    %c1_i32 = arith.constant 1 : i32
    %2 = arith.select %1, %c1_i32, %c24_i32 : i32
    %3 = vector.broadcast %2 : i32 to vector<96x1xi32>
    %4 = arith.remsi %0, %3 : vector<96x1xi32>
    %c0_i32_0 = arith.constant 0 : i32
    %5 = vector.broadcast %c0_i32_0 : i32 to vector<96x1xi32>
    %6 = arith.cmpi ne, %4, %5 : vector<96x1xi32>
    %c0_i32_1 = arith.constant 0 : i32
    %7 = vector.broadcast %c0_i32_1 : i32 to vector<96x1xi32>
    %8 = arith.cmpi slt, %4, %7 : vector<96x1xi32>
    %c0_i32_2 = arith.constant 0 : i32
    %9 = arith.cmpi slt, %2, %c0_i32_2 : i32
    %10 = vector.broadcast %9 : i1 to vector<96x1xi1>
    %11 = vector.broadcast %10 : vector<96x1xi1> to vector<96x1xi1>
    %12 = arith.xori %8, %11 : vector<96x1xi1>
    %13 = arith.andi %12, %6 : vector<96x1xi1>
    %14 = vector.broadcast %2 : i32 to vector<96x1xi32>
    %15 = arith.addi %4, %14 : vector<96x1xi32>
    %16 = arith.select %13, %15, %4 : vector<96x1xi1>, vector<96x1xi32>
    %c1_i32_3 = arith.constant 1 : i32
    %17 = vector.broadcast %c1_i32_3 : i32 to vector<96x1xi32>
    %18 = arith.cmpi sge, %16, %17 : vector<96x1xi32>
    %19 = arith.extui %18 : vector<96x1xi1> to vector<96x1xi32>
    %20 = arith.sitofp %19 : vector<96x1xi32> to vector<96x1xf32>
    %c2_i32 = arith.constant 2 : i32
    %21 = vector.broadcast %c2_i32 : i32 to vector<96x1xi32>
    %22 = arith.cmpi sge, %16, %21 : vector<96x1xi32>
    %23 = arith.extui %22 : vector<96x1xi1> to vector<96x1xi32>
    %24 = arith.sitofp %23 : vector<96x1xi32> to vector<96x1xf32>
    %c4_i32 = arith.constant 4 : i32
    %25 = vector.broadcast %c4_i32 : i32 to vector<96x1xi32>
    %26 = arith.cmpi sge, %16, %25 : vector<96x1xi32>
    %27 = arith.extui %26 : vector<96x1xi1> to vector<96x1xi32>
    %28 = arith.sitofp %27 : vector<96x1xi32> to vector<96x1xf32>
    %c8_i32 = arith.constant 8 : i32
    %29 = vector.broadcast %c8_i32 : i32 to vector<96x1xi32>
    %30 = arith.cmpi sge, %16, %29 : vector<96x1xi32>
    %31 = arith.extui %30 : vector<96x1xi1> to vector<96x1xi32>
    %32 = arith.sitofp %31 : vector<96x1xi32> to vector<96x1xf32>
    %c16_i32 = arith.constant 16 : i32
    %33 = vector.broadcast %c16_i32 : i32 to vector<96x1xi32>
    %34 = arith.cmpi sge, %16, %33 : vector<96x1xi32>
    %35 = arith.extui %34 : vector<96x1xi1> to vector<96x1xi32>
    %36 = arith.sitofp %35 : vector<96x1xi32> to vector<96x1xf32>
    %c0 = arith.constant 0 : index
    %c0_4 = arith.constant 0 : index
    %c0_5 = arith.constant 0 : index
    %37 = vector.load %arg1[%c0, %c0_4, %c0_5] : memref<1x96x32xf32, #tpu.memory_space<vmem>>, vector<1x96x32xf32>
    %38 = vector.shape_cast %37 : vector<1x96x32xf32> to vector<96x32xf32>
    %c2_i32_6 = arith.constant 2 : i32
    %39 = tpu.dynamic_rotate %38 by %c2_i32_6 dim 0 : vector<96x32xf32>, i32 -> vector<96x32xf32>
    %40 = vector.broadcast %24 : vector<96x1xf32> to vector<96x32xf32>
    %41 = arith.mulf %39, %40 : vector<96x32xf32>
    %c1_i32_7 = arith.constant 1 : i32
    %42 = tpu.dynamic_rotate %38 by %c1_i32_7 dim 0 : vector<96x32xf32>, i32 -> vector<96x32xf32>
    %43 = vector.broadcast %20 : vector<96x1xf32> to vector<96x32xf32>
    %44 = arith.mulf %42, %43 : vector<96x32xf32>
    %45 = tpu.concatenate %41, %44, %38 in 1 : vector<96x32xf32>, vector<96x32xf32>, vector<96x32xf32> -> vector<96x96xf32>
    %c0_8 = arith.constant 0 : index
    %c0_9 = arith.constant 0 : index
    %46 = vector.load %arg3[%c0_8, %c0_9] : memref<96x96xf32, #tpu.memory_space<vmem>>, vector<96x96xf32>
    %cst = arith.constant dense<0.000000e+00> : vector<96x96xf32>
    %47 = tpu.matmul %45, %46, %cst {dimension_numbers = #tpu.dot_dimension_numbers<[1], [0], [0], [1], [0, 0, 1, 1], [], []>} : vector<96x96xf32>, vector<96x96xf32>, vector<96x96xf32> -> vector<96x96xf32>
    %c0_10 = arith.constant 0 : index
    %c0_11 = arith.constant 0 : index
    %48 = vector.load %arg4[%c0_10, %c0_11] : memref<1x96xf32, #tpu.memory_space<vmem>>, vector<1x96xf32>
    %49 = vector.broadcast %48 : vector<1x96xf32> to vector<96x96xf32>
    %50 = arith.addf %47, %49 : vector<96x96xf32>
    %51 = vector.extract_strided_slice %50 {offsets = [0, 64], sizes = [96, 32], strides = [1, 1]} : vector<96x96xf32> to vector<96x32xf32>
    %52 = vector.extract_strided_slice %50 {offsets = [0, 0], sizes = [96, 32], strides = [1, 1]} : vector<96x96xf32> to vector<96x32xf32>
    %53 = arith.negf %52 : vector<96x32xf32>
    %54 = math.exp %53 : vector<96x32xf32>
    %cst_12 = arith.constant 1.000000e+00 : f32
    %55 = vector.broadcast %cst_12 : f32 to vector<96x32xf32>
    %56 = arith.addf %55, %54 : vector<96x32xf32>
    %57 = arith.divf %55, %56 : vector<96x32xf32>
    %58 = vector.extract_strided_slice %50 {offsets = [0, 32], sizes = [96, 32], strides = [1, 1]} : vector<96x96xf32> to vector<96x32xf32>
    %59 = math.tanh %58 : vector<96x32xf32>
    %60 = arith.mulf %57, %59 : vector<96x32xf32>
    %c0_13 = arith.constant 0 : index
    %c0_14 = arith.constant 0 : index
    %61 = vector.load %arg5[%c0_13, %c0_14] : memref<1x32xf32, #tpu.memory_space<vmem>>, vector<1x32xf32>
    %62 = vector.broadcast %61 : vector<1x32xf32> to vector<96x32xf32>
    %63 = arith.mulf %60, %62 : vector<96x32xf32>
    %c0_15 = arith.constant 0 : index
    %c0_16 = arith.constant 0 : index
    %64 = vector.load %arg6[%c0_15, %c0_16] : memref<1x32xf32, #tpu.memory_space<vmem>>, vector<1x32xf32>
    %65 = vector.broadcast %64 : vector<1x32xf32> to vector<96x32xf32>
    %66 = arith.addf %63, %65 : vector<96x32xf32>
    %c4_i32_17 = arith.constant 4 : i32
    %67 = tpu.dynamic_rotate %66 by %c4_i32_17 dim 0 : vector<96x32xf32>, i32 -> vector<96x32xf32>
    %68 = vector.broadcast %28 : vector<96x1xf32> to vector<96x32xf32>
    %69 = arith.mulf %67, %68 : vector<96x32xf32>
    %c2_i32_18 = arith.constant 2 : i32
    %70 = tpu.dynamic_rotate %66 by %c2_i32_18 dim 0 : vector<96x32xf32>, i32 -> vector<96x32xf32>
    %71 = vector.broadcast %24 : vector<96x1xf32> to vector<96x32xf32>
    %72 = arith.mulf %70, %71 : vector<96x32xf32>
    %73 = tpu.concatenate %69, %72, %66 in 1 : vector<96x32xf32>, vector<96x32xf32>, vector<96x32xf32> -> vector<96x96xf32>
    %c0_19 = arith.constant 0 : index
    %c0_20 = arith.constant 0 : index
    %74 = vector.load %arg7[%c0_19, %c0_20] : memref<96x64xf32, #tpu.memory_space<vmem>>, vector<96x64xf32>
    %cst_21 = arith.constant dense<0.000000e+00> : vector<96x64xf32>
    %75 = tpu.matmul %73, %74, %cst_21 {dimension_numbers = #tpu.dot_dimension_numbers<[1], [0], [0], [1], [0, 0, 1, 1], [], []>} : vector<96x96xf32>, vector<96x64xf32>, vector<96x64xf32> -> vector<96x64xf32>
    %c0_22 = arith.constant 0 : index
    %c0_23 = arith.constant 0 : index
    %76 = vector.load %arg8[%c0_22, %c0_23] : memref<1x64xf32, #tpu.memory_space<vmem>>, vector<1x64xf32>
    %77 = vector.broadcast %76 : vector<1x64xf32> to vector<96x64xf32>
    %78 = arith.addf %75, %77 : vector<96x64xf32>
    %79 = vector.extract_strided_slice %78 {offsets = [0, 0], sizes = [96, 32], strides = [1, 1]} : vector<96x64xf32> to vector<96x32xf32>
    %80 = arith.negf %79 : vector<96x32xf32>
    %81 = math.exp %80 : vector<96x32xf32>
    %cst_24 = arith.constant 1.000000e+00 : f32
    %82 = vector.broadcast %cst_24 : f32 to vector<96x32xf32>
    %83 = arith.addf %82, %81 : vector<96x32xf32>
    %84 = arith.divf %82, %83 : vector<96x32xf32>
    %85 = vector.extract_strided_slice %78 {offsets = [0, 32], sizes = [96, 32], strides = [1, 1]} : vector<96x64xf32> to vector<96x32xf32>
    %86 = math.tanh %85 : vector<96x32xf32>
    %87 = arith.mulf %84, %86 : vector<96x32xf32>
    %c0_25 = arith.constant 0 : index
    %c0_26 = arith.constant 0 : index
    %88 = vector.load %arg9[%c0_25, %c0_26] : memref<1x32xf32, #tpu.memory_space<vmem>>, vector<1x32xf32>
    %89 = vector.broadcast %88 : vector<1x32xf32> to vector<96x32xf32>
    %90 = arith.mulf %87, %89 : vector<96x32xf32>
    %c0_27 = arith.constant 0 : index
    %c0_28 = arith.constant 0 : index
    %91 = vector.load %arg10[%c0_27, %c0_28] : memref<1x32xf32, #tpu.memory_space<vmem>>, vector<1x32xf32>
    %92 = vector.broadcast %91 : vector<1x32xf32> to vector<96x32xf32>
    %93 = arith.addf %90, %92 : vector<96x32xf32>
    %94 = arith.addf %93, %51 : vector<96x32xf32>
    %c8_i32_29 = arith.constant 8 : i32
    %95 = tpu.dynamic_rotate %94 by %c8_i32_29 dim 0 : vector<96x32xf32>, i32 -> vector<96x32xf32>
    %96 = vector.broadcast %32 : vector<96x1xf32> to vector<96x32xf32>
    %97 = arith.mulf %95, %96 : vector<96x32xf32>
    %c4_i32_30 = arith.constant 4 : i32
    %98 = tpu.dynamic_rotate %94 by %c4_i32_30 dim 0 : vector<96x32xf32>, i32 -> vector<96x32xf32>
    %99 = vector.broadcast %28 : vector<96x1xf32> to vector<96x32xf32>
    %100 = arith.mulf %98, %99 : vector<96x32xf32>
    %101 = tpu.concatenate %97, %100, %94 in 1 : vector<96x32xf32>, vector<96x32xf32>, vector<96x32xf32> -> vector<96x96xf32>
    %c0_31 = arith.constant 0 : index
    %c0_32 = arith.constant 0 : index
    %102 = vector.load %arg11[%c0_31, %c0_32] : memref<96x96xf32, #tpu.memory_space<vmem>>, vector<96x96xf32>
    %cst_33 = arith.constant dense<0.000000e+00> : vector<96x96xf32>
    %103 = tpu.matmul %101, %102, %cst_33 {dimension_numbers = #tpu.dot_dimension_numbers<[1], [0], [0], [1], [0, 0, 1, 1], [], []>} : vector<96x96xf32>, vector<96x96xf32>, vector<96x96xf32> -> vector<96x96xf32>
    %c0_34 = arith.constant 0 : index
    %c0_35 = arith.constant 0 : index
    %104 = vector.load %arg12[%c0_34, %c0_35] : memref<1x96xf32, #tpu.memory_space<vmem>>, vector<1x96xf32>
    %105 = vector.broadcast %104 : vector<1x96xf32> to vector<96x96xf32>
    %106 = arith.addf %103, %105 : vector<96x96xf32>
    %107 = vector.extract_strided_slice %106 {offsets = [0, 64], sizes = [96, 32], strides = [1, 1]} : vector<96x96xf32> to vector<96x32xf32>
    %108 = vector.extract_strided_slice %106 {offsets = [0, 0], sizes = [96, 32], strides = [1, 1]} : vector<96x96xf32> to vector<96x32xf32>
    %109 = arith.negf %108 : vector<96x32xf32>
    %110 = math.exp %109 : vector<96x32xf32>
    %cst_36 = arith.constant 1.000000e+00 : f32
    %111 = vector.broadcast %cst_36 : f32 to vector<96x32xf32>
    %112 = arith.addf %111, %110 : vector<96x32xf32>
    %113 = arith.divf %111, %112 : vector<96x32xf32>
    %114 = vector.extract_strided_slice %106 {offsets = [0, 32], sizes = [96, 32], strides = [1, 1]} : vector<96x96xf32> to vector<96x32xf32>
    %115 = math.tanh %114 : vector<96x32xf32>
    %116 = arith.mulf %113, %115 : vector<96x32xf32>
    %c0_37 = arith.constant 0 : index
    %c0_38 = arith.constant 0 : index
    %117 = vector.load %arg13[%c0_37, %c0_38] : memref<1x32xf32, #tpu.memory_space<vmem>>, vector<1x32xf32>
    %118 = vector.broadcast %117 : vector<1x32xf32> to vector<96x32xf32>
    %119 = arith.mulf %116, %118 : vector<96x32xf32>
    %c0_39 = arith.constant 0 : index
    %c0_40 = arith.constant 0 : index
    %120 = vector.load %arg14[%c0_39, %c0_40] : memref<1x32xf32, #tpu.memory_space<vmem>>, vector<1x32xf32>
    %121 = vector.broadcast %120 : vector<1x32xf32> to vector<96x32xf32>
    %122 = arith.addf %119, %121 : vector<96x32xf32>
    %c16_i32_41 = arith.constant 16 : i32
    %123 = tpu.dynamic_rotate %122 by %c16_i32_41 dim 0 : vector<96x32xf32>, i32 -> vector<96x32xf32>
    %124 = vector.broadcast %36 : vector<96x1xf32> to vector<96x32xf32>
    %125 = arith.mulf %123, %124 : vector<96x32xf32>
    %c8_i32_42 = arith.constant 8 : i32
    %126 = tpu.dynamic_rotate %122 by %c8_i32_42 dim 0 : vector<96x32xf32>, i32 -> vector<96x32xf32>
    %127 = vector.broadcast %32 : vector<96x1xf32> to vector<96x32xf32>
    %128 = arith.mulf %126, %127 : vector<96x32xf32>
    %129 = tpu.concatenate %125, %128, %122 in 1 : vector<96x32xf32>, vector<96x32xf32>, vector<96x32xf32> -> vector<96x96xf32>
    %c0_43 = arith.constant 0 : index
    %c0_44 = arith.constant 0 : index
    %130 = vector.load %arg15[%c0_43, %c0_44] : memref<96x64xf32, #tpu.memory_space<vmem>>, vector<96x64xf32>
    %cst_45 = arith.constant dense<0.000000e+00> : vector<96x64xf32>
    %131 = tpu.matmul %129, %130, %cst_45 {dimension_numbers = #tpu.dot_dimension_numbers<[1], [0], [0], [1], [0, 0, 1, 1], [], []>} : vector<96x96xf32>, vector<96x64xf32>, vector<96x64xf32> -> vector<96x64xf32>
    %c0_46 = arith.constant 0 : index
    %c0_47 = arith.constant 0 : index
    %132 = vector.load %arg16[%c0_46, %c0_47] : memref<1x64xf32, #tpu.memory_space<vmem>>, vector<1x64xf32>
    %133 = vector.broadcast %132 : vector<1x64xf32> to vector<96x64xf32>
    %134 = arith.addf %131, %133 : vector<96x64xf32>
    %135 = vector.extract_strided_slice %134 {offsets = [0, 0], sizes = [96, 32], strides = [1, 1]} : vector<96x64xf32> to vector<96x32xf32>
    %136 = arith.negf %135 : vector<96x32xf32>
    %137 = math.exp %136 : vector<96x32xf32>
    %cst_48 = arith.constant 1.000000e+00 : f32
    %138 = vector.broadcast %cst_48 : f32 to vector<96x32xf32>
    %139 = arith.addf %138, %137 : vector<96x32xf32>
    %140 = arith.divf %138, %139 : vector<96x32xf32>
    %141 = vector.extract_strided_slice %134 {offsets = [0, 32], sizes = [96, 32], strides = [1, 1]} : vector<96x64xf32> to vector<96x32xf32>
    %142 = math.tanh %141 : vector<96x32xf32>
    %143 = arith.mulf %140, %142 : vector<96x32xf32>
    %c0_49 = arith.constant 0 : index
    %c0_50 = arith.constant 0 : index
    %144 = vector.load %arg17[%c0_49, %c0_50] : memref<1x32xf32, #tpu.memory_space<vmem>>, vector<1x32xf32>
    %145 = vector.broadcast %144 : vector<1x32xf32> to vector<96x32xf32>
    %146 = arith.mulf %143, %145 : vector<96x32xf32>
    %c0_51 = arith.constant 0 : index
    %c0_52 = arith.constant 0 : index
    %147 = vector.load %arg18[%c0_51, %c0_52] : memref<1x32xf32, #tpu.memory_space<vmem>>, vector<1x32xf32>
    %148 = vector.broadcast %147 : vector<1x32xf32> to vector<96x32xf32>
    %149 = arith.addf %146, %148 : vector<96x32xf32>
    %150 = arith.addf %149, %107 : vector<96x32xf32>
    %c1_i32_53 = arith.constant 1 : i32
    %151 = tpu.dynamic_rotate %150 by %c1_i32_53 dim 0 : vector<96x32xf32>, i32 -> vector<96x32xf32>
    %c2_i32_54 = arith.constant 2 : i32
    %152 = tpu.dynamic_rotate %150 by %c2_i32_54 dim 0 : vector<96x32xf32>, i32 -> vector<96x32xf32>
    %153 = arith.maximumf %151, %152 : vector<96x32xf32>
    %154 = arith.maximumf %150, %153 : vector<96x32xf32>
    %155 = vector.extract_strided_slice %154 {offsets = [0, 0], sizes = [24, 32], strides = [1, 1]} : vector<96x32xf32> to vector<24x32xf32>
    %c0_55 = arith.constant 0 : index
    %c0_56 = arith.constant 0 : index
    %156 = vector.load %arg2[%c0_55, %c0_56] : memref<8x24xf32, #tpu.memory_space<vmem>>, vector<8x24xf32>
    %cst_57 = arith.constant dense<0.000000e+00> : vector<8x32xf32>
    %157 = tpu.matmul %156, %155, %cst_57 {dimension_numbers = #tpu.dot_dimension_numbers<[1], [0], [0], [1], [0, 0, 1, 1], [], []>} : vector<8x24xf32>, vector<24x32xf32>, vector<8x32xf32> -> vector<8x32xf32>
    %c0_58 = arith.constant 0 : index
    %c0_59 = arith.constant 0 : index
    %158 = vector.load %arg19[%c0_58, %c0_59] : memref<32x8xf32, #tpu.memory_space<vmem>>, vector<32x8xf32>
    %cst_60 = arith.constant dense<0.000000e+00> : vector<8x8xf32>
    %159 = tpu.matmul %157, %158, %cst_60 {dimension_numbers = #tpu.dot_dimension_numbers<[1], [0], [0], [1], [0, 0, 1, 1], [], []>} : vector<8x32xf32>, vector<32x8xf32>, vector<8x8xf32> -> vector<8x8xf32>
    %c0_61 = arith.constant 0 : index
    %c0_62 = arith.constant 0 : index
    %160 = vector.load %arg20[%c0_61, %c0_62] : memref<1x8xf32, #tpu.memory_space<vmem>>, vector<1x8xf32>
    %161 = vector.broadcast %160 : vector<1x8xf32> to vector<8x8xf32>
    %162 = arith.addf %159, %161 : vector<8x8xf32>
    %c0_63 = arith.constant 0 : index
    %c0_64 = arith.constant 0 : index
    %163 = vector.load %arg21[%c0_63, %c0_64] : memref<1x32xf32, #tpu.memory_space<vmem>>, vector<1x32xf32>
    %164 = vector.broadcast %163 : vector<1x32xf32> to vector<8x32xf32>
    %165 = arith.mulf %157, %164 : vector<8x32xf32>
    %cst_65 = arith.constant dense<0.000000e+00> : vector<8xf32>
    %166 = vector.multi_reduction <add>, %165, %cst_65 [1] : vector<8x32xf32> to vector<8xf32>
    %167 = vector.shape_cast %166 : vector<8xf32> to vector<8x1xf32>
    %c0_66 = arith.constant 0 : index
    %c0_67 = arith.constant 0 : index
    %168 = vector.load %arg22[%c0_66, %c0_67] : memref<1x1xf32, #tpu.memory_space<vmem>>, vector<1x1xf32>
    %169 = vector.broadcast %168 : vector<1x1xf32> to vector<8x1xf32>
    %170 = arith.addf %167, %169 : vector<8x1xf32>
    %cst_68 = arith.constant dense<0xFF800000> : vector<1xf32>
    %171 = vector.multi_reduction <maximumf>, %170, %cst_68 [0] : vector<8x1xf32> to vector<1xf32>
    %172 = vector.shape_cast %171 : vector<1xf32> to vector<1x1xf32>
    %173 = vector.broadcast %172 : vector<1x1xf32> to vector<8x1xf32>
    %174 = arith.subf %170, %173 : vector<8x1xf32>
    %175 = math.exp %174 : vector<8x1xf32>
    %cst_69 = arith.constant dense<0.000000e+00> : vector<1xf32>
    %176 = vector.multi_reduction <add>, %175, %cst_69 [0] : vector<8x1xf32> to vector<1xf32>
    %177 = vector.shape_cast %176 : vector<1xf32> to vector<1x1xf32>
    %cst_70 = arith.constant 8.000000e+00 : f32
    %178 = vector.broadcast %cst_70 : f32 to vector<1x1xf32>
    %179 = arith.mulf %177, %178 : vector<1x1xf32>
    %180 = vector.broadcast %175 : vector<8x1xf32> to vector<8x8xf32>
    %181 = arith.mulf %180, %162 : vector<8x8xf32>
    %cst_71 = arith.constant dense<0.000000e+00> : vector<8xf32>
    %182 = vector.multi_reduction <add>, %181, %cst_71 [0] : vector<8x8xf32> to vector<8xf32>
    %183 = vector.shape_cast %182 : vector<8xf32> to vector<1x8xf32>
    %184 = vector.broadcast %179 : vector<1x1xf32> to vector<1x8xf32>
    %185 = arith.divf %183, %184 : vector<1x8xf32>
    %cst_72 = arith.constant 0.000000e+00 : f32
    %186 = vector.broadcast %cst_72 : f32 to vector<1x8xf32>
    %187 = arith.cmpf oge, %185, %186 : vector<1x8xf32>
    %cst_73 = arith.constant 0.00999999977 : f32
    %188 = vector.broadcast %cst_73 : f32 to vector<1x8xf32>
    %189 = arith.mulf %188, %185 : vector<1x8xf32>
    %190 = arith.select %187, %185, %189 : vector<1x8xi1>, vector<1x8xf32>
    %191 = vector.extract_strided_slice %154 {offsets = [24, 0], sizes = [24, 32], strides = [1, 1]} : vector<96x32xf32> to vector<24x32xf32>
    %c0_74 = arith.constant 0 : index
    %c0_75 = arith.constant 0 : index
    %192 = vector.load %arg2[%c0_74, %c0_75] : memref<8x24xf32, #tpu.memory_space<vmem>>, vector<8x24xf32>
    %cst_76 = arith.constant dense<0.000000e+00> : vector<8x32xf32>
    %193 = tpu.matmul %192, %191, %cst_76 {dimension_numbers = #tpu.dot_dimension_numbers<[1], [0], [0], [1], [0, 0, 1, 1], [], []>} : vector<8x24xf32>, vector<24x32xf32>, vector<8x32xf32> -> vector<8x32xf32>
    %c0_77 = arith.constant 0 : index
    %c0_78 = arith.constant 0 : index
    %194 = vector.load %arg19[%c0_77, %c0_78] : memref<32x8xf32, #tpu.memory_space<vmem>>, vector<32x8xf32>
    %cst_79 = arith.constant dense<0.000000e+00> : vector<8x8xf32>
    %195 = tpu.matmul %193, %194, %cst_79 {dimension_numbers = #tpu.dot_dimension_numbers<[1], [0], [0], [1], [0, 0, 1, 1], [], []>} : vector<8x32xf32>, vector<32x8xf32>, vector<8x8xf32> -> vector<8x8xf32>
    %c0_80 = arith.constant 0 : index
    %c0_81 = arith.constant 0 : index
    %196 = vector.load %arg20[%c0_80, %c0_81] : memref<1x8xf32, #tpu.memory_space<vmem>>, vector<1x8xf32>
    %197 = vector.broadcast %196 : vector<1x8xf32> to vector<8x8xf32>
    %198 = arith.addf %195, %197 : vector<8x8xf32>
    %c0_82 = arith.constant 0 : index
    %c0_83 = arith.constant 0 : index
    %199 = vector.load %arg21[%c0_82, %c0_83] : memref<1x32xf32, #tpu.memory_space<vmem>>, vector<1x32xf32>
    %200 = vector.broadcast %199 : vector<1x32xf32> to vector<8x32xf32>
    %201 = arith.mulf %193, %200 : vector<8x32xf32>
    %cst_84 = arith.constant dense<0.000000e+00> : vector<8xf32>
    %202 = vector.multi_reduction <add>, %201, %cst_84 [1] : vector<8x32xf32> to vector<8xf32>
    %203 = vector.shape_cast %202 : vector<8xf32> to vector<8x1xf32>
    %c0_85 = arith.constant 0 : index
    %c0_86 = arith.constant 0 : index
    %204 = vector.load %arg22[%c0_85, %c0_86] : memref<1x1xf32, #tpu.memory_space<vmem>>, vector<1x1xf32>
    %205 = vector.broadcast %204 : vector<1x1xf32> to vector<8x1xf32>
    %206 = arith.addf %203, %205 : vector<8x1xf32>
    %cst_87 = arith.constant dense<0xFF800000> : vector<1xf32>
    %207 = vector.multi_reduction <maximumf>, %206, %cst_87 [0] : vector<8x1xf32> to vector<1xf32>
    %208 = vector.shape_cast %207 : vector<1xf32> to vector<1x1xf32>
    %209 = vector.broadcast %208 : vector<1x1xf32> to vector<8x1xf32>
    %210 = arith.subf %206, %209 : vector<8x1xf32>
    %211 = math.exp %210 : vector<8x1xf32>
    %cst_88 = arith.constant dense<0.000000e+00> : vector<1xf32>
    %212 = vector.multi_reduction <add>, %211, %cst_88 [0] : vector<8x1xf32> to vector<1xf32>
    %213 = vector.shape_cast %212 : vector<1xf32> to vector<1x1xf32>
    %cst_89 = arith.constant 8.000000e+00 : f32
    %214 = vector.broadcast %cst_89 : f32 to vector<1x1xf32>
    %215 = arith.mulf %213, %214 : vector<1x1xf32>
    %216 = vector.broadcast %211 : vector<8x1xf32> to vector<8x8xf32>
    %217 = arith.mulf %216, %198 : vector<8x8xf32>
    %cst_90 = arith.constant dense<0.000000e+00> : vector<8xf32>
    %218 = vector.multi_reduction <add>, %217, %cst_90 [0] : vector<8x8xf32> to vector<8xf32>
    %219 = vector.shape_cast %218 : vector<8xf32> to vector<1x8xf32>
    %220 = vector.broadcast %215 : vector<1x1xf32> to vector<1x8xf32>
    %221 = arith.divf %219, %220 : vector<1x8xf32>
    %cst_91 = arith.constant 0.000000e+00 : f32
    %222 = vector.broadcast %cst_91 : f32 to vector<1x8xf32>
    %223 = arith.cmpf oge, %221, %222 : vector<1x8xf32>
    %cst_92 = arith.constant 0.00999999977 : f32
    %224 = vector.broadcast %cst_92 : f32 to vector<1x8xf32>
    %225 = arith.mulf %224, %221 : vector<1x8xf32>
    %226 = arith.select %223, %221, %225 : vector<1x8xi1>, vector<1x8xf32>
    %227 = vector.extract_strided_slice %154 {offsets = [48, 0], sizes = [24, 32], strides = [1, 1]} : vector<96x32xf32> to vector<24x32xf32>
    %c0_93 = arith.constant 0 : index
    %c0_94 = arith.constant 0 : index
    %228 = vector.load %arg2[%c0_93, %c0_94] : memref<8x24xf32, #tpu.memory_space<vmem>>, vector<8x24xf32>
    %cst_95 = arith.constant dense<0.000000e+00> : vector<8x32xf32>
    %229 = tpu.matmul %228, %227, %cst_95 {dimension_numbers = #tpu.dot_dimension_numbers<[1], [0], [0], [1], [0, 0, 1, 1], [], []>} : vector<8x24xf32>, vector<24x32xf32>, vector<8x32xf32> -> vector<8x32xf32>
    %c0_96 = arith.constant 0 : index
    %c0_97 = arith.constant 0 : index
    %230 = vector.load %arg19[%c0_96, %c0_97] : memref<32x8xf32, #tpu.memory_space<vmem>>, vector<32x8xf32>
    %cst_98 = arith.constant dense<0.000000e+00> : vector<8x8xf32>
    %231 = tpu.matmul %229, %230, %cst_98 {dimension_numbers = #tpu.dot_dimension_numbers<[1], [0], [0], [1], [0, 0, 1, 1], [], []>} : vector<8x32xf32>, vector<32x8xf32>, vector<8x8xf32> -> vector<8x8xf32>
    %c0_99 = arith.constant 0 : index
    %c0_100 = arith.constant 0 : index
    %232 = vector.load %arg20[%c0_99, %c0_100] : memref<1x8xf32, #tpu.memory_space<vmem>>, vector<1x8xf32>
    %233 = vector.broadcast %232 : vector<1x8xf32> to vector<8x8xf32>
    %234 = arith.addf %231, %233 : vector<8x8xf32>
    %c0_101 = arith.constant 0 : index
    %c0_102 = arith.constant 0 : index
    %235 = vector.load %arg21[%c0_101, %c0_102] : memref<1x32xf32, #tpu.memory_space<vmem>>, vector<1x32xf32>
    %236 = vector.broadcast %235 : vector<1x32xf32> to vector<8x32xf32>
    %237 = arith.mulf %229, %236 : vector<8x32xf32>
    %cst_103 = arith.constant dense<0.000000e+00> : vector<8xf32>
    %238 = vector.multi_reduction <add>, %237, %cst_103 [1] : vector<8x32xf32> to vector<8xf32>
    %239 = vector.shape_cast %238 : vector<8xf32> to vector<8x1xf32>
    %c0_104 = arith.constant 0 : index
    %c0_105 = arith.constant 0 : index
    %240 = vector.load %arg22[%c0_104, %c0_105] : memref<1x1xf32, #tpu.memory_space<vmem>>, vector<1x1xf32>
    %241 = vector.broadcast %240 : vector<1x1xf32> to vector<8x1xf32>
    %242 = arith.addf %239, %241 : vector<8x1xf32>
    %cst_106 = arith.constant dense<0xFF800000> : vector<1xf32>
    %243 = vector.multi_reduction <maximumf>, %242, %cst_106 [0] : vector<8x1xf32> to vector<1xf32>
    %244 = vector.shape_cast %243 : vector<1xf32> to vector<1x1xf32>
    %245 = vector.broadcast %244 : vector<1x1xf32> to vector<8x1xf32>
    %246 = arith.subf %242, %245 : vector<8x1xf32>
    %247 = math.exp %246 : vector<8x1xf32>
    %cst_107 = arith.constant dense<0.000000e+00> : vector<1xf32>
    %248 = vector.multi_reduction <add>, %247, %cst_107 [0] : vector<8x1xf32> to vector<1xf32>
    %249 = vector.shape_cast %248 : vector<1xf32> to vector<1x1xf32>
    %cst_108 = arith.constant 8.000000e+00 : f32
    %250 = vector.broadcast %cst_108 : f32 to vector<1x1xf32>
    %251 = arith.mulf %249, %250 : vector<1x1xf32>
    %252 = vector.broadcast %247 : vector<8x1xf32> to vector<8x8xf32>
    %253 = arith.mulf %252, %234 : vector<8x8xf32>
    %cst_109 = arith.constant dense<0.000000e+00> : vector<8xf32>
    %254 = vector.multi_reduction <add>, %253, %cst_109 [0] : vector<8x8xf32> to vector<8xf32>
    %255 = vector.shape_cast %254 : vector<8xf32> to vector<1x8xf32>
    %256 = vector.broadcast %251 : vector<1x1xf32> to vector<1x8xf32>
    %257 = arith.divf %255, %256 : vector<1x8xf32>
    %cst_110 = arith.constant 0.000000e+00 : f32
    %258 = vector.broadcast %cst_110 : f32 to vector<1x8xf32>
    %259 = arith.cmpf oge, %257, %258 : vector<1x8xf32>
    %cst_111 = arith.constant 0.00999999977 : f32
    %260 = vector.broadcast %cst_111 : f32 to vector<1x8xf32>
    %261 = arith.mulf %260, %257 : vector<1x8xf32>
    %262 = arith.select %259, %257, %261 : vector<1x8xi1>, vector<1x8xf32>
    %263 = vector.extract_strided_slice %154 {offsets = [72, 0], sizes = [24, 32], strides = [1, 1]} : vector<96x32xf32> to vector<24x32xf32>
    %c0_112 = arith.constant 0 : index
    %c0_113 = arith.constant 0 : index
    %264 = vector.load %arg2[%c0_112, %c0_113] : memref<8x24xf32, #tpu.memory_space<vmem>>, vector<8x24xf32>
    %cst_114 = arith.constant dense<0.000000e+00> : vector<8x32xf32>
    %265 = tpu.matmul %264, %263, %cst_114 {dimension_numbers = #tpu.dot_dimension_numbers<[1], [0], [0], [1], [0, 0, 1, 1], [], []>} : vector<8x24xf32>, vector<24x32xf32>, vector<8x32xf32> -> vector<8x32xf32>
    %c0_115 = arith.constant 0 : index
    %c0_116 = arith.constant 0 : index
    %266 = vector.load %arg19[%c0_115, %c0_116] : memref<32x8xf32, #tpu.memory_space<vmem>>, vector<32x8xf32>
    %cst_117 = arith.constant dense<0.000000e+00> : vector<8x8xf32>
    %267 = tpu.matmul %265, %266, %cst_117 {dimension_numbers = #tpu.dot_dimension_numbers<[1], [0], [0], [1], [0, 0, 1, 1], [], []>} : vector<8x32xf32>, vector<32x8xf32>, vector<8x8xf32> -> vector<8x8xf32>
    %c0_118 = arith.constant 0 : index
    %c0_119 = arith.constant 0 : index
    %268 = vector.load %arg20[%c0_118, %c0_119] : memref<1x8xf32, #tpu.memory_space<vmem>>, vector<1x8xf32>
    %269 = vector.broadcast %268 : vector<1x8xf32> to vector<8x8xf32>
    %270 = arith.addf %267, %269 : vector<8x8xf32>
    %c0_120 = arith.constant 0 : index
    %c0_121 = arith.constant 0 : index
    %271 = vector.load %arg21[%c0_120, %c0_121] : memref<1x32xf32, #tpu.memory_space<vmem>>, vector<1x32xf32>
    %272 = vector.broadcast %271 : vector<1x32xf32> to vector<8x32xf32>
    %273 = arith.mulf %265, %272 : vector<8x32xf32>
    %cst_122 = arith.constant dense<0.000000e+00> : vector<8xf32>
    %274 = vector.multi_reduction <add>, %273, %cst_122 [1] : vector<8x32xf32> to vector<8xf32>
    %275 = vector.shape_cast %274 : vector<8xf32> to vector<8x1xf32>
    %c0_123 = arith.constant 0 : index
    %c0_124 = arith.constant 0 : index
    %276 = vector.load %arg22[%c0_123, %c0_124] : memref<1x1xf32, #tpu.memory_space<vmem>>, vector<1x1xf32>
    %277 = vector.broadcast %276 : vector<1x1xf32> to vector<8x1xf32>
    %278 = arith.addf %275, %277 : vector<8x1xf32>
    %cst_125 = arith.constant dense<0xFF800000> : vector<1xf32>
    %279 = vector.multi_reduction <maximumf>, %278, %cst_125 [0] : vector<8x1xf32> to vector<1xf32>
    %280 = vector.shape_cast %279 : vector<1xf32> to vector<1x1xf32>
    %281 = vector.broadcast %280 : vector<1x1xf32> to vector<8x1xf32>
    %282 = arith.subf %278, %281 : vector<8x1xf32>
    %283 = math.exp %282 : vector<8x1xf32>
    %cst_126 = arith.constant dense<0.000000e+00> : vector<1xf32>
    %284 = vector.multi_reduction <add>, %283, %cst_126 [0] : vector<8x1xf32> to vector<1xf32>
    %285 = vector.shape_cast %284 : vector<1xf32> to vector<1x1xf32>
    %cst_127 = arith.constant 8.000000e+00 : f32
    %286 = vector.broadcast %cst_127 : f32 to vector<1x1xf32>
    %287 = arith.mulf %285, %286 : vector<1x1xf32>
    %288 = vector.broadcast %283 : vector<8x1xf32> to vector<8x8xf32>
    %289 = arith.mulf %288, %270 : vector<8x8xf32>
    %cst_128 = arith.constant dense<0.000000e+00> : vector<8xf32>
    %290 = vector.multi_reduction <add>, %289, %cst_128 [0] : vector<8x8xf32> to vector<8xf32>
    %291 = vector.shape_cast %290 : vector<8xf32> to vector<1x8xf32>
    %292 = vector.broadcast %287 : vector<1x1xf32> to vector<1x8xf32>
    %293 = arith.divf %291, %292 : vector<1x8xf32>
    %cst_129 = arith.constant 0.000000e+00 : f32
    %294 = vector.broadcast %cst_129 : f32 to vector<1x8xf32>
    %295 = arith.cmpf oge, %293, %294 : vector<1x8xf32>
    %cst_130 = arith.constant 0.00999999977 : f32
    %296 = vector.broadcast %cst_130 : f32 to vector<1x8xf32>
    %297 = arith.mulf %296, %293 : vector<1x8xf32>
    %298 = arith.select %295, %293, %297 : vector<1x8xi1>, vector<1x8xf32>
    %299 = tpu.concatenate %190, %226, %262, %298 in 1 : vector<1x8xf32>, vector<1x8xf32>, vector<1x8xf32>, vector<1x8xf32> -> vector<1x32xf32>
    %c0_131 = arith.constant 0 : index
    %c0_132 = arith.constant 0 : index
    %c0_133 = arith.constant 0 : index
    %300 = vector.load %arg23[%c0_131, %c0_132, %c0_133] : memref<1x1x32xf32, #tpu.memory_space<vmem>>, vector<1x1x32xf32>
    %301 = vector.shape_cast %300 : vector<1x1x32xf32> to vector<1x32xf32>
    %302 = vector.shape_cast %299 : vector<1x32xf32> to vector<1x1x32xf32>
    tpu.vector_store %arg23[%c0_131, %c0_132, %c0_133], %302 {strides = array<i32>} : memref<1x1x32xf32, #tpu.memory_space<vmem>>, vector<1x1x32xf32>,
    return
  }
  func.func @transform_0(%arg0: i32) -> (i32, i32, i32) {
    %c0_i32 = arith.constant 0 : i32
    %c0_i32_0 = arith.constant 0 : i32
    %c0_i32_1 = arith.constant 0 : i32
    return %arg0, %c0_i32, %c0_i32_0 : i32, i32, i32
  }
  func.func @transform_1(%arg0: i32) -> (i32, i32) {
    %c0_i32 = arith.constant 0 : i32
    %c0_i32_0 = arith.constant 0 : i32
    %c0_i32_1 = arith.constant 0 : i32
    return %c0_i32, %c0_i32_0 : i32, i32
  }
  func.func @transform_2(%arg0: i32) -> (i32, i32) {
    %c0_i32 = arith.constant 0 : i32
    %c0_i32_0 = arith.constant 0 : i32
    %c0_i32_1 = arith.constant 0 : i32
    return %c0_i32, %c0_i32_0 : i32, i32
  }
  func.func @transform_3(%arg0: i32) -> (i32, i32) {
    %c0_i32 = arith.constant 0 : i32
    %c0_i32_0 = arith.constant 0 : i32
    %c0_i32_1 = arith.constant 0 : i32
    return %c0_i32, %c0_i32_0 : i32, i32
  }
  func.func @transform_4(%arg0: i32) -> (i32, i32) {
    %c0_i32 = arith.constant 0 : i32
    %c0_i32_0 = arith.constant 0 : i32
    %c0_i32_1 = arith.constant 0 : i32
    return %c0_i32, %c0_i32_0 : i32, i32
  }
  func.func @transform_5(%arg0: i32) -> (i32, i32) {
    %c0_i32 = arith.constant 0 : i32
    %c0_i32_0 = arith.constant 0 : i32
    %c0_i32_1 = arith.constant 0 : i32
    return %c0_i32, %c0_i32_0 : i32, i32
  }
  func.func @transform_6(%arg0: i32) -> (i32, i32) {
    %c0_i32 = arith.constant 0 : i32
    %c0_i32_0 = arith.constant 0 : i32
    %c0_i32_1 = arith.constant 0 : i32
    return %c0_i32, %c0_i32_0 : i32, i32
  }
  func.func @transform_7(%arg0: i32) -> (i32, i32) {
    %c0_i32 = arith.constant 0 : i32
    %c0_i32_0 = arith.constant 0 : i32
    %c0_i32_1 = arith.constant 0 : i32
    return %c0_i32, %c0_i32_0 : i32, i32
  }
  func.func @transform_8(%arg0: i32) -> (i32, i32) {
    %c0_i32 = arith.constant 0 : i32
    %c0_i32_0 = arith.constant 0 : i32
    %c0_i32_1 = arith.constant 0 : i32
    return %c0_i32, %c0_i32_0 : i32, i32
  }
  func.func @transform_9(%arg0: i32) -> (i32, i32) {
    %c0_i32 = arith.constant 0 : i32
    %c0_i32_0 = arith.constant 0 : i32
    %c0_i32_1 = arith.constant 0 : i32
    return %c0_i32, %c0_i32_0 : i32, i32
  }
  func.func @transform_10(%arg0: i32) -> (i32, i32) {
    %c0_i32 = arith.constant 0 : i32
    %c0_i32_0 = arith.constant 0 : i32
    %c0_i32_1 = arith.constant 0 : i32
    return %c0_i32, %c0_i32_0 : i32, i32
  }
  func.func @transform_11(%arg0: i32) -> (i32, i32) {
    %c0_i32 = arith.constant 0 : i32
    %c0_i32_0 = arith.constant 0 : i32
    %c0_i32_1 = arith.constant 0 : i32
    return %c0_i32, %c0_i32_0 : i32, i32
  }
  func.func @transform_12(%arg0: i32) -> (i32, i32) {
    %c0_i32 = arith.constant 0 : i32
    %c0_i32_0 = arith.constant 0 : i32
    %c0_i32_1 = arith.constant 0 : i32
    return %c0_i32, %c0_i32_0 : i32, i32
  }
  func.func @transform_13(%arg0: i32) -> (i32, i32) {
    %c0_i32 = arith.constant 0 : i32
    %c0_i32_0 = arith.constant 0 : i32
    %c0_i32_1 = arith.constant 0 : i32
    return %c0_i32, %c0_i32_0 : i32, i32
  }
  func.func @transform_14(%arg0: i32) -> (i32, i32) {
    %c0_i32 = arith.constant 0 : i32
    %c0_i32_0 = arith.constant 0 : i32
    %c0_i32_1 = arith.constant 0 : i32
    return %c0_i32, %c0_i32_0 : i32, i32
  }
  func.func @transform_15(%arg0: i32) -> (i32, i32) {
    %c0_i32 = arith.constant 0 : i32
    %c0_i32_0 = arith.constant 0 : i32
    %c0_i32_1 = arith.constant 0 : i32
    return %c0_i32, %c0_i32_0 : i32, i32
  }
  func.func @transform_16(%arg0: i32) -> (i32, i32) {
    %c0_i32 = arith.constant 0 : i32
    %c0_i32_0 = arith.constant 0 : i32
    %c0_i32_1 = arith.constant 0 : i32
    return %c0_i32, %c0_i32_0 : i32, i32
  }
  func.func @transform_17(%arg0: i32) -> (i32, i32) {
    %c0_i32 = arith.constant 0 : i32
    %c0_i32_0 = arith.constant 0 : i32
    %c0_i32_1 = arith.constant 0 : i32
    return %c0_i32, %c0_i32_0 : i32, i32
  }
  func.func @transform_18(%arg0: i32) -> (i32, i32) {
    %c0_i32 = arith.constant 0 : i32
    %c0_i32_0 = arith.constant 0 : i32
    %c0_i32_1 = arith.constant 0 : i32
    return %c0_i32, %c0_i32_0 : i32, i32
  }
  func.func @transform_19(%arg0: i32) -> (i32, i32) {
    %c0_i32 = arith.constant 0 : i32
    %c0_i32_0 = arith.constant 0 : i32
    %c0_i32_1 = arith.constant 0 : i32
    return %c0_i32, %c0_i32_0 : i32, i32
  }
  func.func @transform_20(%arg0: i32) -> (i32, i32) {
    %c0_i32 = arith.constant 0 : i32
    %c0_i32_0 = arith.constant 0 : i32
    %c0_i32_1 = arith.constant 0 : i32
    return %c0_i32, %c0_i32_0 : i32, i32
  }
  func.func @transform_21(%arg0: i32) -> (i32, i32) {
    %c0_i32 = arith.constant 0 : i32
    %c0_i32_0 = arith.constant 0 : i32
    %c0_i32_1 = arith.constant 0 : i32
    return %c0_i32, %c0_i32_0 : i32, i32
  }
  func.func @transform_22(%arg0: i32) -> (i32, i32, i32) {
    %c0_i32 = arith.constant 0 : i32
    %c0_i32_0 = arith.constant 0 : i32
    %c0_i32_1 = arith.constant 0 : i32
    return %arg0, %c0_i32, %c0_i32_0 : i32, i32, i32
  }
}

</mosaic_0001>

<bundles_post_ra>
// kernel: tpu_custom_call.1
= control target key start
LH: loop header
LB: loop body
LE: loop exit
PB: predicated region body
PF: predicated region fallthrough
CT: control target
= control target key end

     0   :  { %s7676_s0 = inlined_call_operand.vmem [shape: f32[4,96,32], index: 0, kind: input, shape index: {}]   ;;  %s7677_s1 = inlined_call_operand.vmem [shape: f32[8,24], index: 1, kind: input, shape index: {}]   ;;  %s7678_s2 = inlined_call_operand.vmem [shape: f32[96,96], index: 2, kind: input, shape index: {}]   ;;  %s7679_s3 = inlined_call_operand.vmem [shape: f32[1,96], index: 3, kind: input, shape index: {}]   ;;  %s7680_s4 = inlined_call_operand.vmem [shape: f32[1,32], index: 4, kind: input, shape index: {}]   ;;  %s7681_s5 = inlined_call_operand.vmem [shape: f32[1,32], index: 5, kind: input, shape index: {}]   ;;  %s7682_s6 = inlined_call_operand.vmem [shape: f32[96,64], index: 6, kind: input, shape index: {}]   ;;  %s7683_s7 = inlined_call_operand.vmem [shape: f32[1,64], index: 7, kind: input, shape index: {}]   ;;  %s7684_s8 = inlined_call_operand.vmem [shape: f32[1,32], index: 8, kind: input, shape index: {}]   ;;  %s7685_s9 = inlined_call_operand.vmem [shape: f32[1,32], index: 9, kind: input, shape index: {}]   ;;  %s7686_s10 = inlined_call_operand.vmem [shape: f32[96,96], index: 10, kind: input, shape index: {}]   ;;  %s7687_s11 = inlined_call_operand.vmem [shape: f32[1,96], index: 11, kind: input, shape index: {}]   ;;  %s7688_s12 = inlined_call_operand.vmem [shape: f32[1,32], index: 12, kind: input, shape index: {}]   ;;  %s7689_s13 = inlined_call_operand.vmem [shape: f32[1,32], index: 13, kind: input, shape index: {}]   ;;  %s7690_s14 = inlined_call_operand.vmem [shape: f32[96,64], index: 14, kind: input, shape index: {}]   ;;  %s7691_s15 = inlined_call_operand.vmem [shape: f32[1,64], index: 15, kind: input, shape index: {}]   ;;  %s7692_s16 = inlined_call_operand.vmem [shape: f32[1,32], index: 16, kind: input, shape index: {}]   ;;  %s7693_s17 = inlined_call_operand.vmem [shape: f32[1,32], index: 17, kind: input, shape index: {}]   ;;  %s7694_s18 = inlined_call_operand.vmem [shape: f32[32,8], index: 18, kind: input, shape index: {}]   ;;  %s7695_s19 = inlined_call_operand.vmem [shape: f32[1,8], index: 19, kind: input, shape index: {}]   ;;  %s7696_s20 = inlined_call_operand.vmem [shape: f32[1,32], index: 20, kind: input, shape index: {}]   ;;  %s7697_s21 = inlined_call_operand.<no memory space> [shape: f32[1,1], index: 21, kind: input, shape index: {}]   ;;  %s7698_s22 = inlined_call_operand.hbm [shape: f32[4,1,32], index: 22, kind: output, shape index: {}]  }
   0x1   :  { %7741 = sst [smem:[#allocation19_spill]] %s7676_s0  ;;  %v27_v0 = vstv %s7697_s21 }
   0x2   :  { %7742 = sst [smem:[#allocation20_spill]] %s7677_s1  ;;  %28 = vst [vmem:[#allocation2] sm:$0x1] %v27_v0 }
   0x3   :  { %7743 = sst [smem:[#allocation21_spill]] %s7678_s2 }
   0x4   :  { %7744 = sst [smem:[#allocation22_spill]] %s7679_s3 }
   0x5   :  { %7745 = sst [smem:[#allocation23_spill]] %s7680_s4 }
   0x6   :  { %7746 = sst [smem:[#allocation24_spill]] %s7681_s5 }
   0x7   :  { %7747 = sst [smem:[#allocation25_spill]] %s7682_s6 }
   0x8   :  { %29 = vsyncpa [#allocation4], 0 }
   0x9   :  { %31 = vsyncpa [#allocation4 + $0x1], 0  ;;  %s5186_s29 = smov 0   ;;  %s5188_s30 = smov 0  }
   0xa   :  { %s5190_s4 = smov 0   ;;  %s5192_s0 = smov 0  }
   0xb LB: > { %7748 = sst [smem:[#allocation6_spill]] %s5054_s4  ;;  %s5207_s21 = sadd.s32 4294967295, %s5058_s0   ;;  %s5058_s0 = sphi %s5192_s0, %s7832_s0   ;;  %s5054_s4 = sphi %s5190_s4, %s7834_s4   ;;  %s5050_s30 = sphi %s5188_s30, %s7836_s30   ;;  %s5046_s29 = sphi %s5186_s29, %s7835_s29  }
   0xc   : > { %s4455_s23 = sadd.s32 4294967294, %s5058_s0   ;;  %s5211_s1 = sadd.s32 1, %s5058_s0  }
   0xd   : > { %7749 = sst [smem:[#allocation7_spill]] %s5211_s1  ;;  %s511_s5 = sadd.s32 1, %s5054_s4 }
   0xe   : > { %s508_s24 = ssub.s32 %s5058_s0, %s5211_s1  ;;  %p521_p0 = scmp.ne.s32.totalorder %s5054_s4, %s5050_s30 }
   0xf   : > { %p509_p1 = scmp.eq.s32.totalorder %s508_s24, 0  ;;  %p522_p2 = scmp.eq.s32.totalorder %s5207_s21, 3 }
  0x10   : > { %p527_p3 = scmp.ne.s32.totalorder %s5050_s30, %s5046_s29  ;;  %p528_p4 = scmp.eq.s32.totalorder %s4455_s23, 3 }
  0x11   : > { %s5222_s6 = scalar_select %p509_p1, %s5054_s4, %s511_s5  }
  0x12   : > { %p5224_p5 = por %p522_p2, %p521_p0  ;;  %p5228_p6 = por %p528_p4, %p527_p3 }
  0x13   : > { %7750 = sst [smem:[#allocation8_spill]] %s5222_s6  ;;  %p4458_p7 = scmp.ge.s32.totalorder %s5058_s0, 1 }
  0x14   : > { %s7752_s26 = scalar_select %p5228_p6, 1, 0 }
  0x15   : > { %p617_p8 = scmp.lt.s32.totalorder %s5058_s0, 5 }
  0x16   : > { %7753 = sst [smem:[#allocation9_spill]] %s7752_s26 }
  0x17   : > { %p618_p9 = pnand %p4458_p7, %p617_p8 }
  0x19   : > { %621 = sbr.rel (%p618_p9) target bundleno = 2576 (0xa10), region = 108 }
  0x1e   : > { %p678_p10 = scmp.lt.s32.totalorder %s5207_s21, 3  ;;  %v683_v1 = vlaneseq  ;;  %v5060_v2 = vmov 0   ;;  %s7755_s23 = sld [smem:[#allocation19_spill]] }
  0x1f   : > { %4674 = vset.pattern.permute.xlu2 %v5060_v2  ;;  %4675 = vset.pattern.permute.xlu0 %v5060_v2  ;;  %s7703_s24 = smov 32   ;;  %s7756_s28 = sld [smem:[#allocation21_spill]] }
  0x20   : > { %s679_s2 = scalar_select %p678_p10, %s5207_s21, 3  ;;  %v5238_v3 = vshrl.u32 %v683_v1, 7  ;;  %4676 = vset.pattern.permute.xlu1 %v5060_v2 }
  0x21   : > { %s7761_s6 = sld [smem:[#allocation22_spill]]  ;;  %s7723_s26 = smov 96  }
  0x22   : > { %7754 = vst [vmem:[#allocation10_spill] sm:$0xff] %v5238_v3  ;;  %s4626_s27 = smul.u32 96, %s679_s2  ;;  %v699_v4 = vand.u32 65535, %v5238_v3  ;;  %v700_v5 = vshrl.u32 %v5238_v3, 16  ;;  %v5244_v6 = vadd.s32 8, %v5238_v3  ;;  %v5254_v12 = vadd.s32 24, %v5238_v3 }
  0x23   : > { %vm1345_vm0 = vcmp.lt.s32.totalorder %v5238_v3, 1  ;;  %v5264_v18 = vadd.s32 16, %v5238_v3  ;;  %s7701_s2 = smov 64   ;;  %s7768_s1 = sld [smem:[#allocation24_spill]] }
  0x24   : > { %s5249_s5 = scalar_lea.vmem %s7755_s23, %s4626_s27  ;;  %v702_v7 = vmul.u32 43691, %v699_v4  ;;  %v703_v8 = vmul.u32 43690, %v699_v4  ;;  %v704_v9 = vmul.u32 43691, %v700_v5  ;;  %v728_v10 = vand.u32 65535, %v5244_v6  ;;  %s7775_s3 = sld [smem:[#allocation25_spill]] }
  0x25   : > { %v729_v11 = vshrl.u32 %v5244_v6, 16  ;;  %v705_v13 = vmul.u32 43690, %v700_v5  ;;  %v5257_v16 = vld [vmem:[%s5249_s5] sm:$0xff]  ;;  %v5260_v17 = vld [vmem:[%s5249_s5 + $0x58] sm:$0xff]  ;;  %v786_v25 = vand.u32 65535, %v5254_v12  ;;  %v787_v37 = vshrl.u32 %v5254_v12, 16  ;;  %s4396_s23 = scalar_lea.hbm %s7698_s22, %s5207_s21 }
  0x26   : > { %v706_v14 = vshll.u32 %v703_v8, 16  ;;  %v708_v15 = vshll.u32 %v704_v9, 16  ;;  %v731_v20 = vmul.u32 43691, %v728_v10  ;;  %v732_v21 = vmul.u32 43690, %v728_v10  ;;  %v5282_v57 = vld [vmem:[%s5249_s5 + $0x8] sm:$0xff]  ;;  %v5285_v59 = vld [vmem:[%s5249_s5 + $0x10] sm:$0xff] }
  0x27   : > { %v707_v22 = vshrl.u32 %v703_v8, 16  ;;  %v733_v24 = vmul.u32 43691, %v729_v11  ;;  %v734_v27 = vmul.u32 43690, %v729_v11  ;;  %v709_v29 = vshrl.u32 %v704_v9, 16  ;;  %s7778_s4 = smov 96   ;;  %s5065_s27 = smov 8  }
  0x28   : > { %vm710_vm1 = vc.u32 %v702_v7, %v706_v14  ;;  %v712_v19 = vadd.s32 %v706_v14, %v702_v7  ;;  %v735_v28 = vshll.u32 %v732_v21, 16  ;;  %v1333_v31 = vrot.slane %v5257_v16, 7 }
  0x29   : > { %v711_v23 = vsel %vm710_vm1, 1, %v5060_v2  ;;  %v737_v32 = vshll.u32 %v733_v24, 16  ;;  %v1344_v34 = vrot.slane %v5260_v17, 7  ;;  %v789_v38 = vmul.u32 43691, %v786_v25 }
  0x2a   : > { %v713_v26 = vadd.s32 %v711_v23, %v705_v13  ;;  %vm714_vm2 = vc.u32 %v712_v19, %v708_v15  ;;  %vm739_vm3 = vc.u32 %v731_v20, %v735_v28  ;;  %v741_v35 = vadd.s32 %v735_v28, %v731_v20  ;;  %v5293_v13 = vld [vmem:[%s5249_s5 + $0x18] sm:$0xff] }
  0x2b   : > { %v715_v30 = vsel %vm714_vm2, 1, %v5060_v2  ;;  %v740_v36 = vsel %vm739_vm3, 1, %v5060_v2  ;;  %v790_v39 = vmul.u32 43690, %v786_v25  ;;  %v736_v41 = vshrl.u32 %v732_v21, 16 }
  0x2c   : > { %v717_v33 = vadd.s32 %v715_v30, %v713_v26  ;;  %v742_v42 = vadd.s32 %v740_v36, %v734_v27  ;;  %vm743_vm4 = vc.u32 %v741_v35, %v737_v32  ;;  %v791_v44 = vmul.u32 43691, %v787_v37 }
  0x2d   : > { %v744_v43 = vsel %vm743_vm4, 1, %v5060_v2  ;;  %v792_v45 = vmul.u32 43690, %v787_v37  ;;  %v793_v46 = vshll.u32 %v790_v39, 16  ;;  %v738_v48 = vshrl.u32 %v733_v24, 16 }
  0x2e   : > { %v718_v40 = vadd.s32 %v717_v33, %v707_v22  ;;  %v746_v49 = vadd.s32 %v744_v43, %v742_v42  ;;  %v1357_v50 = vsel %vm1345_vm0, %v1344_v34, %v1333_v31  ;;  %v795_v51 = vshll.u32 %v791_v44, 16 }
  0x2f   : > { %vm797_vm5 = vc.u32 %v789_v38, %v793_v46  ;;  %v799_v52 = vadd.s32 %v793_v46, %v789_v38  ;;  %v794_v55 = vshrl.u32 %v790_v39, 16  ;;  %v757_v60 = vand.u32 65535, %v5264_v18 }
  0x30   : > { %v719_v47 = vadd.s32 %v718_v40, %v709_v29  ;;  %v747_v54 = vadd.s32 %v746_v49, %v736_v41  ;;  %v798_v56 = vsel %vm797_vm5, 1, %v5060_v2  ;;  %v758_v61 = vshrl.u32 %v5264_v18, 16 }
  0x31   : > { %v800_v58 = vadd.s32 %v798_v56, %v792_v45  ;;  %vm801_vm6 = vc.u32 %v799_v52, %v795_v51  ;;  %v796_v0 = vshrl.u32 %v791_v44, 16  ;;  %v760_v5 = vmul.u32 43691, %v757_v60 }
  0x32   : > { %v720_v53 = vshrl.u32 %v719_v47, 4  ;;  %v748_v63 = vadd.s32 %v747_v54, %v738_v48  ;;  %v802_v1 = vsel %vm801_vm6, 1, %v5060_v2  ;;  %v761_v7 = vmul.u32 43690, %v757_v60 }
  0x33   : > { %v804_v4 = vadd.s32 %v802_v1, %v800_v58  ;;  %v762_v8 = vmul.u32 43691, %v758_v61  ;;  %v1334_v11 = vrot.slane %v5282_v57, 7  ;;  %v1335_v14 = vrot.slane %v5285_v59, 7  ;;  %v5330_v58 = vld [vmem:[%s5249_s5 + $0x28] sm:$0xff] }
  0x34   : > { %v721_v62 = vmul.u32 24, %v720_v53  ;;  %v749_v10 = vshrl.u32 %v748_v63, 4  ;;  %v763_v19 = vmul.u32 43690, %v758_v61  ;;  %v764_v20 = vshll.u32 %v761_v7, 16  ;;  %v5327_v53 = vld [vmem:[%s5249_s5 + $0x20] sm:$0xff] }
  0x35   : > { %v805_v15 = vadd.s32 %v804_v4, %v794_v55  ;;  %v766_v21 = vshll.u32 %v762_v8, 16  ;;  %v1336_v25 = vrot.slane %v5293_v13, 7  ;;  %v765_v29 = vshrl.u32 %v761_v7, 16 }
  0x36   : > { %v722_v9 = vsub.s32 %v5238_v3, %v721_v62  ;;  %v750_v23 = vmul.u32 24, %v749_v10  ;;  %vm768_vm10 = vc.u32 %v760_v5, %v764_v20  ;;  %v770_v26 = vadd.s32 %v764_v20, %v760_v5 }
  0x37   : > { %v806_v24 = vadd.s32 %v805_v15, %v796_v0  ;;  %v769_v30 = vsel %vm768_vm10, 1, %v5060_v2  ;;  %v7710_v35 = vmov 0.0   ;;  %v767_v42 = vshrl.u32 %v762_v8, 16 }
  0x38   : > { %vm1044_vm7 = vcmp.ne.s32.totalorder %v722_v9, 0  ;;  %vm1056_vm8 = vcmp.lt.s32.totalorder %v722_v9, 0  ;;  %v1080_v22 = vadd.s32 24, %v722_v9  ;;  %v751_v28 = vsub.s32 %v5244_v6, %v750_v23 }
  0x39   : > { %vm1068_vm9 = vmand %vm1056_vm8, %vm1044_vm7  ;;  %v807_v32 = vshrl.u32 %v806_v24, 4  ;;  %v771_v33 = vadd.s32 %v769_v30, %v763_v19  ;;  %vm772_vm12 = vc.u32 %v770_v26, %v766_v21  ;;  %v1356_v6 = vsel %vm1345_vm0, %v1333_v31, %v1334_v11 }
  0x3a   : > { %v5297_v27 = vsel %vm1068_vm9, %v1080_v22, %v722_v9  ;;  %vm1045_vm13 = vcmp.ne.s32.totalorder %v751_v28, 0  ;;  %vm1057_vm14 = vcmp.lt.s32.totalorder %v751_v28, 0  ;;  %v1081_v37 = vadd.s32 24, %v751_v28 }
  0x3b   : > { %vm1104_vm11 = vcmp.ge.s32.totalorder %v5297_v27, 1  ;;  %vm1069_vm15 = vmand %vm1057_vm14, %vm1045_vm13  ;;  %v808_v39 = vmul.u32 24, %v807_v32  ;;  %v773_v40 = vsel %vm772_vm12, 1, %v5060_v2  ;;  %v5311_v44 = vadd.s32 40, %v5238_v3 }
  0x3c   : > { %v4460_v36 = vsel %vm1104_vm11, 1.0, %v7710_v35  ;;  %v5308_v41 = vsel %vm1069_vm15, %v1081_v37, %v751_v28  ;;  %v775_v43 = vadd.s32 %v773_v40, %v771_v33  ;;  %v1354_v31 = vsel %vm1345_vm0, %v1335_v14, %v1336_v25  ;;  %v5354_v40 = vld [vmem:[%s5249_s5 + $0x30] sm:$0xff] }
  0x3d   : > { %v1358_v38 = vmul.f32 %v4460_v36, %v1357_v50  ;;  %vm1105_vm1 = vcmp.ge.s32.totalorder %v5308_v41, 1  ;;  %v809_v45 = vsub.s32 %v5254_v12, %v808_v39  ;;  %v5321_v46 = vadd.s32 48, %v5238_v3 }
  0x3e   : > { %v4461_v47 = vsel %vm1105_vm1, 1.0, %v7710_v35  ;;  %v776_v48 = vadd.s32 %v775_v43, %v765_v29  ;;  %v844_v49 = vand.u32 65535, %v5311_v44  ;;  %v845_v50 = vshrl.u32 %v5311_v44, 16 }
  0x3f   : > { %1382 = vrot.lane.b32.xlu0 %v1358_v38, %s7703_s24  ;;  %v1359_v51 = vmul.f32 %v4461_v47, %v1356_v6  ;;  %vm1047_vm2 = vcmp.ne.s32.totalorder %v809_v45, 0  ;;  %vm1059_vm3 = vcmp.lt.s32.totalorder %v809_v45, 0  ;;  %v1083_v12 = vadd.s32 24, %v809_v45 }
  0x40   : > { %vm1071_vm4 = vmand %vm1059_vm3, %vm1047_vm2  ;;  %v777_v52 = vadd.s32 %v776_v48, %v767_v42  ;;  %v847_v54 = vmul.u32 43691, %v844_v49  ;;  %v848_v55 = vmul.u32 43690, %v844_v49  ;;  %v849_v56 = vmul.u32 43691, %v845_v50 }
  0x41   : > { %1384 = vrot.lane.b32.xlu1 %v1359_v51, %s7703_s24  ;;  %v5333_v60 = vsel %vm1071_vm4, %v1083_v12, %v809_v45  ;;  %v1355_v61 = vsel %vm1345_vm0, %v1334_v11, %v1335_v14  ;;  %v1337_v62 = vrot.slane %v5327_v53, 7  ;;  %v873_v63 = vand.u32 65535, %v5321_v46 }
  0x42   : > { %vm1107_vm5 = vcmp.ge.s32.totalorder %v5333_v60, 1  ;;  %v778_v0 = vshrl.u32 %v777_v52, 4  ;;  %v850_v1 = vmul.u32 43690, %v845_v50  ;;  %v851_v4 = vshll.u32 %v848_v55, 16 }
  0x43   : > { %v852_v5 = vshrl.u32 %v848_v55, 16  ;;  %v853_v7 = vshll.u32 %v849_v56, 16  ;;  %v1338_v8 = vrot.slane %v5330_v58, 7  ;;  %v874_v9 = vshrl.u32 %v5321_v46, 16 }
  0x44   : > { %v4463_v10 = vsel %vm1107_vm5, 1.0, %v7710_v35  ;;  %v779_v15 = vmul.u32 24, %v778_v0  ;;  %vm855_vm6 = vc.u32 %v847_v54, %v851_v4  ;;  %v857_v11 = vadd.s32 %v851_v4, %v847_v54 }
  0x45   : > { %v856_v14 = vsel %vm855_vm6, 1, %v5060_v2  ;;  %v876_v19 = vmul.u32 43691, %v873_v63  ;;  %v877_v20 = vmul.u32 43690, %v873_v63  ;;  %v878_v21 = vmul.u32 43691, %v874_v9 }
  0x46   : > { %v780_v22 = vsub.s32 %v5264_v18, %v779_v15  ;;  %v854_v23 = vshrl.u32 %v849_v56, 16  ;;  %v858_v24 = vadd.s32 %v856_v14, %v850_v1  ;;  %vm859_vm7 = vc.u32 %v857_v11, %v853_v7  ;;  %v5374_v7 = vld [vmem:[%s5249_s5 + $0x38] sm:$0xff] }
  0x47   : > { %1430 = vrot.lane.b32.xlu0 %v5257_v16, %s7701_s2  ;;  %v860_v26 = vsel %vm859_vm7, 1, %v5060_v2  ;;  %v879_v28 = vmul.u32 43690, %v874_v9  ;;  %v880_v29 = vshll.u32 %v877_v20, 16  ;;  %v882_v30 = vshll.u32 %v878_v21, 16 }
  0x48   : > { %vm1046_vm8 = vcmp.ne.s32.totalorder %v780_v22, 0  ;;  %vm1058_vm9 = vcmp.lt.s32.totalorder %v780_v22, 0  ;;  %v1082_v32 = vadd.s32 24, %v780_v22  ;;  %v862_v33 = vadd.s32 %v860_v26, %v858_v24 }
  0x49   : > { %1432 = vrot.lane.b32.xlu1 %v5282_v57, %s7701_s2  ;;  %v1361_v36 = vmul.f32 %v4463_v10, %v1354_v31  ;;  %vm1070_vm10 = vmand %vm1058_vm9, %vm1046_vm8  ;;  %v881_v37 = vshrl.u32 %v877_v20, 16  ;;  %vm884_vm11 = vc.u32 %v876_v19, %v880_v29  ;;  %v886_v18 = vadd.s32 %v880_v29, %v876_v19 }
  0x4a   : > { %v5350_v38 = vsel %vm1070_vm10, %v1082_v32, %v780_v22  ;;  %v863_v6 = vadd.s32 %v862_v33, %v852_v5  ;;  %v885_v39 = vsel %vm884_vm11, 1, %v5060_v2  ;;  %v5357_v42 = vadd.s32 32, %v5238_v3  ;;  %v5395_v32 = vld [vmem:[%s5249_s5 + $0x40] sm:$0xff] }
  0x4b   : > { %vm1106_vm12 = vcmp.ge.s32.totalorder %v5350_v38, 1  ;;  %v883_v43 = vshrl.u32 %v878_v21, 16  ;;  %v887_v45 = vadd.s32 %v885_v39, %v879_v28  ;;  %vm888_vm13 = vc.u32 %v886_v18, %v882_v30 }
  0x4c   : > { %v4462_v31 = vsel %vm1106_vm12, 1.0, %v7710_v35  ;;  %v864_v47 = vadd.s32 %v863_v6, %v854_v23  ;;  %v889_v48 = vsel %vm888_vm13, 1, %v5060_v2  ;;  %v815_v49 = vand.u32 65535, %v5357_v42 }
  0x4d   : > { %v1360_v50 = vmul.f32 %v4462_v31, %v1355_v61  ;;  %v891_v51 = vadd.s32 %v889_v48, %v887_v45  ;;  %v1339_v12 = vrot.slane %v5354_v40, 7  ;;  %v816_v52 = vshrl.u32 %v5357_v42, 16 }
  0x4e   : > { %v865_v54 = vshrl.u32 %v864_v47, 4  ;;  %v818_v55 = vmul.u32 43691, %v815_v49  ;;  %v819_v56 = vmul.u32 43690, %v815_v49  ;;  %v1352_v63 = vsel %vm1345_vm0, %v1337_v62, %v1338_v8 }
  0x4f   : > { %1388 = vrot.lane.b32.xlu0 %v1361_v36, %s7703_s24  ;;  %1386 = vrot.lane.b32.xlu2 %v1360_v50, %s7703_s24  ;;  %v892_v0 = vadd.s32 %v891_v51, %v881_v37  ;;  %v820_v1 = vmul.u32 43691, %v816_v52  ;;  %v821_v4 = vmul.u32 43690, %v816_v52  ;;  %v5377_v9 = vadd.s32 64, %v5238_v3 }
  0x50   : > { %v866_v61 = vmul.u32 24, %v865_v54  ;;  %v822_v5 = vshll.u32 %v819_v56, 16  ;;  %v1351_v15 = vsel %vm1345_vm0, %v1338_v8, %v1339_v12  ;;  %v1340_v14 = vrot.slane %v5374_v7, 7 }
  0x51   : > { %1436 = vrot.lane.b32.xlu1 %v5293_v13, %s7701_s2  ;;  %v893_v10 = vadd.s32 %v892_v0, %v883_v43  ;;  %v824_v11 = vshll.u32 %v820_v1, 16  ;;  %v931_v21 = vand.u32 65535, %v5377_v9  ;;  %v823_v23 = vshrl.u32 %v819_v56, 16 }
  0x52   : > { %v867_v19 = vsub.s32 %v5311_v44, %v866_v61  ;;  %vm826_vm14 = vc.u32 %v818_v55, %v822_v5  ;;  %v828_v20 = vadd.s32 %v822_v5, %v818_v55  ;;  %v932_v26 = vshrl.u32 %v5377_v9, 16 }
  0x53   : > { %v894_v22 = vshrl.u32 %v893_v10, 4  ;;  %v827_v24 = vsel %vm826_vm14, 1, %v5060_v2  ;;  %v825_v29 = vshrl.u32 %v820_v1, 16  ;;  %v935_v30 = vmul.u32 43690, %v931_v21 }
  0x54   : > { %vm1049_vm15 = vcmp.ne.s32.totalorder %v867_v19, 0  ;;  %vm1061_vm1 = vcmp.lt.s32.totalorder %v867_v19, 0  ;;  %v1085_v28 = vadd.s32 24, %v867_v19  ;;  %v829_v8 = vadd.s32 %v827_v24, %v821_v4 }
  0x55   : > { %vm1073_vm2 = vmand %vm1061_vm1, %vm1049_vm15  ;;  %v895_v44 = vmul.u32 24, %v894_v22  ;;  %vm830_vm3 = vc.u32 %v828_v20, %v824_v11  ;;  %v934_v37 = vmul.u32 43691, %v931_v21  ;;  %v936_v18 = vmul.u32 43691, %v932_v26 }
  0x56   : > { %v5397_v33 = vsel %vm1073_vm2, %v1085_v28, %v867_v19  ;;  %v831_v36 = vsel %vm830_vm3, 1, %v5060_v2  ;;  %v938_v43 = vshll.u32 %v935_v30, 16  ;;  %v937_v31 = vmul.u32 43690, %v932_v26 }
  0x57   : > { %1438 = vrot.lane.b32.xlu0 %v5327_v53, %s7701_s2  ;;  %1434 = vrot.lane.b32.xlu2 %v5285_v59, %s7701_s2  ;;  %vm1109_vm4 = vcmp.ge.s32.totalorder %v5397_v33, 1  ;;  %v896_v6 = vsub.s32 %v5321_v46, %v895_v44  ;;  %v833_v39 = vadd.s32 %v831_v36, %v829_v8  ;;  %v940_v47 = vshll.u32 %v936_v18, 16 }
  0x58   : > { %v4465_v45 = vsel %vm1109_vm4, 1.0, %v7710_v35  ;;  %v1341_v48 = vrot.slane %v5395_v32, 7  ;;  %vm942_vm8 = vc.u32 %v934_v37, %v938_v43  ;;  %v944_v52 = vadd.s32 %v938_v43, %v934_v37 }
  0x59   : > { %v1363_v49 = vmul.f32 %v4465_v45, %v1352_v63  ;;  %vm1050_vm5 = vcmp.ne.s32.totalorder %v896_v6, 0  ;;  %vm1062_vm6 = vcmp.lt.s32.totalorder %v896_v6, 0  ;;  %v1086_v50 = vadd.s32 24, %v896_v6 }
  0x5a   : > { %vm1074_vm7 = vmand %vm1062_vm6, %vm1050_vm5  ;;  %v834_v51 = vadd.s32 %v833_v39, %v823_v23  ;;  %v5407_v54 = vadd.s32 72, %v5238_v3  ;;  %v939_v55 = vshrl.u32 %v935_v30, 16  ;;  %v943_v56 = vsel %vm942_vm8, 1, %v5060_v2 }
  0x5b   : > { %1392 = vrot.lane.b32.xlu1 %v1363_v49, %s7703_s24  ;;  %v5410_v46 = vsel %vm1074_vm7, %v1086_v50, %v896_v6  ;;  %v5414_v0 = vadd.s32 56, %v5238_v3  ;;  %v945_v1 = vadd.s32 %v943_v56, %v937_v31  ;;  %vm946_vm10 = vc.u32 %v944_v52, %v940_v47 }
  0x5c   : > { %vm1110_vm9 = vcmp.ge.s32.totalorder %v5410_v46, 1  ;;  %v835_v63 = vadd.s32 %v834_v51, %v825_v29  ;;  %v947_v4 = vsel %vm946_vm10, 1, %v5060_v2  ;;  %v960_v5 = vand.u32 65535, %v5407_v54 }
  0x5d   : > { %v4466_v61 = vsel %vm1110_vm9, 1.0, %v7710_v35  ;;  %v961_v10 = vshrl.u32 %v5407_v54, 16  ;;  %v941_v20 = vshrl.u32 %v936_v18, 16  ;;  %v949_v21 = vadd.s32 %v947_v4, %v945_v1 }
  0x5e   : > { %v1364_v11 = vmul.f32 %v4466_v61, %v1351_v15  ;;  %v836_v19 = vshrl.u32 %v835_v63, 4  ;;  %v1353_v22 = vsel %vm1345_vm0, %v1336_v25, %v1337_v62  ;;  %v963_v23 = vmul.u32 43691, %v960_v5  ;;  %v5448_v63 = vld [vmem:[%s5249_s5 + $0x48] sm:$0xff] }
  0x5f   : > { %v964_v24 = vmul.u32 43690, %v960_v5  ;;  %v965_v26 = vmul.u32 43691, %v961_v10  ;;  %v950_v8 = vadd.s32 %v949_v21, %v939_v55  ;;  %v902_v44 = vand.u32 65535, %v5414_v0 }
  0x60   : > { %1394 = vrot.lane.b32.xlu0 %v1364_v11, %s7703_s24  ;;  %v837_v28 = vmul.u32 24, %v836_v19  ;;  %v903_v15 = vshrl.u32 %v5414_v0, 16  ;;  %v5436_v29 = vsel %vm1345_vm0, %v1340_v14, %v1341_v48  ;;  %v966_v25 = vmul.u32 43690, %v961_v10 }
  0x61   : > { %v967_v62 = vshll.u32 %v964_v24, 16  ;;  %v969_v30 = vshll.u32 %v965_v26, 16  ;;  %v951_v37 = vadd.s32 %v950_v8, %v941_v20  ;;  %v968_v18 = vshrl.u32 %v964_v24, 16 }
  0x62   : > { %v838_v36 = vsub.s32 %v5357_v42, %v837_v28  ;;  %v906_v6 = vmul.u32 43690, %v902_v44  ;;  %v905_v43 = vmul.u32 43691, %v902_v44  ;;  %v5441_v45 = vmul.u32 43691, %v903_v15  ;;  %v1502_v44 = vld [vmem:[%s7756_s28 + $0x50] sm:$0xff] }
  0x63   : > { %1442 = vrot.lane.b32.xlu1 %v5354_v40, %s7701_s2  ;;  %vm971_vm11 = vc.u32 %v963_v23, %v967_v62  ;;  %v973_v39 = vadd.s32 %v967_v62, %v963_v23  ;;  %v952_v47 = vshrl.u32 %v951_v37, 4  ;;  %v908_v42 = vmul.u32 43690, %v903_v15 }
  0x64   : > { %vm1048_vm12 = vcmp.ne.s32.totalorder %v838_v36, 0  ;;  %vm1060_vm13 = vcmp.lt.s32.totalorder %v838_v36, 0  ;;  %v1084_v31 = vadd.s32 24, %v838_v36  ;;  %v972_v49 = vsel %vm971_vm11, 1, %v5060_v2 }
  0x65   : > { %vm1072_vm14 = vmand %vm1060_vm13, %vm1048_vm12  ;;  %vm975_vm15 = vc.u32 %v973_v39, %v969_v30  ;;  %v909_v50 = vshll.u32 %v906_v6, 16  ;;  %v953_v52 = vmul.u32 24, %v952_v47  ;;  %v974_v55 = vadd.s32 %v972_v49, %v966_v25 }
  0x66   : > { %v5444_v51 = vsel %vm1072_vm14, %v1084_v31, %v838_v36  ;;  %v976_v56 = vsel %vm975_vm15, 1, %v5060_v2  ;;  %v970_v1 = vshrl.u32 %v965_v26, 16  ;;  %v911_v61 = vshll.u32 %v5441_v45, 16 }
  0x67   : > { %vm1108_vm1 = vcmp.ge.s32.totalorder %v5444_v51, 1  ;;  %vm913_vm2 = vc.u32 %v905_v43, %v909_v50  ;;  %v954_v5 = vsub.s32 %v5377_v9, %v953_v52  ;;  %v978_v10 = vadd.s32 %v976_v56, %v974_v55 }
  0x68   : > { %v4464_v4 = vsel %vm1108_vm1, 1.0, %v7710_v35  ;;  %1444 = vrot.lane.b32.xlu0 %v5374_v7, %s7701_s2  ;;  %v914_v11 = vsel %vm913_vm2, 1, %v5060_v2  ;;  %v1342_v20 = vrot.slane %v5448_v63, 7  ;;  %v915_v21 = vadd.s32 %v909_v50, %v905_v43  ;;  %v1500_v50 = vld [vmem:[%s7756_s28 + $0x40] sm:$0xff]  ;;  %s7757_s2 = smov 64  }
  0x69   : > { %v1362_v19 = vmul.f32 %v4464_v4, %v1353_v22  ;;  %v916_v23 = vadd.s32 %v914_v11, %v908_v42  ;;  %vm1052_vm3 = vcmp.ne.s32.totalorder %v954_v5, 0  ;;  %vm1064_vm4 = vcmp.lt.s32.totalorder %v954_v5, 0  ;;  %v1503_v22 = vld [vmem:[%s7756_s28 + $0x58] sm:$0xff] }
  0x6a   : > { %v1088_v24 = vadd.s32 24, %v954_v5  ;;  %v979_v26 = vadd.s32 %v978_v10, %v968_v18  ;;  %vm1076_vm5 = vmand %vm1064_vm4, %vm1052_vm3  ;;  %v910_v28 = vshrl.u32 %v906_v6, 16  ;;  %v912_v8 = vshrl.u32 %v5441_v45, 16  ;;  %1549 = vmatpush.msra.mxu0 %v1503_v22  ;;  %v1501_v6 = vld [vmem:[%s7756_s28 + $0x48] sm:$0xff] }
  0x6b   : > { %1390 = vrot.lane.b32.xlu2 %v1362_v19, %s7703_s24  ;;  %vm917_vm6 = vc.u32 %v915_v21, %v911_v61  ;;  %v5461_v9 = vadd.s32 88, %v5238_v3  ;;  %v5473_v30 = vadd.s32 80, %v5238_v3 }
  0x6c   : > { %v5469_v15 = vsel %vm1076_vm5, %v1088_v24, %v954_v5  ;;  %v980_v25 = vadd.s32 %v979_v26, %v970_v1  ;;  %v918_v62 = vsel %vm917_vm6, 1, %v5060_v2  ;;  %1550 = vmatpush.msra.mxu0 %v1502_v44  ;;  %v1499_v5 = vld [vmem:[%s7756_s28 + $0x38] sm:$0xff] }
  0x6d   : > { %vm1112_vm7 = vcmp.ge.s32.totalorder %v5469_v15, 1  ;;  %v920_v36 = vadd.s32 %v918_v62, %v916_v23  ;;  %v1018_v37 = vand.u32 65535, %v5461_v9  ;;  %v1019_v18 = vshrl.u32 %v5461_v9, 16 }
  0x6e   : > { %v4468_v39 = vsel %vm1112_vm7, 1.0, %v7710_v35  ;;  %v981_v43 = vshrl.u32 %v980_v25, 4  ;;  %v989_v45 = vand.u32 65535, %v5473_v30  ;;  %1551 = vmatpush.msra.mxu0 %v1501_v6  ;;  %v990_v56 = vshrl.u32 %v5473_v30, 16  ;;  %v1497_v25 = vld [vmem:[%s7756_s28 + $0x28] sm:$0xff] }
  0x6f   : > { %v1366_v31 = vmul.f32 %v4468_v39, %v5436_v29  ;;  %v921_v47 = vadd.s32 %v920_v36, %v910_v28  ;;  %v1021_v49 = vmul.u32 43691, %v1018_v37  ;;  %v1022_v42 = vmul.u32 43690, %v1018_v37 }
  0x70   : > { %v982_v52 = vmul.u32 24, %v981_v43  ;;  %v1023_v55 = vmul.u32 43691, %v1019_v18  ;;  %v1348_v29 = vsel %vm1345_vm0, %v1341_v48, %v1342_v20  ;;  %v1024_v61 = vmul.u32 43690, %v1019_v18  ;;  %1552 = vmatpush.msra.mxu0 %v1500_v50  ;;  %v1498_v48 = vld [vmem:[%s7756_s28 + $0x30] sm:$0xff] }
  0x71   : > { %1398 = vrot.lane.b32.xlu1 %v1366_v31, %s7703_s24  ;;  %v922_v1 = vadd.s32 %v921_v47, %v912_v8  ;;  %v1025_v4 = vshll.u32 %v1022_v42, 16  ;;  %v992_v19 = vmul.u32 43691, %v989_v45  ;;  %v993_v21 = vmul.u32 43690, %v989_v45  ;;  %s7758_s24 = smov 32  }
  0x72   : > { %v983_v10 = vsub.s32 %v5407_v54, %v982_v52  ;;  %v1027_v11 = vshll.u32 %v1023_v55, 16  ;;  %v994_v26 = vmul.u32 43691, %v990_v56  ;;  %1553 = vmatpush.msra.mxu0 %v1499_v5  ;;  %v1026_v22 = vshrl.u32 %v1022_v42, 16 }
  0x73   : > { %1440 = vrot.lane.b32.xlu2 %v5330_v58, %s7757_s2  ;;  %v923_v23 = vshrl.u32 %v922_v1, 4  ;;  %vm1029_vm8 = vc.u32 %v1021_v49, %v1025_v4  ;;  %v1031_v24 = vadd.s32 %v1025_v4, %v1021_v49  ;;  %v995_v37 = vmul.u32 43690, %v990_v56 }
  0x74   : > { %vm1053_vm9 = vcmp.ne.s32.totalorder %v983_v10, 0  ;;  %vm1065_vm10 = vcmp.lt.s32.totalorder %v983_v10, 0  ;;  %v1089_v28 = vadd.s32 24, %v983_v10  ;;  %v1030_v54 = vsel %vm1029_vm8, 1, %v5060_v2  ;;  %1554 = vmatpush.msra.mxu0 %v1498_v48 }
  0x75   : > { %vm1077_vm11 = vmand %vm1065_vm10, %vm1053_vm9  ;;  %v924_v8 = vmul.u32 24, %v923_v23  ;;  %v1032_v44 = vadd.s32 %v1030_v54, %v1024_v61  ;;  %vm1033_vm12 = vc.u32 %v1031_v24, %v1027_v11  ;;  %v996_v18 = vshll.u32 %v993_v21, 16 }
  0x76   : > { %v5508_v62 = vsel %vm1077_vm11, %v1089_v28, %v983_v10  ;;  %v1034_v36 = vsel %vm1033_vm12, 1, %v5060_v2  ;;  %v998_v43 = vshll.u32 %v994_v26, 16  ;;  %v1028_v31 = vshrl.u32 %v1023_v55, 16  ;;  %1555 = vmatpush.msra.mxu0 %v1497_v25 }
  0x77   : > { %vm1113_vm13 = vcmp.ge.s32.totalorder %v5508_v62, 1  ;;  %v925_v6 = vsub.s32 %v5414_v0, %v924_v8  ;;  %v1036_v39 = vadd.s32 %v1034_v36, %v1032_v44  ;;  %vm1000_vm14 = vc.u32 %v992_v19, %v996_v18 }
  0x78   : > { %v4469_v45 = vsel %vm1113_vm13, 1.0, %v7710_v35  ;;  %v1002_v47 = vadd.s32 %v996_v18, %v992_v19  ;;  %v1350_v0 = vsel %vm1345_vm0, %v1339_v12, %v1340_v14  ;;  %v1001_v52 = vsel %vm1000_vm14, 1, %v5060_v2  ;;  %v5531_v19 = vld [vmem:[%s5249_s5 + $0x50] sm:$0xff]  ;;  %s7767_s5 = sld [smem:[#allocation23_spill]] }
  0x79   : > { %v1367_v49 = vmul.f32 %v4469_v45, %v1348_v29  ;;  %1448 = vrot.lane.b32.xlu1 %v5448_v63, %s7757_s2  ;;  %vm1051_vm15 = vcmp.ne.s32.totalorder %v925_v6, 0  ;;  %vm1063_vm1 = vcmp.lt.s32.totalorder %v925_v6, 0  ;;  %v1087_v42 = vadd.s32 24, %v925_v6  ;;  %v1493_v45 = vld [vmem:[%s7756_s28 + $0x8] sm:$0xff] }
  0x7a   : > { %vm1075_vm2 = vmand %vm1063_vm1, %vm1051_vm15  ;;  %v1037_v50 = vadd.s32 %v1036_v39, %v1026_v22  ;;  %vm1004_vm3 = vc.u32 %v1002_v47, %v998_v43  ;;  %v997_v56 = vshrl.u32 %v993_v21, 16  ;;  %v1003_v29 = vadd.s32 %v1001_v52, %v995_v37  ;;  %v1495_v43 = vld [vmem:[%s7756_s28 + $0x18] sm:$0xff] }
  0x7b   : > { %1400 = vrot.lane.b32.xlu0 %v1367_v49, %s7758_s24  ;;  %v5524_v55 = vsel %vm1075_vm2, %v1087_v42, %v925_v6  ;;  %v1005_v1 = vsel %vm1004_vm3, 1, %v5060_v2  ;;  %v999_v5 = vshrl.u32 %v994_v26, 16  ;;  %v1343_v21 = vrot.slane %v5531_v19, 7  ;;  %v1496_v6 = vld [vmem:[%s7756_s28 + $0x20] sm:$0xff] }
  0x7c   : > { %vm1111_vm4 = vcmp.ge.s32.totalorder %v5524_v55, 1  ;;  %v1038_v61 = vadd.s32 %v1037_v50, %v1028_v31  ;;  %v1007_v12 = vadd.s32 %v1005_v1, %v1003_v29  ;;  %v1297_v18 = vrot.slane %v5282_v57, 6  ;;  %1556 = vmatpush.msra.mxu0 %v1496_v6  ;;  %v1494_v57 = vld [vmem:[%s7756_s28 + $0x10] sm:$0xff] }
  0x7d   : > { %v4467_v4 = vsel %vm1111_vm4, 1.0, %v7710_v35  ;;  %v1346_v8 = vsel %vm1345_vm0, %v1343_v21, %v1344_v34  ;;  %v1347_v34 = vsel %vm1345_vm0, %v1342_v20, %v1343_v21  ;;  %v1296_v39 = vrot.slane %v5257_v16, 6  ;;  %v1492_v16 = vld [vmem:[%s7756_s28] sm:$0xff] }
  0x7e   : > { %v1365_v14 = vmul.f32 %v4467_v4, %v1350_v0  ;;  %v1039_v10 = vshrl.u32 %v1038_v61, 4  ;;  %v1008_v11 = vadd.s32 %v1007_v12, %v997_v56  ;;  %vm1308_vm13 = vcmp.lt.s32.totalorder %v5238_v3, 2  ;;  %1557 = vmatpush.msra.mxu0 %v1495_v43 }
  0x7f   : > { %v1319_v20 = vsel %vm1308_vm13, %v1296_v39, %v1297_v18  ;;  %v1307_v31 = vrot.slane %v5260_v17, 6  ;;  %vm1140_vm14 = vcmp.ge.s32.totalorder %v5297_v27, 2  ;;  %vm1141_vm15 = vcmp.ge.s32.totalorder %v5308_v41, 2 }
  0x80   : > { %1396 = vrot.lane.b32.xlu2 %v1365_v14, %s7758_s24  ;;  %v1040_v23 = vmul.u32 24, %v1039_v10  ;;  %v1009_v24 = vadd.s32 %v1008_v11, %v999_v5  ;;  %1558 = vmatpush.msra.mxu0 %v1494_v57  ;;  %v5583_v49 = vsel %vm1140_vm14, 1.0, %v7710_v35  ;;  %vm1466_vm1 = vcmask 261120  }
  0x81   : > { %v1320_v42 = vsel %vm1308_vm13, %v1307_v31, %v1296_v39  ;;  %vm1479_vm2 = vcmask 523264   ;;  %v5592_v52 = vsel %vm1141_vm15, 1.0, %v7710_v35  ;;  %vm1508_vm3 = vcmask 785408  }
  0x82   : > { %v1041_v2 = vsub.s32 %v5461_v9, %v1040_v23  ;;  %v1010_v48 = vshrl.u32 %v1009_v24, 4  ;;  %1559 = vmatpush.msra.mxu0 %v1493_v45  ;;  %v1321_v0 = vmul.f32 %v5583_v49, %v1320_v42  ;;  %v1322_v61 = vmul.f32 %v5592_v52, %v1319_v20 }
  0x83   : > { %1450 = vrot.lane.b32.xlu0 %v5531_v19, %s7757_s2  ;;  %v1298_v4 = vrot.slane %v5285_v59, 6  ;;  %vm1142_vm4 = vcmp.ge.s32.totalorder %v5350_v38, 2  ;;  %v1299_v24 = vrot.slane %v5293_v13, 6 }
  0x84   : > { %vm1055_vm5 = vcmp.ne.s32.totalorder %v1041_v2, 0  ;;  %vm1067_vm6 = vcmp.lt.s32.totalorder %v1041_v2, 0  ;;  %v1091_v26 = vadd.s32 24, %v1041_v2  ;;  %v1011_v28 = vmul.u32 24, %v1010_v48  ;;  %1560 = vmatpush.msra.mxu0 %v1492_v16 }
  0x85   : > { %vm1079_vm7 = vmand %vm1067_vm6, %vm1055_vm5  ;;  %v5602_v10 = vsel %vm1142_vm4, 1.0, %v7710_v35  ;;  %v1318_v11 = vsel %vm1308_vm13, %v1297_v18, %v1298_v4  ;;  %vm1143_vm5 = vcmp.ge.s32.totalorder %v5333_v60, 2  ;;  %vm1144_vm6 = vcmp.ge.s32.totalorder %v5444_v51, 2 }
  0x86   : > { %v5537_v54 = vsel %vm1079_vm7, %v1091_v26, %v1041_v2  ;;  %v1012_v9 = vsub.s32 %v5473_v30, %v1011_v28  ;;  %v1323_v21 = vmul.f32 %v5602_v10, %v1318_v11  ;;  %v5612_v59 = vsel %vm1143_vm5, 1.0, %v7710_v35 }
  0x87   : > { %7759 = vst [vmem:[#allocation11_spill] sm:$0xff] %v5537_v54  ;;  %vm1115_vm8 = vcmp.ge.s32.totalorder %v5537_v54, 1  ;;  %v1317_v2 = vsel %vm1308_vm13, %v1298_v4, %v1299_v24  ;;  %v1301_v18 = vrot.slane %v5330_v58, 6  ;;  %vm1145_vm7 = vcmp.ge.s32.totalorder %v5397_v33, 2 }
  0x88   : > { %v4471_v22 = vsel %vm1115_vm8, 1.0, %v7710_v35  ;;  %1446 = vrot.lane.b32.xlu2 %v5395_v32, %s7757_s2  ;;  %vm1054_vm9 = vcmp.ne.s32.totalorder %v1012_v9, 0  ;;  %vm1066_vm10 = vcmp.lt.s32.totalorder %v1012_v9, 0  ;;  %v1090_v25 = vadd.s32 24, %v1012_v9 }
  0x89   : > { %v1369_v44 = vmul.f32 %v4471_v22, %v1346_v8  ;;  %vm1078_vm11 = vmand %vm1066_vm10, %vm1054_vm9  ;;  %v1324_v28 = vmul.f32 %v5612_v59, %v1317_v2  ;;  %v1300_v8 = vrot.slane %v5327_v53, 6  ;;  %v5635_v20 = vsel %vm1145_vm7, 1.0, %v7710_v35 }
  0x8a   : > { %v5549_v36 = vsel %vm1078_vm11, %v1090_v25, %v1012_v9  ;;  %v5624_v25 = vsel %vm1144_vm6, 1.0, %v7710_v35  ;;  %v1302_v58 = vrot.slane %v5354_v40, 6  ;;  %vm1146_vm8 = vcmp.ge.s32.totalorder %v5410_v46, 2 }
  0x8b   : > { %1404 = vrot.lane.b32.xlu1 %v1369_v44, %s7758_s24  ;;  %7760 = vst [vmem:[#allocation12_spill] sm:$0xff] %v5549_v36  ;;  %vm1114_vm12 = vcmp.ge.s32.totalorder %v5549_v36, 1  ;;  %v1315_v43 = vsel %vm1308_vm13, %v1300_v8, %v1301_v18  ;;  %vm1147_vm9 = vcmp.ge.s32.totalorder %v5524_v55, 2  ;;  %vm1148_vm10 = vcmp.ge.s32.totalorder %v5469_v15, 2 }
  0x8c   : > { %v4470_v30 = vsel %vm1114_vm12, 1.0, %v7710_v35  ;;  %v1326_v45 = vmul.f32 %v5635_v20, %v1315_v43  ;;  %v5668_v2 = vsel %vm1148_vm10, 1.0, %v7710_v35  ;;  %vm1149_vm11 = vcmp.ge.s32.totalorder %v5508_v62, 2 }
  0x8d   : > { %v1368_v37 = vmul.f32 %v4470_v30, %v1347_v34  ;;  %v1316_v34 = vsel %vm1308_vm13, %v1299_v24, %v1300_v8  ;;  %vm1150_vm12 = vcmp.ge.s32.totalorder %v5549_v36, 2  ;;  %vm1151_vm14 = vcmp.ge.s32.totalorder %v5537_v54, 2 }
  0x8e   : > { %v1325_v53 = vmul.f32 %v5624_v25, %v1316_v34 }
  0x90   : > { %1402 = vrot.lane.b32.xlu2 %v1368_v37, %s7758_s24 }
  0x98   : > { %1452 = vrot.lane.b32.xlu2 %v5260_v17, %s7757_s2  ;;  %v5715_v17 = vld [vmem:[%s7761_s6] ss:$0 sm:$0xff] }
  0xa9   : > { %v1387_v5 = vpop.permute.xlu2 %1386 }
  0xaa   : > { %v1469_v48 = vsel %vm1466_vm1, %v1323_v21, %v1387_v5  ;;  %v5657_v5 = vsel %vm1147_vm9, 1.0, %v7710_v35 }
  0xb1   : > { %v1383_v47 = vpop.permute.xlu0 %1382  ;;  %v1435_v26 = vpop.permute.xlu2 %1434 }
  0xb2   : > { %v1467_v56 = vsel %vm1466_vm1, %v1321_v0, %v1383_v47  ;;  %v1482_v13 = vsel %vm1479_vm2, %v1469_v48, %v1435_v26  ;;  %v5646_v0 = vsel %vm1146_vm8, 1.0, %v7710_v35 }
  0xb3   : > { %v1385_v50 = vpop.permute.xlu1 %1384 }
  0xb4   : > { %v1468_v12 = vsel %vm1466_vm1, %v1322_v61, %v1385_v50  ;;  %v1314_v50 = vsel %vm1308_vm13, %v1301_v18, %v1302_v58 }
  0xb9   : > { %v1431_v29 = vpop.permute.xlu0 %1430 }
  0xba   : > { %v1480_v1 = vsel %vm1479_vm2, %v1467_v56, %v1431_v29  ;;  %v1327_v29 = vmul.f32 %v5646_v0, %v1314_v50 }
  0xbb   : > { %4520 = vmatmul.msk.f32.vlgmr.msra.gmra.mxu0 %vm1508_vm3, %v1480_v1  ;;  %v1433_v14 = vpop.permute.xlu1 %1432  ;;  %v1303_v1 = vrot.slane %v5374_v7, 6  ;;  %v1304_v7 = vrot.slane %v5395_v32, 6  ;;  %v1305_v32 = vrot.slane %v5448_v63, 6 }
  0xbc   : > { %v1481_v23 = vsel %vm1479_vm2, %v1468_v12, %v1433_v14 }
  0xbd   : > { %v1313_v12 = vsel %vm1308_vm13, %v1302_v58, %v1303_v1  ;;  %v1312_v48 = vsel %vm1308_vm13, %v1303_v1, %v1304_v7  ;;  %v5700_v58 = vsel %vm1151_vm14, 1.0, %v7710_v35 }
  0xbe   : > { %v1328_v11 = vmul.f32 %v5657_v5, %v1313_v12 }
  0xc1   : > { %v1389_v9 = vpop.permute.xlu0 %1388 }
  0xc2   : > { %v1470_v22 = vsel %vm1466_vm1, %v1324_v28, %v1389_v9  ;;  %v1329_v28 = vmul.f32 %v5668_v2, %v1312_v48 }
  0xc3   : > { %4521 = vmatmul.msk.f32.gmra.mxu0 %vm1508_vm3, %v1481_v23  ;;  %v1437_v44 = vpop.permute.xlu1 %1436 }
  0xc4   : > { %v1483_v30 = vsel %vm1479_vm2, %v1470_v22, %v1437_v44  ;;  %v5679_v22 = vsel %vm1149_vm11, 1.0, %v7710_v35  ;;  %v1311_v44 = vsel %vm1308_vm13, %v1304_v7, %v1305_v32  ;;  %vm1942_vm11 = vcmp.lt.s32.totalorder %v5238_v3, 4 }
  0xc5   : > { %v1391_v37 = vpop.permute.xlu2 %1390 }
  0xc6   : > { %v1471_v6 = vsel %vm1466_vm1, %v1325_v53, %v1391_v37  ;;  %v1306_v53 = vrot.slane %v5531_v19, 6 }
  0xc9   : > { %v1439_v39 = vpop.permute.xlu0 %1438 }
  0xca   : > { %v1484_v57 = vsel %vm1479_vm2, %v1471_v6, %v1439_v39  ;;  %v5690_v6 = vsel %vm1150_vm12, 1.0, %v7710_v35  ;;  %v1310_v39 = vsel %vm1308_vm13, %v1305_v32, %v1306_v53 }
  0xcb   : > { %4522 = vmatmul.msk.f32.gmra.mxu0 %vm1508_vm3, %v1482_v13 }
  0xcd   : > { %v1393_v16 = vpop.permute.xlu1 %1392  ;;  %v1441_v42 = vpop.permute.xlu2 %1440 }
  0xce   : > { %v1472_v47 = vsel %vm1466_vm1, %v1326_v45, %v1393_v16 }
  0xcf   : > { %v1485_v56 = vsel %vm1479_vm2, %v1472_v47, %v1441_v42  ;;  %v1309_v47 = vsel %vm1308_vm13, %v1306_v53, %v1307_v31 }
  0xd0   : > { %v1332_v50 = vmul.f32 %v5700_v58, %v1309_v47 }
  0xd2   : > { %v1395_v40 = vpop.permute.xlu0 %1394 }
  0xd3   : > { %4523 = vmatmul.msk.f32.gmra.mxu0 %vm1508_vm3, %v1483_v30  ;;  %v1473_v61 = vsel %vm1466_vm1, %v1327_v29, %v1395_v40  ;;  %v1330_v30 = vmul.f32 %v5679_v22, %v1311_v44 }
  0xd5   : > { %v1443_v4 = vpop.permute.xlu1 %1442 }
  0xd6   : > { %v1486_v14 = vsel %vm1479_vm2, %v1473_v61, %v1443_v4 }
  0xda   : > { %v1397_v23 = vpop.permute.xlu2 %1396  ;;  %v1445_v21 = vpop.permute.xlu0 %1444 }
  0xdb   : > { %4524 = vmatmul.msk.f32.gmra.mxu0 %vm1508_vm3, %v1484_v57  ;;  %v1474_v24 = vsel %vm1466_vm1, %v1328_v11, %v1397_v23  ;;  %v1331_v57 = vmul.f32 %v5690_v6, %v1310_v39 }
  0xdc   : > { %v1487_v26 = vsel %vm1479_vm2, %v1474_v24, %v1445_v21 }
  0xe2   : > { %v1447_v9 = vpop.permute.xlu2 %1446 }
  0xe3   : > { %4525 = vmatmul.msk.f32.gmra.mxu0 %vm1508_vm3, %v1485_v56  ;;  %v1399_v8 = vpop.permute.xlu1 %1398 }
  0xe4   : > { %v1475_v13 = vsel %vm1466_vm1, %v1329_v28, %v1399_v8 }
  0xe5   : > { %v1488_v34 = vsel %vm1479_vm2, %v1475_v13, %v1447_v9 }
  0xea   : > { %v1403_v45 = vpop.permute.xlu2 %1402 }
  0xeb   : > { %4526 = vmatmul.msk.f32.gmra.mxu0 %vm1508_vm3, %v1486_v14  ;;  %v1449_v18 = vpop.permute.xlu1 %1448  ;;  %v1477_v19 = vsel %vm1466_vm1, %v1331_v57, %v1403_v45 }
  0xed   : > { %v1401_v63 = vpop.permute.xlu0 %1400 }
  0xee   : > { %v1476_v37 = vsel %vm1466_vm1, %v1330_v30, %v1401_v63 }
  0xef   : > { %v1489_v43 = vsel %vm1479_vm2, %v1476_v37, %v1449_v18 }
  0xf2   : > { %v1453_v1 = vpop.permute.xlu2 %1452 }
  0xf3   : > { %4527 = vmatmul.msk.f32.gmra.mxu0 %vm1508_vm3, %v1487_v26 }
  0xf5   : > { %v1451_v16 = vpop.permute.xlu0 %1450 }
  0xf6   : > { %v1490_v42 = vsel %vm1479_vm2, %v1477_v19, %v1451_v16 }
  0xfb   : > { %4528 = vmatmul.msk.f32.gmra.mxu0 %vm1508_vm3, %v1488_v34 }
  0xfd   : > { %v1405_v56 = vpop.permute.xlu1 %1404 }
  0xfe   : > { %v1478_v29 = vsel %vm1466_vm1, %v1332_v50, %v1405_v56 }
  0xff   : > { %v1491_v40 = vsel %vm1479_vm2, %v1478_v29, %v1453_v1 }
 0x103   : > { %4529 = vmatmul.msk.f32.gmra.mxu0 %vm1508_vm3, %v1489_v43 }
 0x10b   : > { %4530 = vmatmul.msk.f32.gmra.mxu0 %vm1508_vm3, %v1490_v42 }
 0x113   : > { %4531 = vmatmul.msk.f32.gmra.mxu0 %vm1508_vm3, %v1491_v40 }
 0x138   : > { %v1562_v31 = vpop.f32.mrf.mxu0 }
 0x139   : > { %v5718_v61 = vadd.f32 %v5715_v17, %v1562_v31 }
 0x13b   : > { %4692 = vtanh.f32 %v5718_v61  ;;  %v4532_v63 = vmul.f32 -1.442695, %v5718_v61 }
 0x140   : > { %v1565_v4 = vpop.f32.mrf.mxu0 }
 0x141   : > { %v4693_v12 = vpop.eup %4692  ;;  %v5722_v14 = vadd.f32 %v5715_v17, %v1565_v4 }
 0x142   : > { %1850 = vrot.lane.b32.xlu0 %v4693_v12, %s7723_s26 }
 0x143   : > { %4694 = vtanh.f32 %v5722_v14  ;;  %v4533_v53 = vmul.f32 -1.442695, %v5722_v14 }
 0x148   : > { %v1568_v11 = vpop.f32.mrf.mxu0 }
 0x149   : > { %v4695_v23 = vpop.eup %4694  ;;  %v5727_v7 = vadd.f32 %v5715_v17, %v1568_v11 }
 0x14a   : > { %1852 = vrot.lane.b32.xlu2 %v4695_v23, %s7723_s26 }
 0x14b   : > { %7762 = vst [vmem:[#allocation13_spill] sm:$0xff] %v5727_v7  ;;  %4696 = vtanh.f32 %v5727_v7  ;;  %v4534_v16 = vmul.f32 -1.442695, %v5727_v7 }
 0x150   : > { %v1571_v24 = vpop.f32.mrf.mxu0 }
 0x151   : > { %v4697_v21 = vpop.eup %4696  ;;  %v5754_v47 = vadd.f32 %v5715_v17, %v1571_v24 }
 0x152   : > { %1854 = vrot.lane.b32.xlu0 %v4697_v21, %s7723_s26 }
 0x158   : > { %v1574_v48 = vpop.f32.mrf.mxu0 }
 0x159   : > { %v5733_v26 = vadd.f32 %v5715_v17, %v1574_v48 }
 0x15b   : > { %4698 = vtanh.f32 %v5733_v26 }
 0x160   : > { %v1577_v28 = vpop.f32.mrf.mxu0 }
 0x161   : > { %v4699_v8 = vpop.eup %4698  ;;  %v5737_v32 = vadd.f32 %v5715_v17, %v1577_v28  ;;  %v4536_v28 = vmul.f32 -1.442695, %v5733_v26 }
 0x162   : > { %1858 = vrot.lane.b32.xlu2 %v4699_v8, %s7723_s26 }
 0x163   : > { %7763 = vst [vmem:[#allocation14_spill] sm:$0xff] %v5737_v32  ;;  %4700 = vtanh.f32 %v5737_v32 }
 0x164   : > { %4702 = vpow2.f32 %v4533_v53 }
 0x165   : > { %4704 = vpow2.f32 %v4532_v63 }
 0x168   : > { %v1580_v13 = vpop.f32.mrf.mxu0 }
 0x169   : > { %v4701_v9 = vpop.eup %4700  ;;  %v5759_v1 = vadd.f32 %v5715_v17, %v1580_v13 }
 0x16a   : > { %1860 = vrot.lane.b32.xlu0 %v4701_v9, %s7723_s26  ;;  %v4703_v18 = vpop.eup %4702 }
 0x16b   : > { %v1635_v39 = vadd.f32 1.0, %v4703_v18  ;;  %v4705_v57 = vpop.eup %4704  ;;  %7764 = vst [vmem:[#allocation15_spill] sm:$0xff] %v5759_v1 }
 0x16c   : > { %v1634_v19 = vadd.f32 1.0, %v4705_v57 }
 0x16d   : > { %4706 = vrcp.f32 %v1635_v39  ;;  %v1672_v8 = vand.u32 2147483648, %v1635_v39  ;;  %vm1666_vm4 = vweird.f32 %v1635_v39  ;;  %v1670_v9 = vand.u32 2147483647, %v1635_v39 }
 0x16e   : > { %vm1651_vm8 = vweird.f32 %v1634_v19 }
 0x16f   : > { %v1673_v18 = vor.u32 1.1754944e-38, %v1672_v8  ;;  %vm1671_vm6 = vcmp.eq.f32.partialorder %v1670_v9, 8.507059e+37 }
 0x170   : > { %v1583_v44 = vpop.f32.mrf.mxu0 }
 0x171   : > { %v5766_v21 = vadd.f32 %v5715_v17, %v1583_v44 }
 0x173   : > { %v4707_v42 = vpop.eup %4706  ;;  %7765 = vst [vmem:[#allocation16_spill] sm:$0xff] %v5766_v21 }
 0x174   : > { %v1662_v56 = vmul.f32 %v4707_v42, %v1635_v39  ;;  %vm1667_vm15 = vweird.f32 %v4707_v42 }
 0x175   : > { %vm1668_vm5 = vmor %vm1666_vm4, %vm1667_vm15 }
 0x176   : > { %v1663_v40 = vsub.f32 1.0, %v1662_v56  ;;  %v1657_v56 = vand.u32 2147483648, %v1634_v19 }
 0x178   : > { %v1586_v34 = vpop.f32.mrf.mxu0  ;;  %v1664_v11 = vmul.f32 %v4707_v42, %v1663_v40  ;;  %v5781_v40 = vld [vmem:[%s7767_s5] ss:$0 sm:$0xff]  ;;  %s5016_s5 = scalar_lea.hbm %s7698_s22, 4 }
 0x179   : > { %v5776_v39 = vadd.f32 %v5715_v17, %v1586_v34  ;;  %v1658_v34 = vor.u32 1.1754944e-38, %v1657_v56 }
 0x17a   : > { %v1665_v48 = vadd.f32 %v4707_v42, %v1664_v11 }
 0x17b   : > { %7766 = vst [vmem:[#allocation17_spill] sm:$0xff] %v5776_v39 }
 0x17c   : > { %v1669_v63 = vsel %vm1668_vm5, %v4707_v42, %v1665_v48 }
 0x180   : > { %v5742_v30 = vpop.f32.mrf.mxu0 }
 0x188   : > { %v5746_v37 = vpop.f32.mrf.mxu0 }
 0x190   : > { %v1595_v43 = vpop.f32.mrf.mxu0 }
 0x191   : > { %v5749_v45 = vadd.f32 %v5715_v17, %v1595_v43 }
 0x193   : > { %4708 = vtanh.f32 %v5749_v45 }
 0x194   : > { %4710 = vrcp.f32 %v1634_v19 }
 0x195   : > { %4712 = vpow2.f32 %v4534_v16  ;;  %v4537_v16 = vmul.f32 -1.442695, %v5737_v32 }
 0x196   : > { %4714 = vtanh.f32 %v5754_v47 }
 0x197   : > { %4716 = vtanh.f32 %v5759_v1 }
 0x199   : > { %v4709_v50 = vpop.eup %4708 }
 0x19a   : > { %1872 = vrot.lane.b32.xlu1 %v4709_v50, %s7723_s26  ;;  %v4711_v29 = vpop.eup %4710  ;;  %v1674_v50 = vsel %vm1671_vm6, %v1673_v18, %v1669_v63 }
 0x19b   : > { %v4713_v31 = vpop.eup %4712  ;;  %v1647_v12 = vmul.f32 %v4711_v29, %v1634_v19  ;;  %vm1652_vm7 = vweird.f32 %v4711_v29 }
 0x19c   : > { %v4715_v4 = vpop.eup %4714  ;;  %v5763_v23 = vadd.f32 1.0, %v4713_v31  ;;  %v1655_v31 = vand.u32 2147483647, %v1634_v19  ;;  %vm1653_vm9 = vmor %vm1651_vm8, %vm1652_vm7  ;;  %v5791_v19 = vld [vmem:[%s7768_s1] ss:$0 sm:$0xff]  ;;  %s7822_s1 = sld [smem:[#allocation20_spill]] }
 0x19d   : > { %v1648_v24 = vsub.f32 1.0, %v1647_v12  ;;  %v4717_v13 = vpop.eup %4716 }
 0x19e   : > { %4718 = vrcp.f32 %v5763_v23  ;;  %vm1656_vm10 = vcmp.eq.f32.partialorder %v1655_v31, 8.507059e+37  ;;  %vm1681_vm14 = vweird.f32 %v5763_v23 }
 0x19f   : > { %v1649_v53 = vmul.f32 %v4711_v29, %v1648_v24  ;;  %4720 = vtanh.f32 %v5766_v21 }
 0x1a0   : > { %4722 = vpow2.f32 %v4536_v28 }
 0x1a1   : > { %v1650_v43 = vadd.f32 %v4711_v29, %v1649_v53  ;;  %4724 = vpow2.f32 %v4537_v16  ;;  %v5797_v53 = vadd.f32 %v5715_v17, %v5742_v30 }
 0x1a2   : > { %1856 = vrot.lane.b32.xlu1 %v4715_v4, %s7723_s26  ;;  %4726 = vtanh.f32 %v5776_v39 }
 0x1a3   : > { %v1654_v12 = vsel %vm1653_vm9, %v4711_v29, %v1650_v43  ;;  %7769 = vst [vmem:[#allocation18_spill] sm:$0xff] %v5797_v53 }
 0x1a4   : > { %v1853_v44 = vpop.permute.xlu2 %1852  ;;  %v5772_v57 = vpop.eup %4718  ;;  %v1659_v29 = vsel %vm1656_vm10, %v1658_v34, %v1654_v12  ;;  %v1687_v34 = vand.u32 2147483648, %v5763_v23 }
 0x1a5   : > { %v1887_v42 = vmul.f32 %v1853_v44, %v1674_v50  ;;  %v4721_v4 = vpop.eup %4720  ;;  %v1677_v11 = vmul.f32 %v5772_v57, %v5763_v23  ;;  %vm1682_vm12 = vweird.f32 %v5772_v57 }
 0x1a6   : > { %v4723_v24 = vpop.eup %4722  ;;  %vm1683_vm15 = vmor %vm1681_vm14, %vm1682_vm12 }
 0x1a7   : > { %v1903_v48 = vmul.f32 %v5781_v40, %v1887_v42  ;;  %v5793_v8 = vadd.f32 1.0, %v4723_v24  ;;  %v1678_v9 = vsub.f32 1.0, %v1677_v11  ;;  %v4725_v18 = vpop.eup %4724 }
 0x1a8   : > { %v4727_v43 = vpop.eup %4726 }
 0x1a9   : > { %v1919_v44 = vadd.f32 %v5791_v19, %v1903_v48  ;;  %4728 = vrcp.f32 %v5793_v8  ;;  %v1679_v50 = vmul.f32 %v5772_v57, %v1678_v9  ;;  %vm1711_vm6 = vweird.f32 %v5793_v8 }
 0x1aa   : > { %1862 = vrot.lane.b32.xlu1 %v4717_v13, %s7723_s26  ;;  %4730 = vtanh.f32 %v5797_v53 }
 0x1ab   : > { %v1931_v42 = vrot.slane %v1919_v44, 4  ;;  %v1968_v31 = vrot.slane %v1919_v44, 6  ;;  %v1680_v12 = vadd.f32 %v5772_v57, %v1679_v50 }
 0x1ad   : > { %v1684_v9 = vsel %vm1683_vm15, %v5772_v57, %v1680_v12 }
 0x1af   : > { %v4729_v48 = vpop.eup %4728 }
 0x1b0   : > { %vm1712_vm5 = vweird.f32 %v4729_v48 }
 0x1b1   : > { %vm1713_vm7 = vmor %vm1711_vm6, %vm1712_vm5 }
 0x1b2   : > { %1864 = vrot.lane.b32.xlu1 %v4721_v4, %s7723_s26  ;;  %v1639_v4 = vadd.f32 1.0, %v4725_v18  ;;  %v1707_v18 = vmul.f32 %v4729_v48, %v5793_v8 }
 0x1b4   : > { %v1851_v28 = vpop.permute.xlu0 %1850  ;;  %4732 = vrcp.f32 %v1639_v4  ;;  %vm1726_vm10 = vweird.f32 %v1639_v4 }
 0x1b5   : > { %v1886_v13 = vmul.f32 %v1851_v28, %v1659_v29  ;;  %v5830_v28 = vadd.f32 %v5715_v17, %v5746_v37  ;;  %v1685_v29 = vand.u32 2147483647, %v5763_v23  ;;  %v1708_v23 = vsub.f32 1.0, %v1707_v18 }
 0x1b6   : > { %v1715_v18 = vand.u32 2147483647, %v5793_v8 }
 0x1b7   : > { %v1902_v63 = vmul.f32 %v5781_v40, %v1886_v13  ;;  %v4731_v13 = vpop.eup %4730  ;;  %4734 = vtanh.f32 %v5830_v28  ;;  %vm1686_vm4 = vcmp.eq.f32.partialorder %v1685_v29, 8.507059e+37 }
 0x1b8   : > { %vm1716_vm8 = vcmp.eq.f32.partialorder %v1715_v18, 8.507059e+37 }
 0x1b9   : > { %v5803_v16 = vadd.f32 %v5791_v19, %v1902_v63  ;;  %v1688_v63 = vor.u32 1.1754944e-38, %v1687_v34  ;;  %v1709_v34 = vmul.f32 %v4729_v48, %v1708_v23 }
 0x1ba   : > { %1866 = vrot.lane.b32.xlu1 %v4727_v43, %s7723_s26  ;;  %v4733_v50 = vpop.eup %4732 }
 0x1bb   : > { %v7709_v30 = vrot.slane %v5803_v16, 4  ;;  %v7714_v56 = vrot.slane %v5803_v16, 6  ;;  %2063 = vrot.lane.b32.xlu0 %v5803_v16, %s7757_s2  ;;  %v1689_v37 = vsel %vm1686_vm4, %v1688_v63, %v1684_v9  ;;  %v1722_v12 = vmul.f32 %v4733_v50, %v1639_v4 }
 0x1bc   : > { %v1717_v63 = vand.u32 2147483648, %v5793_v8  ;;  %vm1727_vm9 = vweird.f32 %v4733_v50 }
 0x1bd   : > { %v5819_v11 = vsel %vm1308_vm13, %v7714_v56, %v1968_v31  ;;  %v5825_v24 = vsel %vm1942_vm11, %v7709_v30, %v1931_v42  ;;  %v4735_v35 = vpop.eup %4734  ;;  %v1723_v29 = vsub.f32 1.0, %v1722_v12  ;;  %vm1728_vm12 = vmor %vm1726_vm10, %vm1727_vm9 }
 0x1c2   : > { %1868 = vrot.lane.b32.xlu1 %v4731_v13, %s7723_s26 }
 0x1c3   : > { %2065 = vrot.lane.b32.xlu0 %v1919_v44, %s7757_s2 }
 0x1c4   : > { %v1855_v17 = vpop.permute.xlu0 %1854 }
 0x1c5   : > { %v1888_v43 = vmul.f32 %v1855_v17, %v1689_v37  ;;  %v1724_v17 = vmul.f32 %v4733_v50, %v1723_v29 }
 0x1c7   : > { %v1904_v30 = vmul.f32 %v5781_v40, %v1888_v43  ;;  %v1718_v43 = vor.u32 1.1754944e-38, %v1717_v63  ;;  %v1725_v23 = vadd.f32 %v4733_v50, %v1724_v17  ;;  %v4538_v17 = vmul.f32 -1.442695, %v5759_v1 }
 0x1c9   : > { %v5841_v57 = vadd.f32 %v5791_v19, %v1904_v30  ;;  %v1710_v30 = vadd.f32 %v4729_v48, %v1709_v34  ;;  %v1730_v34 = vand.u32 2147483647, %v1639_v4 }
 0x1ca   : > { %1870 = vrot.lane.b32.xlu1 %v4735_v35, %s7723_s26 }
 0x1cb   : > { %v7713_v13 = vrot.slane %v5841_v57, 4  ;;  %v7712_v44 = vrot.slane %v5841_v57, 6  ;;  %2067 = vrot.lane.b32.xlu0 %v5841_v57, %s7757_s2  ;;  %v1714_v37 = vsel %vm1713_vm7, %v4729_v48, %v1710_v30  ;;  %vm1731_vm14 = vcmp.eq.f32.partialorder %v1730_v34, 8.507059e+37 }
 0x1cc   : > { %v1719_v12 = vsel %vm1716_vm8, %v1718_v43, %v1714_v37  ;;  %v4543_v48 = vmul.f32 -1.442695, %v5749_v45 }
 0x1cd   : > { %v5852_v9 = vsel %vm1308_vm13, %v1968_v31, %v7712_v44  ;;  %v5858_v35 = vsel %vm1942_vm11, %v1931_v42, %v7713_v13  ;;  %v1859_v31 = vpop.permute.xlu2 %1858  ;;  %v1732_v44 = vand.u32 2147483648, %v1639_v4  ;;  %v1729_v13 = vsel %vm1728_vm12, %v4733_v50, %v1725_v23 }
 0x1ce   : > { %v1890_v42 = vmul.f32 %v1859_v31, %v1719_v12  ;;  %4736 = vpow2.f32 %v4543_v48  ;;  %v4539_v23 = vmul.f32 -1.442695, %v5766_v21 }
 0x1cf   : > { %v1733_v56 = vor.u32 1.1754944e-38, %v1732_v44 }
 0x1d0   : > { %v1906_v32 = vmul.f32 %v5781_v40, %v1890_v42 }
 0x1d1   : > { %v1734_v8 = vsel %vm1731_vm14, %v1733_v56, %v1729_v13  ;;  %v4535_v13 = vmul.f32 -1.442695, %v5754_v47 }
 0x1d2   : > { %v5866_v30 = vadd.f32 %v5791_v19, %v1906_v32 }
 0x1d3   : > { %4738 = vpow2.f32 %v4535_v13 }
 0x1d4   : > { %v7717_v4 = vrot.slane %v5866_v30, 6 }
 0x1dc   : > { %v1861_v29 = vpop.permute.xlu0 %1860 }
 0x1dd   : > { %v1891_v7 = vmul.f32 %v1861_v29, %v1734_v8  ;;  %v4540_v29 = vmul.f32 -1.442695, %v5776_v39 }
 0x1df   : > { %v1907_v63 = vmul.f32 %v5781_v40, %v1891_v7  ;;  %v4737_v7 = vpop.eup %4736 }
 0x1e0   : > { %v1645_v44 = vadd.f32 1.0, %v4737_v7  ;;  %v4739_v37 = vpop.eup %4738 }
 0x1e1   : > { %v5870_v18 = vadd.f32 %v5791_v19, %v1907_v63  ;;  %v1637_v43 = vadd.f32 1.0, %v4739_v37 }
 0x1e2   : > { %4740 = vrcp.f32 %v1645_v44  ;;  %v1822_v37 = vand.u32 2147483648, %v1645_v44  ;;  %vm1816_vm4 = vweird.f32 %v1645_v44 }
 0x1e3   : > { %v7718_v50 = vrot.slane %v5870_v18, 6  ;;  %4742 = vpow2.f32 %v4538_v17  ;;  %vm1696_vm8 = vweird.f32 %v1637_v43  ;;  %v1702_v1 = vand.u32 2147483648, %v1637_v43 }
 0x1e4   : > { %4744 = vrcp.f32 %v1637_v43 }
 0x1e5   : > { %v1985_v56 = vsel %vm1308_vm13, %v7717_v4, %v7718_v50  ;;  %4746 = vpow2.f32 %v4539_v23  ;;  %v4541_v23 = vmul.f32 -1.442695, %v5797_v53 }
 0x1e6   : > { %v1996_v32 = vmul.f32 %v5635_v20, %v1985_v56 }
 0x1e8   : > { %2025 = vrot.lane.b32.xlu1 %v1996_v32, %s7758_s24  ;;  %v4741_v31 = vpop.eup %4740 }
 0x1e9   : > { %v4743_v12 = vpop.eup %4742  ;;  %v1812_v42 = vmul.f32 %v4741_v31, %v1645_v44  ;;  %vm1817_vm15 = vweird.f32 %v4741_v31 }
 0x1ea   : > { %v5885_v20 = vadd.f32 1.0, %v4743_v12  ;;  %v4745_v8 = vpop.eup %4744  ;;  %v1820_v12 = vand.u32 2147483647, %v1645_v44  ;;  %vm1818_vm5 = vmor %vm1816_vm4, %vm1817_vm15 }
 0x1eb   : > { %v1813_v34 = vsub.f32 1.0, %v1812_v42  ;;  %v4747_v48 = vpop.eup %4746  ;;  %v1692_v56 = vmul.f32 %v4745_v8, %v1637_v43  ;;  %vm1697_vm7 = vweird.f32 %v4745_v8 }
 0x1ec   : > { %4748 = vrcp.f32 %v5885_v20  ;;  %v5889_v32 = vadd.f32 1.0, %v4747_v48  ;;  %v1823_v48 = vor.u32 1.1754944e-38, %v1822_v37  ;;  %vm1821_vm6 = vcmp.eq.f32.partialorder %v1820_v12, 8.507059e+37  ;;  %vm1698_vm9 = vmor %vm1696_vm8, %vm1697_vm7 }
 0x1ed   : > { %v1814_v63 = vmul.f32 %v4741_v31, %v1813_v34  ;;  %4750 = vpow2.f32 %v4540_v29  ;;  %v1693_v7 = vsub.f32 1.0, %v1692_v56  ;;  %vm1741_vm14 = vweird.f32 %v5885_v20 }
 0x1ee   : > { %4752 = vrcp.f32 %v5889_v32 }
 0x1ef   : > { %v1815_v13 = vadd.f32 %v4741_v31, %v1814_v63  ;;  %v1694_v34 = vmul.f32 %v4745_v8, %v1693_v7  ;;  %4754 = vpow2.f32 %v4541_v23  ;;  %v1700_v7 = vand.u32 2147483647, %v1637_v43 }
 0x1f1   : > { %v1819_v4 = vsel %vm1818_vm5, %v4741_v31, %v1815_v13  ;;  %v1695_v53 = vadd.f32 %v4745_v8, %v1694_v34  ;;  %v4542_v31 = vmul.f32 -1.442695, %v5830_v28  ;;  %vm1701_vm10 = vcmp.eq.f32.partialorder %v1700_v7, 8.507059e+37 }
 0x1f2   : > { %v5891_v17 = vpop.eup %4748  ;;  %v1824_v50 = vsel %vm1821_vm6, %v1823_v48, %v1819_v4  ;;  %vm1756_vm6 = vweird.f32 %v5889_v32 }
 0x1f3   : > { %v4751_v42 = vpop.eup %4750  ;;  %v1737_v29 = vmul.f32 %v5891_v17, %v5885_v20  ;;  %v1699_v4 = vsel %vm1698_vm9, %v4745_v8, %v1695_v53  ;;  %vm1742_vm12 = vweird.f32 %v5891_v17  ;;  %v7770_v53 = vrot.slane %v5803_v16, 6 }
 0x1f4   : > { %v5897_v63 = vadd.f32 1.0, %v4751_v42  ;;  %v5899_v21 = vpop.eup %4752  ;;  %v1703_v42 = vor.u32 1.1754944e-38, %v1702_v1  ;;  %vm1743_vm15 = vmor %vm1741_vm14, %vm1742_vm12 }
 0x1f5   : > { %v1738_v44 = vsub.f32 1.0, %v1737_v29  ;;  %v4755_v37 = vpop.eup %4754  ;;  %v1752_v12 = vmul.f32 %v5899_v21, %v5889_v32  ;;  %vm1757_vm5 = vweird.f32 %v5899_v21 }
 0x1f6   : > { %4756 = vrcp.f32 %v5897_v63  ;;  %v5911_v29 = vadd.f32 1.0, %v4755_v37  ;;  %v1704_v43 = vsel %vm1701_vm10, %v1703_v42, %v1699_v4  ;;  %v1745_v37 = vand.u32 2147483647, %v5885_v20  ;;  %vm1758_vm7 = vmor %vm1756_vm6, %vm1757_vm5 }
 0x1f7   : > { %4758 = vpow2.f32 %v4542_v31  ;;  %vm1771_vm10 = vweird.f32 %v5897_v63 }
 0x1f8   : > { %4760 = vrcp.f32 %v5911_v29  ;;  %vm1746_vm4 = vcmp.eq.f32.partialorder %v1745_v37, 8.507059e+37  ;;  %v1762_v37 = vand.u32 2147483648, %v5889_v32 }
 0x1fc   : > { %v5914_v48 = vpop.eup %4756 }
 0x1fd   : > { %v1767_v4 = vmul.f32 %v5914_v48, %v5897_v63  ;;  %vm1772_vm9 = vweird.f32 %v5914_v48 }
 0x1fe   : > { %vm1773_vm12 = vmor %vm1771_vm10, %vm1772_vm9 }
 0x20c   : > { %v1873_v56 = vpop.permute.xlu1 %1872 }
 0x20d   : > { %v1897_v39 = vmul.f32 %v1873_v56, %v1824_v50  ;;  %v1739_v50 = vmul.f32 %v5891_v17, %v1738_v44  ;;  %v1753_v44 = vsub.f32 1.0, %v1752_v12 }
 0x20f   : > { %v1913_v13 = vmul.f32 %v5781_v40, %v1897_v39  ;;  %v1740_v8 = vadd.f32 %v5891_v17, %v1739_v50  ;;  %v4759_v50 = vpop.eup %4758  ;;  %v1754_v42 = vmul.f32 %v5899_v21, %v1753_v44 }
 0x210   : > { %v5952_v44 = vpop.eup %4760 }
 0x211   : > { %v5905_v23 = vadd.f32 %v5791_v19, %v1913_v13  ;;  %v1747_v13 = vand.u32 2147483648, %v5885_v20  ;;  %v5940_v20 = vadd.f32 1.0, %v4759_v50  ;;  %v1760_v50 = vand.u32 2147483647, %v5889_v32 }
 0x213   : > { %v1978_v34 = vrot.slane %v5905_v23, 6  ;;  %4762 = vrcp.f32 %v5940_v20  ;;  %vm1761_vm8 = vcmp.eq.f32.partialorder %v1760_v50, 8.507059e+37 }
 0x214   : > { %v1857_v39 = vpop.permute.xlu1 %1856 }
 0x215   : > { %v1889_v56 = vmul.f32 %v1857_v39, %v1704_v43  ;;  %v1990_v1 = vsel %vm1308_vm13, %v1978_v34, %v7770_v53  ;;  %v1748_v39 = vor.u32 1.1754944e-38, %v1747_v13  ;;  %v1992_v13 = vmul.f32 %v5592_v52, %v5819_v11 }
 0x216   : > { %v1991_v31 = vmul.f32 %v5583_v49, %v1990_v1  ;;  %v1744_v49 = vsel %vm1743_vm15, %v5891_v17, %v1740_v8  ;;  %v1768_v1 = vsub.f32 1.0, %v1767_v4  ;;  %v7771_v17 = vrot.slane %v5841_v57, 4 }
 0x217   : > { %v1905_v7 = vmul.f32 %v5781_v40, %v1889_v56  ;;  %v1749_v56 = vsel %vm1746_vm4, %v1748_v39, %v1744_v49  ;;  %v1782_v11 = vmul.f32 %v5952_v44, %v5911_v29  ;;  %v1763_v39 = vor.u32 1.1754944e-38, %v1762_v37 }
 0x218   : > { %2015 = vrot.lane.b32.xlu2 %v1991_v31, %s7758_s24  ;;  %v1769_v49 = vmul.f32 %v5914_v48, %v1768_v1  ;;  %vm1787_vm15 = vweird.f32 %v5952_v44  ;;  %vm1786_vm4 = vweird.f32 %v5911_v29 }
 0x219   : > { %v5933_v12 = vadd.f32 %v5791_v19, %v1905_v7  ;;  %v1755_v7 = vadd.f32 %v5899_v21, %v1754_v42  ;;  %vm1788_vm5 = vmor %vm1786_vm4, %vm1787_vm15  ;;  %vm1178_vm15 = vcmp.ge.s32.totalorder %v5350_v38, 4  ;;  %vm1179_vm4 = vcmp.ge.s32.totalorder %v5333_v60, 4 }
 0x21a   : > { %v1770_v1 = vadd.f32 %v5914_v48, %v1769_v49 }
 0x21b   : > { %v1933_v43 = vrot.slane %v5933_v12, 4  ;;  %2069 = vrot.lane.b32.xlu0 %v5933_v12, %s7757_s2  ;;  %v1759_v52 = vsel %vm1758_vm7, %v5899_v21, %v1755_v7  ;;  %v5976_v7 = vpop.eup %4762  ;;  %v1970_v50 = vrot.slane %v5933_v12, 6 }
 0x21c   : > { %v1863_v53 = vpop.permute.xlu1 %1862  ;;  %v1764_v32 = vsel %vm1761_vm8, %v1763_v39, %v1759_v52  ;;  %v1775_v52 = vand.u32 2147483647, %v5897_v63  ;;  %vm1802_vm7 = vweird.f32 %v5976_v7  ;;  %vm1801_vm8 = vweird.f32 %v5940_v20 }
 0x21d   : > { %v1892_v31 = vmul.f32 %v1863_v53, %v1749_v56  ;;  %v5950_v8 = vsel %vm1942_vm11, %v7771_v17, %v1933_v43  ;;  %v1993_v17 = vmul.f32 %v5602_v10, %v5852_v9  ;;  %v1774_v10 = vsel %vm1773_vm12, %v5914_v48, %v1770_v1  ;;  %vm1803_vm9 = vmor %vm1801_vm8, %vm1802_vm7 }
 0x21e   : > { %vm1776_vm14 = vcmp.eq.f32.partialorder %v1775_v52, 8.507059e+37  ;;  %v1792_v52 = vand.u32 2147483648, %v5911_v29  ;;  %vm1176_vm12 = vcmp.ge.s32.totalorder %v5297_v27, 4  ;;  %vm1182_vm7 = vcmp.ge.s32.totalorder %v5410_v46, 4 }
 0x21f   : > { %v1908_v4 = vmul.f32 %v5781_v40, %v1892_v31  ;;  %v1783_v31 = vsub.f32 1.0, %v1782_v11  ;;  %vm1183_vm8 = vcmp.ge.s32.totalorder %v5524_v55, 4 }
 0x220   : > { %2017 = vrot.lane.b32.xlu2 %v1992_v13, %s7758_s24  ;;  %v7772_v13 = vrot.slane %v5870_v18, 6 }
 0x221   : > { %v5964_v42 = vadd.f32 %v5791_v19, %v1908_v4  ;;  %v1777_v4 = vand.u32 2147483648, %v5897_v63  ;;  %v1784_v39 = vmul.f32 %v5952_v44, %v1783_v31  ;;  %v7773_v63 = vrot.slane %v5841_v57, 6 }
 0x223   : > { %v1973_v56 = vrot.slane %v5964_v42, 6  ;;  %2075 = vrot.lane.b32.xlu1 %v5964_v42, %s7757_s2  ;;  %2071 = vrot.lane.b32.xlu0 %v5866_v30, %s7757_s2  ;;  %v1987_v48 = vsel %vm1308_vm13, %v7773_v63, %v1970_v50 }
 0x224   : > { %v1865_v53 = vpop.permute.xlu1 %1864  ;;  %v1994_v57 = vmul.f32 %v5612_v59, %v1987_v48  ;;  %v1793_v59 = vor.u32 1.1754944e-38, %v1792_v52 }
 0x225   : > { %v1893_v21 = vmul.f32 %v1865_v53, %v1764_v32  ;;  %v1984_v37 = vsel %vm1308_vm13, %v7772_v13, %v1973_v56  ;;  %v1797_v32 = vmul.f32 %v5976_v7, %v5940_v20  ;;  %v1778_v53 = vor.u32 1.1754944e-38, %v1777_v4 }
 0x226   : > { %v1997_v9 = vmul.f32 %v5646_v0, %v1984_v37  ;;  %v1785_v13 = vadd.f32 %v5952_v44, %v1784_v39 }
 0x227   : > { %v1909_v49 = vmul.f32 %v5781_v40, %v1893_v21  ;;  %v1936_v21 = vrot.slane %v5964_v42, 4  ;;  %v1779_v1 = vsel %vm1776_vm14, %v1778_v53, %v1774_v10  ;;  %v1798_v37 = vsub.f32 1.0, %v1797_v32 }
 0x228   : > { %2019 = vrot.lane.b32.xlu2 %v1993_v17, %s7758_s24  ;;  %v1789_v39 = vsel %vm1788_vm5, %v5952_v44, %v1785_v13  ;;  %vm1177_vm14 = vcmp.ge.s32.totalorder %v5308_v41, 4  ;;  %vm1180_vm5 = vcmp.ge.s32.totalorder %v5444_v51, 4 }
 0x229   : > { %v5995_v11 = vadd.f32 %v5791_v19, %v1909_v49  ;;  %v1790_v49 = vand.u32 2147483647, %v5911_v29  ;;  %v1799_v32 = vmul.f32 %v5976_v7, %v1798_v37  ;;  %v7774_v29 = vrot.slane %v5866_v30, 6 }
 0x22b   : > { %2027 = vrot.lane.b32.xlu0 %v1997_v9, %s7758_s24  ;;  %v1937_v0 = vrot.slane %v5995_v11, 4  ;;  %vm1791_vm6 = vcmp.eq.f32.partialorder %v1790_v49, 8.507059e+37  ;;  %v1974_v48 = vrot.slane %v5995_v11, 6  ;;  %v1800_v37 = vadd.f32 %v5976_v7, %v1799_v32 }
 0x22c   : > { %v1867_v17 = vpop.permute.xlu1 %1866 }
 0x22d   : > { %v1894_v31 = vmul.f32 %v1867_v17, %v1779_v1  ;;  %v6013_v4 = vsel %vm1942_vm11, %v1936_v21, %v1937_v0  ;;  %v1986_v1 = vsel %vm1308_vm13, %v1970_v50, %v7774_v29  ;;  %v1794_v17 = vsel %vm1791_vm6, %v1793_v59, %v1789_v39  ;;  %v2134_v59 = vld [vmem:[%s7775_s3 + $0x58] sm:$0xff] }
 0x22e   : > { %v1995_v49 = vmul.f32 %v5624_v25, %v1986_v1  ;;  %v1807_v50 = vand.u32 2147483648, %v5940_v20  ;;  %2179 = vmatpush.msra.mxu1 %v2134_v59  ;;  %vm1181_vm6 = vcmp.ge.s32.totalorder %v5397_v33, 4 }
 0x22f   : > { %v1910_v10 = vmul.f32 %v5781_v40, %v1894_v31 }
 0x230   : > { %2021 = vrot.lane.b32.xlu2 %v1994_v57, %s7758_s24 }
 0x231   : > { %v6022_v9 = vadd.f32 %v5791_v19, %v1910_v10  ;;  %v1805_v10 = vand.u32 2147483647, %v5940_v20  ;;  %v2133_v20 = vld [vmem:[%s7775_s3 + $0x50] sm:$0xff] }
 0x232   : > { %2180 = vmatpush.msra.mxu1 %v2133_v20 }
 0x233   : > { %v1938_v53 = vrot.slane %v6022_v9, 4  ;;  %v1975_v63 = vrot.slane %v6022_v9, 6  ;;  %2077 = vrot.lane.b32.xlu0 %v5995_v11, %s7757_s2  ;;  %vm1806_vm10 = vcmp.eq.f32.partialorder %v1805_v10, 8.507059e+37 }
 0x234   : > { %v1869_v44 = vpop.permute.xlu1 %1868 }
 0x235   : > { %v1895_v31 = vmul.f32 %v1869_v44, %v1794_v17  ;;  %v1982_v13 = vsel %vm1308_vm13, %v1974_v48, %v1975_v63  ;;  %v6041_v57 = vsel %vm1942_vm11, %v1937_v0, %v1938_v53  ;;  %v1804_v0 = vsel %vm1803_vm9, %v5976_v7, %v1800_v37 }
 0x236   : > { %v1999_v11 = vmul.f32 %v5668_v2, %v1982_v13  ;;  %v1808_v2 = vor.u32 1.1754944e-38, %v1807_v50  ;;  %vm1184_vm9 = vcmp.ge.s32.totalorder %v5469_v15, 4 }
 0x237   : > { %v1911_v52 = vmul.f32 %v5781_v40, %v1895_v31 }
 0x238   : > { %2031 = vrot.lane.b32.xlu1 %v1999_v11, %s7758_s24  ;;  %2023 = vrot.lane.b32.xlu2 %v1995_v49, %s7758_s24  ;;  %v1809_v29 = vsel %vm1806_vm10, %v1808_v2, %v1804_v0  ;;  %v1983_v49 = vsel %vm1308_vm13, %v1973_v56, %v1974_v48  ;;  %v2129_v56 = vld [vmem:[%s7775_s3 + $0x30] sm:$0xff]  ;;  %v2124_v2 = vld [vmem:[%s7775_s3 + $0x8] sm:$0xff]  ;;  %vm1185_vm10 = vcmp.ge.s32.totalorder %v5508_v62, 4 }
 0x239   : > { %v1927_v39 = vadd.f32 %v5791_v19, %v1911_v52  ;;  %v1998_v48 = vmul.f32 %v5657_v5, %v1983_v49  ;;  %v2126_v5 = vld [vmem:[%s7775_s3 + $0x18] sm:$0xff] }
 0x23b   : > { %v1939_v25 = vrot.slane %v1927_v39, 4  ;;  %v1976_v32 = vrot.slane %v1927_v39, 6 }
 0x23c   : > { %v1871_v1 = vpop.permute.xlu1 %1870 }
 0x23d   : > { %v1896_v17 = vmul.f32 %v1871_v1, %v1809_v29  ;;  %v1981_v7 = vsel %vm1308_vm13, %v1975_v63, %v1976_v32  ;;  %v6063_v44 = vsel %vm1942_vm11, %v1938_v53, %v1939_v25  ;;  %v2132_v63 = vld [vmem:[%s7775_s3 + $0x48] sm:$0xff]  ;;  %v7777_v1 = vrot.slane %v5803_v16, 4 }
 0x23e   : > { %v2000_v31 = vmul.f32 %v5679_v22, %v1981_v7  ;;  %v2131_v22 = vld [vmem:[%s7775_s3 + $0x40] sm:$0xff]  ;;  %2181 = vmatpush.msra.mxu1 %v2132_v63 }
 0x23f   : > { %v1912_v13 = vmul.f32 %v5781_v40, %v1896_v17  ;;  %v1941_v40 = vrot.slane %v5905_v23, 4  ;;  %v2064_v17 = vpop.permute.xlu0 %2063 }
 0x240   : > { %2081 = vrot.lane.b32.xlu1 %v1927_v39, %s7757_s2  ;;  %2033 = vrot.lane.b32.xlu0 %v2000_v31, %s7758_s24  ;;  %v2125_v39 = vld [vmem:[%s7775_s3 + $0x10] sm:$0xff] }
 0x241   : > { %v1928_v37 = vadd.f32 %v5791_v19, %v1912_v13  ;;  %2073 = vrot.lane.b32.xlu2 %v5870_v18, %s7757_s2  ;;  %v2130_v19 = vld [vmem:[%s7775_s3 + $0x38] sm:$0xff]  ;;  %2182 = vmatpush.msra.mxu1 %v2131_v22 }
 0x243   : > { %v1940_v53 = vrot.slane %v1928_v37, 4  ;;  %v1977_v11 = vrot.slane %v1928_v37, 6  ;;  %2183 = vmatpush.msra.mxu1 %v2130_v19 }
 0x245   : > { %v1979_v50 = vsel %vm1308_vm13, %v1977_v11, %v1978_v34  ;;  %v6092_v52 = vsel %vm1942_vm11, %v1939_v25, %v1940_v53  ;;  %v6096_v10 = vsel %vm1942_vm11, %v1940_v53, %v1941_v40  ;;  %2184 = vmatpush.msra.mxu1 %v2129_v56  ;;  %v2128_v34 = vld [vmem:[%s7775_s3 + $0x28] sm:$0xff]  ;;  %v2123_v25 = vld [vmem:[%s7775_s3] sm:$0xff]  ;;  %v1980_v59 = vsel %vm1308_vm13, %v1976_v32, %v1977_v11 }
 0x246   : > { %v2002_v0 = vmul.f32 %v5700_v58, %v1979_v50  ;;  %v2127_v58 = vld [vmem:[%s7775_s3 + $0x20] sm:$0xff]  ;;  %v2001_v20 = vmul.f32 %v5690_v6, %v1980_v59  ;;  %v1954_v32 = vsel %vm1942_vm11, %v1941_v40, %v7777_v1  ;;  %s5067_s3 = smov 24  }
 0x247   : > { %2185 = vmatpush.msra.mxu1 %v2128_v34  ;;  %v2066_v31 = vpop.permute.xlu0 %2065 }
 0x248   : > { %2037 = vrot.lane.b32.xlu1 %v2002_v0, %s7758_s24  ;;  %2083 = vrot.lane.b32.xlu0 %v1928_v37, %s7757_s2 }
 0x249   : > { %2029 = vrot.lane.b32.xlu2 %v1998_v48, %s7758_s24  ;;  %2186 = vmatpush.msra.mxu1 %v2127_v58  ;;  %v1934_v48 = vrot.slane %v5866_v30, 4 }
 0x24b   : > { %2187 = vmatpush.msra.mxu1 %v2126_v5  ;;  %v1950_v5 = vsel %vm1942_vm11, %v1933_v43, %v1934_v48 }
 0x24d   : > { %2188 = vmatpush.msra.mxu1 %v2125_v39 }
 0x24f   : > { %2189 = vmatpush.msra.mxu1 %v2124_v2  ;;  %v2068_v11 = vpop.permute.xlu0 %2067  ;;  %v1935_v2 = vrot.slane %v5870_v18, 4 }
 0x251   : > { %2079 = vrot.lane.b32.xlu2 %v6022_v9, %s7757_s2  ;;  %2190 = vmatpush.msra.mxu1 %v2123_v25  ;;  %v7776_v9 = vmov 0.0   ;;  %v1949_v12 = vsel %vm1942_vm11, %v1934_v48, %v1935_v2 }
 0x252   : > { %v6136_v29 = vsel %vm1176_vm12, 1.0, %v7776_v9  ;;  %v6150_v16 = vsel %vm1177_vm14, 1.0, %v7776_v9  ;;  %v6159_v22 = vsel %vm1178_vm15, 1.0, %v7776_v9  ;;  %v6168_v49 = vsel %vm1179_vm4, 1.0, %v7776_v9 }
 0x253   : > { %v1955_v6 = vmul.f32 %v6136_v29, %v1954_v32  ;;  %v1956_v13 = vmul.f32 %v6150_v16, %v5825_v24  ;;  %v1957_v40 = vmul.f32 %v6159_v22, %v5858_v35  ;;  %v1958_v0 = vmul.f32 %v6168_v49, %v5950_v8 }
 0x254   : > { %v6178_v58 = vsel %vm1180_vm5, 1.0, %v7776_v9  ;;  %v6213_v42 = vsel %vm1183_vm8, 1.0, %v7776_v9  ;;  %vm1186_vm12 = vcmp.ge.s32.totalorder %v5549_v36, 4  ;;  %vm1187_vm14 = vcmp.ge.s32.totalorder %v5537_v54, 4 }
 0x255   : > { %v1959_v39 = vmul.f32 %v6178_v58, %v1950_v5 }
 0x259   : > { %2035 = vrot.lane.b32.xlu2 %v2001_v20, %s7758_s24  ;;  %v6191_v20 = vsel %vm1181_vm6, 1.0, %v7776_v9 }
 0x25a   : > { %v2026_v43 = vpop.permute.xlu1 %2025  ;;  %v1960_v1 = vmul.f32 %v6191_v20, %v1949_v12 }
 0x25c   : > { %v2104_v18 = vsel %vm1466_vm1, %v1960_v1, %v2026_v43 }
 0x261   : > { %2085 = vrot.lane.b32.xlu2 %v5905_v23, %s7757_s2 }
 0x269   : > { %2572 = vrot.lane.b32.xlu2 %v5718_v61, %s7757_s2 }
 0x271   : > { %2574 = vrot.lane.b32.xlu2 %v5722_v14, %s7757_s2 }
 0x272   : > { %v2016_v23 = vpop.permute.xlu2 %2015 }
 0x273   : > { %v2099_v7 = vsel %vm1466_vm1, %v1955_v6, %v2016_v23  ;;  %v1948_v6 = vsel %vm1942_vm11, %v1935_v2, %v1936_v21 }
 0x274   : > { %v2111_v61 = vsel %vm1479_vm2, %v2099_v7, %v2064_v17  ;;  %v6199_v17 = vsel %vm1182_vm7, 1.0, %v7776_v9 }
 0x275   : > { %4544 = vmatmul.msk.f32.vlgmr.msra.gmra.mxu1 %vm1508_vm3, %v2111_v61  ;;  %v1961_v61 = vmul.f32 %v6199_v17, %v1948_v6 }
 0x27a   : > { %v2018_v37 = vpop.permute.xlu2 %2017 }
 0x27b   : > { %v2100_v14 = vsel %vm1466_vm1, %v1956_v13, %v2018_v37 }
 0x27c   : > { %v2112_v63 = vsel %vm1479_vm2, %v2100_v14, %v2066_v31  ;;  %v1962_v14 = vmul.f32 %v6213_v42, %v6013_v4  ;;  %v6229_v4 = vsel %vm1185_vm10, 1.0, %v7776_v9 }
 0x27d   : > { %4545 = vmatmul.msk.f32.gmra.mxu1 %vm1508_vm3, %v2112_v63  ;;  %v1964_v48 = vmul.f32 %v6229_v4, %v6063_v44 }
 0x282   : > { %v2020_v53 = vpop.permute.xlu2 %2019 }
 0x283   : > { %v2101_v19 = vsel %vm1466_vm1, %v1957_v40, %v2020_v53  ;;  %v6220_v53 = vsel %vm1184_vm9, 1.0, %v7776_v9 }
 0x284   : > { %v2113_v24 = vsel %vm1479_vm2, %v2101_v19, %v2068_v11 }
 0x285   : > { %4546 = vmatmul.msk.f32.gmra.mxu1 %vm1508_vm3, %v2113_v24  ;;  %v1963_v24 = vmul.f32 %v6220_v53, %v6041_v57 }
 0x28a   : > { %v2022_v50 = vpop.permute.xlu2 %2021 }
 0x28b   : > { %v2102_v56 = vsel %vm1466_vm1, %v1958_v0, %v2022_v50 }
 0x28d   : > { %v2070_v35 = vpop.permute.xlu0 %2069 }
 0x28e   : > { %v2114_v34 = vsel %vm1479_vm2, %v2102_v56, %v2070_v35 }
 0x28f   : > { %4547 = vmatmul.msk.f32.gmra.mxu1 %vm1508_vm3, %v2114_v34 }
 0x292   : > { %v2024_v8 = vpop.permute.xlu2 %2023 }
 0x293   : > { %v2103_v30 = vsel %vm1466_vm1, %v1959_v39, %v2024_v8  ;;  %v6240_v8 = vsel %vm1186_vm12, 1.0, %v7776_v9 }
 0x294   : > { %v1965_v2 = vmul.f32 %v6240_v8, %v6092_v52 }
 0x295   : > { %v2072_v25 = vpop.permute.xlu0 %2071  ;;  %v2076_v13 = vpop.permute.xlu1 %2075 }
 0x296   : > { %v2115_v59 = vsel %vm1479_vm2, %v2103_v30, %v2072_v25  ;;  %v6247_v25 = vsel %vm1187_vm14, 1.0, %v7776_v9 }
 0x297   : > { %4548 = vmatmul.msk.f32.gmra.mxu1 %vm1508_vm3, %v2115_v59  ;;  %v1966_v43 = vmul.f32 %v6247_v25, %v6096_v10 }
 0x29b   : > { %v2074_v32 = vpop.permute.xlu2 %2073 }
 0x29c   : > { %v2116_v23 = vsel %vm1479_vm2, %v2104_v18, %v2074_v32  ;;  %v6259_v18 = vld [vmem:[%s7683_s7] ss:$0 sm:$0xff] }
 0x29d   : > { %v2028_v7 = vpop.permute.xlu0 %2027 }
 0x29e   : > { %v2105_v31 = vsel %vm1466_vm1, %v1961_v61, %v2028_v7 }
 0x29f   : > { %4549 = vmatmul.msk.f32.gmra.mxu1 %vm1508_vm3, %v2116_v23  ;;  %v2117_v37 = vsel %vm1479_vm2, %v2105_v31, %v2076_v13 }
 0x2a3   : > { %v2030_v21 = vpop.permute.xlu2 %2029 }
 0x2a4   : > { %v2106_v40 = vsel %vm1466_vm1, %v1962_v14, %v2030_v21 }
 0x2a5   : > { %v2078_v63 = vpop.permute.xlu0 %2077 }
 0x2a6   : > { %v2118_v11 = vsel %vm1479_vm2, %v2106_v40, %v2078_v63 }
 0x2a7   : > { %4550 = vmatmul.msk.f32.gmra.mxu1 %vm1508_vm3, %v2117_v37 }
 0x2aa   : > { %v2032_v19 = vpop.permute.xlu1 %2031 }
 0x2ab   : > { %v2107_v50 = vsel %vm1466_vm1, %v1963_v24, %v2032_v19  ;;  %v2080_v0 = vpop.permute.xlu2 %2079 }
 0x2ac   : > { %v2119_v56 = vsel %vm1479_vm2, %v2107_v50, %v2080_v0 }
 0x2af   : > { %4551 = vmatmul.msk.f32.gmra.mxu1 %vm1508_vm3, %v2118_v11 }
 0x2b2   : > { %v2034_v35 = vpop.permute.xlu0 %2033  ;;  %v2082_v34 = vpop.permute.xlu1 %2081 }
 0x2b3   : > { %v2108_v5 = vsel %vm1466_vm1, %v1964_v48, %v2034_v35  ;;  %v2036_v39 = vpop.permute.xlu2 %2035  ;;  %v7779_v35 = vld [vmem:[#allocation15_spill] sm:$0xff] }
 0x2b4   : > { %v2120_v57 = vsel %vm1479_vm2, %v2108_v5, %v2082_v34  ;;  %v2109_v44 = vsel %vm1466_vm1, %v1965_v2, %v2036_v39 }
 0x2b7   : > { %4552 = vmatmul.msk.f32.gmra.mxu1 %vm1508_vm3, %v2119_v56 }
 0x2ba   : > { %v2084_v30 = vpop.permute.xlu0 %2083  ;;  %v2038_v12 = vpop.permute.xlu1 %2037 }
 0x2bb   : > { %v2121_v59 = vsel %vm1479_vm2, %v2109_v44, %v2084_v30  ;;  %v2110_v1 = vsel %vm1466_vm1, %v1966_v43, %v2038_v12  ;;  %v2086_v32 = vpop.permute.xlu2 %2085 }
 0x2bc   : > { %v2122_v52 = vsel %vm1479_vm2, %v2110_v1, %v2086_v32 }
 0x2bf   : > { %4553 = vmatmul.msk.f32.gmra.mxu1 %vm1508_vm3, %v2120_v57 }
 0x2c7   : > { %4554 = vmatmul.msk.f32.gmra.mxu1 %vm1508_vm3, %v2121_v59 }
 0x2cf   : > { %4555 = vmatmul.msk.f32.gmra.mxu1 %vm1508_vm3, %v2122_v52 }
 0x2f2   : > { %v2192_v6 = vpop.f32.mrf.mxu1 }
 0x2f3   : > { %v2193_v23 = vadd.f32 %v6259_v18, %v2192_v6 }
 0x2f5   : > { %4764 = vtanh.f32 %v2193_v23  ;;  %v4556_v34 = vmul.f32 -1.442695, %v2193_v23  ;;  %v7780_v23 = vld [vmem:[#allocation13_spill] sm:$0xff] }
 0x2fa   : > { %v2195_v7 = vpop.f32.mrf.mxu1 }
 0x2fb   : > { %v4765_v61 = vpop.eup %4764  ;;  %v2196_v44 = vadd.f32 %v6259_v18, %v2195_v7 }
 0x2fc   : > { %2480 = vrot.lane.b32.xlu0 %v4765_v61, %s7778_s4 }
 0x302   : > { %v2198_v10 = vpop.f32.mrf.mxu1 }
 0x303   : > { %v6264_v31 = vadd.f32 %v6259_v18, %v2198_v10 }
 0x304   : > { %2594 = vrot.lane.b32.xlu0 %v5749_v45, %s7757_s2 }
 0x305   : > { %4766 = vtanh.f32 %v6264_v31 }
 0x30b   : > { %v4767_v13 = vpop.eup %4766 }
 0x30c   : > { %v2201_v37 = vpop.f32.mrf.mxu1  ;;  %2484 = vrot.lane.b32.xlu0 %v4767_v13, %s7778_s4 }
 0x30d   : > { %v6271_v21 = vadd.f32 %v6259_v18, %v2201_v37 }
 0x30f   : > { %4768 = vtanh.f32 %v6271_v21 }
 0x314   : > { %v2204_v14 = vpop.f32.mrf.mxu1  ;;  %2578 = vrot.lane.b32.xlu0 %v5754_v47, %s7757_s2 }
 0x315   : > { %v4769_v63 = vpop.eup %4768  ;;  %v2205_v52 = vadd.f32 %v6259_v18, %v2204_v14  ;;  %v6313_v14 = vld [vmem:[%s7684_s8] ss:$0 sm:$0xff] }
 0x316   : > { %2486 = vrot.lane.b32.xlu2 %v4769_v63, %s7778_s4 }
 0x31c   : > { %v2207_v40 = vpop.f32.mrf.mxu1 }
 0x31d   : > { %v6278_v45 = vadd.f32 %v6259_v18, %v2207_v40 }
 0x31e   : > { %2580 = vrot.lane.b32.xlu2 %v5733_v26, %s7757_s2 }
 0x31f   : > { %4770 = vtanh.f32 %v6278_v45 }
 0x324   : > { %v2210_v11 = vpop.f32.mrf.mxu1 }
 0x325   : > { %v4771_v19 = vpop.eup %4770  ;;  %v6284_v24 = vadd.f32 %v6259_v18, %v2210_v11 }
 0x326   : > { %2490 = vrot.lane.b32.xlu0 %v4771_v19, %s7778_s4 }
 0x327   : > { %4772 = vtanh.f32 %v6284_v24 }
 0x32c   : > { %v2213_v47 = vpop.f32.mrf.mxu1 }
 0x32d   : > { %v4773_v50 = vpop.eup %4772  ;;  %v6289_v0 = vadd.f32 %v6259_v18, %v2213_v47  ;;  %v6318_v47 = vld [vmem:[%s7685_s9] ss:$0 sm:$0xff] }
 0x32e   : > { %2492 = vrot.lane.b32.xlu2 %v4773_v50, %s7778_s4 }
 0x32f   : > { %4774 = vtanh.f32 %v6289_v0 }
 0x330   : > { %4776 = vpow2.f32 %v4556_v34  ;;  %v2573_v34 = vpop.permute.xlu2 %2572 }
 0x334   : > { %v6293_v26 = vpop.f32.mrf.mxu1 }
 0x335   : > { %v4775_v56 = vpop.eup %4774 }
 0x336   : > { %2584 = vrot.lane.b32.xlu2 %v7779_v35, %s7757_s2  ;;  %2494 = vrot.lane.b32.xlu0 %v4775_v56, %s7778_s4  ;;  %v4777_v57 = vpop.eup %4776  ;;  %v7781_v56 = vld [vmem:[#allocation14_spill] sm:$0xff] }
 0x337   : > { %v2264_v30 = vadd.f32 1.0, %v4777_v57 }
 0x339   : > { %v2287_v7 = vand.u32 2147483648, %v2264_v30  ;;  %vm2281_vm4 = vweird.f32 %v2264_v30  ;;  %v2285_v10 = vand.u32 2147483647, %v2264_v30 }
 0x33b   : > { %v2288_v63 = vor.u32 1.1754944e-38, %v2287_v7  ;;  %vm2286_vm6 = vcmp.eq.f32.partialorder %v2285_v10, 8.507059e+37 }
 0x33c   : > { %v6298_v48 = vpop.f32.mrf.mxu1 }
 0x344   : > { %v6300_v5 = vpop.f32.mrf.mxu1 }
 0x34c   : > { %v2225_v39 = vpop.f32.mrf.mxu1 }
 0x34d   : > { %v2226_v2 = vadd.f32 %v6259_v18, %v2225_v39 }
 0x34f   : > { %4778 = vtanh.f32 %v2226_v2  ;;  %v4567_v39 = vmul.f32 -1.442695, %v2226_v2  ;;  %v4561_v2 = vmul.f32 -1.442695, %v6278_v45 }
 0x350   : > { %4780 = vrcp.f32 %v2264_v30 }
 0x351   : > { %4782 = vtanh.f32 %v2196_v44 }
 0x352   : > { %4784 = vtanh.f32 %v2205_v52 }
 0x353   : > { %4786 = vpow2.f32 %v4567_v39 }
 0x355   : > { %v4779_v59 = vpop.eup %4778 }
 0x356   : > { %2502 = vrot.lane.b32.xlu1 %v4779_v59, %s7778_s4  ;;  %v4781_v12 = vpop.eup %4780  ;;  %v4557_v59 = vmul.f32 -1.442695, %v2196_v44 }
 0x357   : > { %v2277_v43 = vmul.f32 %v4781_v12, %v2264_v30  ;;  %v4783_v1 = vpop.eup %4782  ;;  %vm2282_vm15 = vweird.f32 %v4781_v12  ;;  %v4558_v30 = vmul.f32 -1.442695, %v6264_v31  ;;  %v4560_v31 = vmul.f32 -1.442695, %v2205_v52 }
 0x358   : > { %vm2283_vm5 = vmor %vm2281_vm4, %vm2282_vm15  ;;  %v4785_v37 = vpop.eup %4784 }
 0x359   : > { %v2278_v32 = vsub.f32 1.0, %v2277_v43  ;;  %4788 = vpow2.f32 %v4558_v30 }
 0x35a   : > { %4790 = vpow2.f32 %v4557_v59 }
 0x35b   : > { %v2279_v6 = vmul.f32 %v4781_v12, %v2278_v32 }
 0x35d   : > { %v2280_v61 = vadd.f32 %v4781_v12, %v2279_v6 }
 0x35e   : > { %2482 = vrot.lane.b32.xlu1 %v4783_v1, %s7778_s4  ;;  %v4559_v1 = vmul.f32 -1.442695, %v6271_v21 }
 0x35f   : > { %v2284_v13 = vsel %vm2283_vm5, %v4781_v12, %v2280_v61  ;;  %v4787_v12 = vpop.eup %4786 }
 0x360   : > { %v2289_v11 = vsel %vm2286_vm6, %v2288_v63, %v2284_v13  ;;  %v2275_v43 = vadd.f32 1.0, %v4787_v12  ;;  %v4789_v32 = vpop.eup %4788 }
 0x361   : > { %v4791_v6 = vpop.eup %4790 }
 0x362   : > { %4792 = vrcp.f32 %v2275_v43  ;;  %v6332_v61 = vadd.f32 1.0, %v4791_v6  ;;  %v2452_v12 = vand.u32 2147483648, %v2275_v43  ;;  %vm2446_vm8 = vweird.f32 %v2275_v43 }
 0x363   : > { %4794 = vpow2.f32 %v4559_v1  ;;  %v4562_v1 = vmul.f32 -1.442695, %v6284_v24  ;;  %v2450_v6 = vand.u32 2147483647, %v2275_v43 }
 0x364   : > { %vm2296_vm5 = vweird.f32 %v6332_v61 }
 0x365   : > { %vm2451_vm12 = vcmp.eq.f32.partialorder %v2450_v6, 8.507059e+37  ;;  %v2300_v6 = vand.u32 2147483647, %v6332_v61 }
 0x366   : > { %2576 = vrot.lane.b32.xlu1 %v7780_v23, %s7757_s2  ;;  %v6330_v23 = vadd.f32 1.0, %v4789_v32 }
 0x368   : > { %v4793_v7 = vpop.eup %4792  ;;  %4796 = vrcp.f32 %v6330_v23  ;;  %vm2311_vm14 = vweird.f32 %v6330_v23 }
 0x369   : > { %v4795_v44 = vpop.eup %4794  ;;  %4798 = vrcp.f32 %v6332_v61  ;;  %v2442_v10 = vmul.f32 %v4793_v7, %v2275_v43  ;;  %vm2447_vm7 = vweird.f32 %v4793_v7  ;;  %v2317_v43 = vand.u32 2147483648, %v6330_v23 }
 0x36a   : > { %4800 = vpow2.f32 %v4561_v2  ;;  %v6337_v21 = vadd.f32 1.0, %v4795_v44  ;;  %vm2448_vm9 = vmor %vm2446_vm8, %vm2447_vm7  ;;  %vm2301_vm8 = vcmp.eq.f32.partialorder %v2300_v6, 8.507059e+37 }
 0x36b   : > { %4802 = vpow2.f32 %v4560_v31 }
 0x36c   : > { %4804 = vrcp.f32 %v6337_v21 }
 0x36e   : > { %v2481_v40 = vpop.permute.xlu0 %2480  ;;  %2488 = vrot.lane.b32.xlu1 %v4785_v37, %s7778_s4  ;;  %v6339_v13 = vpop.eup %4796  ;;  %v2443_v37 = vsub.f32 1.0, %v2442_v10  ;;  %v2453_v10 = vor.u32 1.1754944e-38, %v2452_v12  ;;  %v2302_v12 = vand.u32 2147483648, %v6332_v61 }
 0x36f   : > { %v2516_v19 = vmul.f32 %v2481_v40, %v2289_v11  ;;  %v6341_v63 = vpop.eup %4798  ;;  %v2307_v45 = vmul.f32 %v6339_v13, %v6330_v23  ;;  %vm2312_vm10 = vweird.f32 %v6339_v13 }
 0x370   : > { %v4801_v40 = vpop.eup %4800  ;;  %v2444_v11 = vmul.f32 %v4793_v7, %v2443_v37  ;;  %vm2297_vm15 = vweird.f32 %v6341_v63  ;;  %vm6372_vm4 = vmor %vm2311_vm14, %vm2312_vm10  ;;  %vm2326_vm10 = vweird.f32 %v6337_v21 }
 0x371   : > { %v2532_v50 = vmul.f32 %v6313_v14, %v2516_v19  ;;  %v4803_v52 = vpop.eup %4802  ;;  %v2292_v19 = vmul.f32 %v6341_v63, %v6332_v61  ;;  %vm6386_vm6 = vmor %vm2296_vm5, %vm2297_vm15 }
 0x372   : > { %v6352_v39 = vpop.eup %4804  ;;  %v2445_v30 = vadd.f32 %v4793_v7, %v2444_v11 }
 0x373   : > { %v2548_v35 = vadd.f32 %v6318_v47, %v2532_v50  ;;  %v6348_v50 = vadd.f32 1.0, %v4801_v40  ;;  %v2293_v59 = vsub.f32 1.0, %v2292_v19  ;;  %v2322_v2 = vmul.f32 %v6352_v39, %v6337_v21 }
 0x374   : > { %v2449_v31 = vsel %vm2448_vm9, %v4793_v7, %v2445_v30  ;;  %v2315_v7 = vand.u32 2147483647, %v6330_v23  ;;  %vm2327_vm9 = vweird.f32 %v6352_v39 }
 0x375   : > { %v6324_v57 = vadd.f32 %v2573_v34, %v2548_v35  ;;  %v6350_v35 = vadd.f32 1.0, %v4803_v52  ;;  %4806 = vrcp.f32 %v6348_v50  ;;  %v2294_v44 = vmul.f32 %v6341_v63, %v2293_v59 }
 0x376   : > { %2582 = vrot.lane.b32.xlu1 %v7781_v56, %s7757_s2  ;;  %v2308_v56 = vsub.f32 1.0, %v2307_v45  ;;  %v2595_v34 = vpop.permute.xlu0 %2594  ;;  %v2323_v40 = vsub.f32 1.0, %v2322_v2  ;;  %v2454_v52 = vsel %vm2451_vm12, %v2453_v10, %v2449_v31  ;;  %v2318_v31 = vor.u32 1.1754944e-38, %v2317_v43  ;;  %vm6417_vm12 = vmor %vm2326_vm10, %vm2327_vm9 }
 0x377   : > { %4808 = vrcp.f32 %v6350_v35  ;;  %v2295_v19 = vadd.f32 %v6341_v63, %v2294_v44  ;;  %vm2316_vm7 = vcmp.eq.f32.partialorder %v2315_v7, 8.507059e+37  ;;  %vm2356_vm5 = vweird.f32 %v6348_v50 }
 0x378   : > { %v2309_v32 = vmul.f32 %v6339_v13, %v2308_v56  ;;  %4810 = vpow2.f32 %v4562_v1  ;;  %v2324_v2 = vmul.f32 %v6352_v39, %v2323_v40 }
 0x37a   : > { %v2310_v37 = vadd.f32 %v6339_v13, %v2309_v32  ;;  %v2325_v7 = vadd.f32 %v6352_v39, %v2324_v2 }
 0x37b   : > { %v6363_v24 = vpop.eup %4806 }
 0x37c   : > { %v2314_v23 = vsel %vm6372_vm4, %v6339_v13, %v2310_v37  ;;  %v2352_v1 = vmul.f32 %v6363_v24, %v6348_v50  ;;  %v2299_v13 = vsel %vm6386_vm6, %v6341_v63, %v2295_v19  ;;  %v2632_v63 = vrot.slane %v6324_v57, 4 }
 0x37d   : > { %v6370_v56 = vpop.eup %4808  ;;  %v2319_v61 = vsel %vm2316_vm7, %v2318_v31, %v2314_v23  ;;  %vm2357_vm4 = vweird.f32 %v6363_v24  ;;  %vm2341_vm7 = vweird.f32 %v6350_v35 }
 0x37e   : > { %2728 = vrot.lane.b32.xlu1 %v6324_v57, %s7757_s2  ;;  %v2485_v30 = vpop.permute.xlu0 %2484  ;;  %v4811_v10 = vpop.eup %4810  ;;  %v2337_v37 = vmul.f32 %v6370_v56, %v6350_v35  ;;  %v2353_v43 = vsub.f32 1.0, %v2352_v1  ;;  %vm2342_vm15 = vweird.f32 %v6370_v56  ;;  %vm6445_vm6 = vmor %vm2356_vm5, %vm2357_vm4 }
 0x37f   : > { %v2518_v40 = vmul.f32 %v2485_v30, %v2319_v61  ;;  %v6398_v54 = vadd.f32 1.0, %v4811_v10  ;;  %v2332_v30 = vand.u32 2147483648, %v6337_v21  ;;  %vm6465_vm9 = vmor %vm2341_vm7, %vm2342_vm15  ;;  %vm1212_vm7 = vcmp.ge.s32.totalorder %v5297_v27, 8 }
 0x380   : > { %v2338_v23 = vsub.f32 1.0, %v2337_v37  ;;  %v2354_v1 = vmul.f32 %v6363_v24, %v2353_v43 }
 0x381   : > { %4812 = vrcp.f32 %v6398_v54 }
 0x382   : > { %v2339_v37 = vmul.f32 %v6370_v56, %v2338_v23 }
 0x3c8   : > { %v2503_v45 = vpop.permute.xlu1 %2502 }
 0x3c9   : > { %v2527_v11 = vmul.f32 %v2503_v45, %v2454_v52  ;;  %v2575_v52 = vpop.permute.xlu2 %2574 }
 0x3cb   : > { %v2543_v32 = vmul.f32 %v6313_v14, %v2527_v11  ;;  %v2303_v11 = vor.u32 1.1754944e-38, %v2302_v12  ;;  %v2534_v12 = vmul.f32 %v6313_v14, %v2518_v40  ;;  %v2355_v40 = vadd.f32 %v6363_v24, %v2354_v1 }
 0x3cc   : > { %v2347_v1 = vand.u32 2147483648, %v6350_v35 }
 0x3cd   : > { %v2559_v45 = vadd.f32 %v6318_v47, %v2543_v32  ;;  %v2304_v32 = vsel %vm2301_vm8, %v2303_v11, %v2299_v13  ;;  %v2333_v11 = vor.u32 1.1754944e-38, %v2332_v30  ;;  %v2340_v30 = vadd.f32 %v6370_v56, %v2339_v37 }
 0x3cf   : > { %v6396_v59 = vadd.f32 %v2595_v34, %v2559_v45  ;;  %v2330_v34 = vand.u32 2147483647, %v6337_v21  ;;  %v2579_v21 = vpop.permute.xlu0 %2578  ;;  %v2329_v45 = vsel %vm6417_vm12, %v6352_v39, %v2325_v7  ;;  %v2360_v7 = vand.u32 2147483647, %v6348_v50 }
 0x3d0   : > { %v2483_v44 = vpop.permute.xlu1 %2482 }
 0x3d1   : > { %v2517_v19 = vmul.f32 %v2483_v44, %v2304_v32  ;;  %v2643_v36 = vrot.slane %v6396_v59, 4  ;;  %v2487_v61 = vpop.permute.xlu2 %2486  ;;  %vm2331_vm14 = vcmp.eq.f32.partialorder %v2330_v34, 8.507059e+37  ;;  %v2362_v32 = vand.u32 2147483648, %v6348_v50 }
 0x3d2   : > { %v2334_v39 = vsel %vm2331_vm14, %v2333_v11, %v2329_v45  ;;  %v2345_v50 = vand.u32 2147483647, %v6350_v35  ;;  %vm2361_vm8 = vcmp.eq.f32.partialorder %v2360_v7, 8.507059e+37  ;;  %vm2371_vm14 = vweird.f32 %v6398_v54 }
 0x3d3   : > { %v2533_v6 = vmul.f32 %v6313_v14, %v2517_v19  ;;  %v2655_v2 = vsel %vm1942_vm11, %v2643_v36, %v2632_v63  ;;  %v2519_v19 = vmul.f32 %v2487_v61, %v2334_v39  ;;  %v2363_v45 = vor.u32 1.1754944e-38, %v2362_v32 }
 0x3d4   : > { %v2656_v10 = vmul.f32 %v6136_v29, %v2655_v2  ;;  %v2550_v29 = vadd.f32 %v6318_v47, %v2534_v12  ;;  %v2359_v2 = vsel %vm6445_vm6, %v6363_v24, %v2355_v40  ;;  %v7792_v40 = vld [vmem:[#allocation16_spill] sm:$0xff]  ;;  %vm2346_vm10 = vcmp.eq.f32.partialorder %v2345_v50, 8.507059e+37 }
 0x3d5   : > { %v2549_v13 = vadd.f32 %v6318_v47, %v2533_v6  ;;  %v6454_v6 = vadd.f32 %v6259_v18, %v6293_v26  ;;  %v2535_v26 = vmul.f32 %v6313_v14, %v2519_v19  ;;  %v2364_v11 = vsel %vm2361_vm8, %v2363_v45, %v2359_v2 }
 0x3d6   : > { %2680 = vrot.lane.b32.xlu0 %v2656_v10, %s7758_s24 }
 0x3d7   : > { %v6432_v43 = vadd.f32 %v2575_v52, %v2549_v13  ;;  %v6443_v52 = vpop.eup %4812  ;;  %v2491_v13 = vpop.permute.xlu0 %2490  ;;  %4814 = vtanh.f32 %v6454_v6 }
 0x3d8   : > { %v2577_v44 = vpop.permute.xlu1 %2576  ;;  %v2367_v24 = vmul.f32 %v6443_v52, %v6398_v54  ;;  %v2521_v7 = vmul.f32 %v2491_v13, %v2364_v11  ;;  %vm2372_vm12 = vweird.f32 %v6443_v52  ;;  %v2375_v11 = vand.u32 2147483647, %v6398_v54 }
 0x3d9   : > { %v6437_v23 = vadd.f32 %v2577_v44, %v2550_v29  ;;  %v2633_v34 = vrot.slane %v6432_v43, 4  ;;  %2730 = vrot.lane.b32.xlu2 %v6432_v43, %s7757_s2  ;;  %v2348_v29 = vor.u32 1.1754944e-38, %v2347_v1  ;;  %v2551_v44 = vadd.f32 %v6318_v47, %v2535_v26  ;;  %v2581_v2 = vpop.permute.xlu2 %2580  ;;  %vm2373_vm15 = vmor %vm2371_vm14, %vm2372_vm12 }
 0x3da   : > { %v2368_v19 = vsub.f32 1.0, %v2367_v24  ;;  %vm2376_vm4 = vcmp.eq.f32.partialorder %v2375_v11, 8.507059e+37 }
 0x3db   : > { %v2634_v31 = vrot.slane %v6437_v23, 4  ;;  %v2654_v10 = vsel %vm1942_vm11, %v2632_v63, %v2633_v34  ;;  %v2344_v63 = vsel %vm6465_vm9, %v6370_v56, %v2340_v30  ;;  %v2537_v30 = vmul.f32 %v6313_v14, %v2521_v7 }
 0x3dc   : > { %v2657_v37 = vmul.f32 %v6150_v16, %v2654_v10  ;;  %v6479_v16 = vadd.f32 %v6259_v18, %v6298_v48  ;;  %v2349_v32 = vsel %vm2346_vm10, %v2348_v29, %v2344_v63  ;;  %v2369_v1 = vmul.f32 %v6443_v52, %v2368_v19 }
 0x3dd   : > { %v2653_v61 = vsel %vm1942_vm11, %v2633_v34, %v2634_v31  ;;  %v6489_v34 = vadd.f32 %v2579_v21, %v2551_v44  ;;  %v4815_v12 = vpop.eup %4814  ;;  %v2553_v21 = vadd.f32 %v6318_v47, %v2537_v30  ;;  %v2377_v63 = vand.u32 2147483648, %v6398_v54  ;;  %v7793_v44 = vld [vmem:[#allocation17_spill] sm:$0xff] }
 0x3de   : > { %2682 = vrot.lane.b32.xlu1 %v2657_v37, %s7758_s24  ;;  %2586 = vrot.lane.b32.xlu0 %v7792_v40, %s7757_s2  ;;  %v2658_v39 = vmul.f32 %v6159_v22, %v2653_v61  ;;  %4816 = vtanh.f32 %v6479_v16  ;;  %v2370_v35 = vadd.f32 %v6443_v52, %v2369_v1  ;;  %v6513_v61 = vadd.f32 %v6259_v18, %v6300_v5  ;;  %v7794_v5 = vld [vmem:[#allocation18_spill] sm:$0xff] }
 0x3df   : > { %v2635_v10 = vrot.slane %v6489_v34, 4  ;;  %vm1213_vm10 = vcmp.ge.s32.totalorder %v5308_v41, 8 }
 0x3e0   : > { %v2489_v56 = vpop.permute.xlu1 %2488  ;;  %v2374_v7 = vsel %vm2373_vm15, %v6443_v52, %v2370_v35  ;;  %4818 = vtanh.f32 %v6513_v61  ;;  %v2793_v35 = vld [vmem:[%s7686_s10 + $0x28] sm:$0xff]  ;;  %vm1214_vm15 = vcmp.ge.s32.totalorder %v5350_v38, 8 }
 0x3e1   : > { %v2520_v48 = vmul.f32 %v2489_v56, %v2349_v32  ;;  %2684 = vrot.lane.b32.xlu2 %v2658_v39, %s7758_s24  ;;  %v2652_v24 = vsel %vm1942_vm11, %v2634_v31, %v2635_v10  ;;  %v2378_v56 = vor.u32 1.1754944e-38, %v2377_v63  ;;  %v2493_v32 = vpop.permute.xlu2 %2492  ;;  %v2791_v63 = vld [vmem:[%s7686_s10 + $0x18] sm:$0xff] }
 0x3e2   : > { %v2659_v39 = vmul.f32 %v6168_v49, %v2652_v24 }
 0x3e3   : > { %v2536_v22 = vmul.f32 %v6313_v14, %v2520_v48  ;;  %v2379_v54 = vsel %vm2376_vm4, %v2378_v56, %v2374_v7  ;;  %v2788_v7 = vld [vmem:[%s7686_s10] sm:$0xff] }
 0x3e4   : > { %v4817_v13 = vpop.eup %4816  ;;  %v2522_v18 = vmul.f32 %v2493_v32, %v2379_v54 }
 0x3e5   : > { %v2552_v50 = vadd.f32 %v6318_v47, %v2536_v22 }
 0x3e6   : > { %2496 = vrot.lane.b32.xlu1 %v4815_v12, %s7778_s4  ;;  %2732 = vrot.lane.b32.xlu0 %v6437_v23, %s7757_s2  ;;  %v4819_v49 = vpop.eup %4818  ;;  %v2538_v52 = vmul.f32 %v6313_v14, %v2522_v18 }
 0x3e7   : > { %v6500_v45 = vadd.f32 %v2581_v2, %v2552_v50 }
 0x3e8   : > { %v2583_v37 = vpop.permute.xlu1 %2582  ;;  %v2554_v48 = vadd.f32 %v6318_v47, %v2538_v52 }
 0x3e9   : > { %v6504_v26 = vadd.f32 %v2583_v37, %v2553_v21  ;;  %2498 = vrot.lane.b32.xlu2 %v4817_v13, %s7778_s4  ;;  %v2636_v29 = vrot.slane %v6500_v45, 4  ;;  %v2585_v19 = vpop.permute.xlu2 %2584  ;;  %v4563_v21 = vmul.f32 -1.442695, %v6289_v0  ;;  %v2795_v13 = vld [vmem:[%s7686_s10 + $0x38] sm:$0xff]  ;;  %v2794_v37 = vld [vmem:[%s7686_s10 + $0x30] sm:$0xff]  ;;  %v2792_v0 = vld [vmem:[%s7686_s10 + $0x20] sm:$0xff] }
 0x3ea   : > { %v6537_v22 = vadd.f32 %v2585_v19, %v2554_v48 }
 0x3eb   : > { %v2637_v40 = vrot.slane %v6504_v26, 4  ;;  %v2651_v30 = vsel %vm1942_vm11, %v2635_v10, %v2636_v29  ;;  %4820 = vpow2.f32 %v4563_v21 }
 0x3ec   : > { %v2660_v12 = vmul.f32 %v6178_v58, %v2651_v30  ;;  %v2638_v1 = vrot.slane %v6537_v22, 4  ;;  %v2798_v58 = vld [vmem:[%s7686_s10 + $0x50] sm:$0xff] }
 0x3ed   : > { %v2650_v31 = vsel %vm1942_vm11, %v2636_v29, %v2637_v40  ;;  %v4565_v29 = vmul.f32 -1.442695, %v6479_v16 }
 0x3ee   : > { %2588 = vrot.lane.b32.xlu1 %v7793_v44, %s7757_s2  ;;  %2686 = vrot.lane.b32.xlu0 %v2659_v39, %s7758_s24  ;;  %v2649_v50 = vsel %vm1942_vm11, %v2637_v40, %v2638_v1  ;;  %v2661_v2 = vmul.f32 %v6191_v20, %v2650_v31  ;;  %v2797_v20 = vld [vmem:[%s7686_s10 + $0x48] sm:$0xff]  ;;  %v2790_v40 = vld [vmem:[%s7686_s10 + $0x10] sm:$0xff]  ;;  %v4564_v31 = vmul.f32 -1.442695, %v6454_v6 }
 0x3ef   : > { %v2662_v10 = vmul.f32 %v6199_v17, %v2649_v50  ;;  %v2796_v17 = vld [vmem:[%s7686_s10 + $0x40] sm:$0xff]  ;;  %v2789_v39 = vld [vmem:[%s7686_s10 + $0x8] sm:$0xff] }
 0x3f1   : > { %2590 = vrot.lane.b32.xlu2 %v7794_v5, %s7757_s2  ;;  %v4821_v24 = vpop.eup %4820 }
 0x3f2   : > { %v2271_v11 = vadd.f32 1.0, %v4821_v24 }
 0x3f4   : > { %4822 = vrcp.f32 %v2271_v11  ;;  %v2392_v30 = vand.u32 2147483648, %v2271_v11  ;;  %vm2386_vm6 = vweird.f32 %v2271_v11  ;;  %v2390_v50 = vand.u32 2147483647, %v2271_v11 }
 0x3f5   : > { %4824 = vpow2.f32 %v4565_v29 }
 0x3f6   : > { %2734 = vrot.lane.b32.xlu1 %v6489_v34, %s7757_s2  ;;  %2500 = vrot.lane.b32.xlu0 %v4819_v49, %s7778_s4  ;;  %4826 = vpow2.f32 %v4564_v31  ;;  %v4566_v49 = vmul.f32 -1.442695, %v6513_v61  ;;  %vm2391_vm9 = vcmp.eq.f32.partialorder %v2390_v50, 8.507059e+37 }
 0x3f9   : > { %2736 = vrot.lane.b32.xlu2 %v6500_v45, %s7757_s2 }
 0x3fa   : > { %v4823_v56 = vpop.eup %4822 }
 0x3fb   : > { %v4825_v32 = vpop.eup %4824  ;;  %v2382_v44 = vmul.f32 %v4823_v56, %v2271_v11  ;;  %vm2387_vm5 = vweird.f32 %v4823_v56 }
 0x3fc   : > { %v6595_v16 = vadd.f32 1.0, %v4825_v32  ;;  %v4827_v54 = vpop.eup %4826  ;;  %vm2388_vm8 = vmor %vm2386_vm6, %vm2387_vm5 }
 0x3fd   : > { %v2383_v18 = vsub.f32 1.0, %v2382_v44  ;;  %v6597_v5 = vadd.f32 1.0, %v4827_v54 }
 0x3fe   : > { %2688 = vrot.lane.b32.xlu1 %v2660_v12, %s7758_s24  ;;  %2592 = vrot.lane.b32.xlu0 %v5830_v28, %s7757_s2  ;;  %v2799_v28 = vld [vmem:[%s7686_s10 + $0x58] sm:$0xff]  ;;  %4828 = vrcp.f32 %v6595_v16  ;;  %v2495_v12 = vpop.permute.xlu0 %2494  ;;  %v2422_v54 = vand.u32 2147483648, %v6595_v16  ;;  %vm2416_vm14 = vweird.f32 %v6595_v16 }
 0x3ff   : > { %2844 = vmatpush.msra.mxu2 %v2799_v28  ;;  %v2384_v52 = vmul.f32 %v4823_v56, %v2383_v18  ;;  %4830 = vrcp.f32 %v6597_v5  ;;  %v2393_v28 = vor.u32 1.1754944e-38, %v2392_v30  ;;  %v2420_v18 = vand.u32 2147483647, %v6595_v16 }
 0x400   : > { %4832 = vpow2.f32 %v4566_v49  ;;  %vm2401_vm6 = vweird.f32 %v6597_v5 }
 0x401   : > { %2738 = vrot.lane.b32.xlu2 %v6504_v26, %s7757_s2  ;;  %2845 = vmatpush.msra.mxu2 %v2798_v58  ;;  %v2385_v48 = vadd.f32 %v4823_v56, %v2384_v52  ;;  %v6610_v58 = vsel %vm1212_vm7, 1.0, %v7776_v9  ;;  %vm2421_vm7 = vcmp.eq.f32.partialorder %v2420_v18, 8.507059e+37 }
 0x403   : > { %2846 = vmatpush.msra.mxu2 %v2797_v20  ;;  %v2389_v61 = vsel %vm2388_vm8, %v4823_v56, %v2385_v48  ;;  %v6626_v56 = vsel %vm1213_vm10, 1.0, %v7776_v9  ;;  %vm1215_vm10 = vcmp.ge.s32.totalorder %v5333_v60, 8 }
 0x404   : > { %v6602_v6 = vpop.eup %4828  ;;  %v2621_v49 = vmul.f32 %v6626_v56, %v6324_v57 }
 0x405   : > { %2847 = vmatpush.msra.mxu2 %v2796_v17  ;;  %vm2417_vm12 = vweird.f32 %v6602_v6 }
 0x406   : > { %2690 = vrot.lane.b32.xlu1 %v2661_v2, %s7758_s24  ;;  %2692 = vrot.lane.b32.xlu0 %v2662_v10, %s7758_s24  ;;  %v2412_v2 = vmul.f32 %v6602_v6, %v6595_v16  ;;  %v6607_v10 = vpop.eup %4830  ;;  %vm6638_vm4 = vmor %vm2416_vm14, %vm2417_vm12 }
 0x407   : > { %2848 = vmatpush.msra.mxu2 %v2795_v13  ;;  %v4833_v20 = vpop.eup %4832  ;;  %v2397_v21 = vmul.f32 %v6607_v10, %v6597_v5  ;;  %v2394_v13 = vsel %vm2391_vm9, %v2393_v28, %v2389_v61  ;;  %vm2402_vm5 = vweird.f32 %v6607_v10  ;;  %v2423_v28 = vor.u32 1.1754944e-38, %v2422_v54 }
 0x408   : > { %v2413_v17 = vsub.f32 1.0, %v2412_v2  ;;  %v6616_v24 = vadd.f32 1.0, %v4833_v20  ;;  %vm2403_vm8 = vmor %vm2401_vm6, %vm2402_vm5  ;;  %vm1216_vm5 = vcmp.ge.s32.totalorder %v5444_v51, 8  ;;  %vm1217_vm6 = vcmp.ge.s32.totalorder %v5397_v33, 8 }
 0x409   : > { %2849 = vmatpush.msra.mxu2 %v2794_v37  ;;  %v2523_v37 = vmul.f32 %v2495_v12, %v2394_v13  ;;  %v6656_v13 = vsel %vm1214_vm15, 1.0, %v7776_v9 }
 0x40a   : > { %4834 = vrcp.f32 %v6616_v24  ;;  %vm2431_vm14 = vweird.f32 %v6616_v24 }
 0x40b   : > { %2850 = vmatpush.msra.mxu2 %v2793_v35  ;;  %v2729_v35 = vpop.permute.xlu1 %2728  ;;  %v2539_v31 = vmul.f32 %v6313_v14, %v2523_v37  ;;  %v2405_v37 = vand.u32 2147483647, %v6597_v5 }
 0x40d   : > { %2851 = vmatpush.msra.mxu2 %v2792_v0  ;;  %v2620_v0 = vmul.f32 %v6610_v58, %v6396_v59  ;;  %v2555_v52 = vadd.f32 %v6318_v47, %v2539_v31  ;;  %vm2406_vm9 = vcmp.eq.f32.partialorder %v2405_v37, 8.507059e+37 }
 0x40e   : > { %2740 = vrot.lane.b32.xlu1 %v6537_v22, %s7757_s2 }
 0x40f   : > { %2852 = vmatpush.msra.mxu2 %v2791_v63 }
 0x410   : > { %v6650_v61 = vpop.eup %4834 }
 0x411   : > { %2853 = vmatpush.msra.mxu2 %v2790_v40  ;;  %v2414_v40 = vmul.f32 %v6602_v6, %v2413_v17  ;;  %vm2432_vm12 = vweird.f32 %v6650_v61 }
 0x412   : > { %vm2433_vm15 = vmor %vm2431_vm14, %vm2432_vm12 }
 0x413   : > { %2854 = vmatpush.msra.mxu2 %v2789_v39  ;;  %v2398_v39 = vsub.f32 1.0, %v2397_v21  ;;  %v2415_v32 = vadd.f32 %v6602_v6, %v2414_v40  ;;  %v2407_v21 = vand.u32 2147483648, %v6597_v5  ;;  %v2427_v40 = vmul.f32 %v6650_v61, %v6616_v24 }
 0x415   : > { %2855 = vmatpush.msra.mxu2 %v2788_v7  ;;  %v2399_v44 = vmul.f32 %v6607_v10, %v2398_v39  ;;  %v2419_v50 = vsel %vm6638_vm4, %v6602_v6, %v2415_v32  ;;  %v2408_v39 = vor.u32 1.1754944e-38, %v2407_v21  ;;  %v2428_v18 = vsub.f32 1.0, %v2427_v40 }
 0x416   : > { %v2435_v21 = vand.u32 2147483647, %v6616_v24 }
 0x417   : > { %v2400_v57 = vadd.f32 %v6607_v10, %v2399_v44 }
 0x418   : > { %vm2436_vm4 = vcmp.eq.f32.partialorder %v2435_v21, 8.507059e+37 }
 0x433   : > { %v2731_v19 = vpop.permute.xlu2 %2730 }
 0x43b   : > { %v2685_v63 = vpop.permute.xlu2 %2684 }
 0x443   : > { %v2499_v20 = vpop.permute.xlu2 %2498 }
 0x448   : > { %v2681_v11 = vpop.permute.xlu0 %2680 }
 0x449   : > { %v2764_v29 = vsel %vm1466_vm1, %v2620_v0, %v2681_v11  ;;  %v2404_v0 = vsel %vm2403_vm8, %v6607_v10, %v2400_v57  ;;  %v2437_v57 = vand.u32 2147483648, %v6616_v24  ;;  %vm1220_vm8 = vcmp.ge.s32.totalorder %v5469_v15, 8 }
 0x44a   : > { %v2776_v7 = vsel %vm1479_vm2, %v2764_v29, %v2729_v35  ;;  %v2424_v35 = vsel %vm2421_vm7, %v2423_v28, %v2419_v50  ;;  %v2622_v29 = vmul.f32 %v6656_v13, %v6432_v43  ;;  %v2409_v31 = vsel %vm2406_vm9, %v2408_v39, %v2404_v0 }
 0x44b   : > { %4568 = vmatmul.msk.f32.vlgmr.msra.gmra.mxu2 %vm1508_vm3, %v2776_v7  ;;  %v2591_v43 = vpop.permute.xlu2 %2590  ;;  %v6694_v28 = vsel %vm1215_vm10, 1.0, %v7776_v9  ;;  %vm1218_vm7 = vcmp.ge.s32.totalorder %v5410_v46, 8  ;;  %vm1221_vm9 = vcmp.ge.s32.totalorder %v5508_v62, 8 }
 0x44c   : > { %v2766_v7 = vsel %vm1466_vm1, %v2622_v29, %v2685_v63  ;;  %v2429_v63 = vmul.f32 %v6650_v61, %v2428_v18  ;;  %v2623_v0 = vmul.f32 %v6694_v28, %v6437_v23  ;;  %v2438_v29 = vor.u32 1.1754944e-38, %v2437_v57 }
 0x450   : > { %v2683_v30 = vpop.permute.xlu1 %2682  ;;  %v2587_v12 = vpop.permute.xlu0 %2586 }
 0x451   : > { %v2765_v16 = vsel %vm1466_vm1, %v2621_v49, %v2683_v30  ;;  %v6647_v2 = vadd.f32 %v2587_v12, %v2555_v52 }
 0x452   : > { %v2777_v17 = vsel %vm1479_vm2, %v2765_v16, %v2731_v19  ;;  %v2525_v19 = vmul.f32 %v2499_v20, %v2424_v35  ;;  %v2430_v16 = vadd.f32 %v6650_v61, %v2429_v63 }
 0x453   : > { %v2639_v6 = vrot.slane %v6647_v2, 4  ;;  %4569 = vmatmul.msk.f32.gmra.mxu2 %vm1508_vm3, %v2777_v17  ;;  %2742 = vrot.lane.b32.xlu0 %v6647_v2, %s7757_s2 }
 0x454   : > { %v2541_v44 = vmul.f32 %v6313_v14, %v2525_v19  ;;  %v2434_v19 = vsel %vm2433_vm15, %v6650_v61, %v2430_v16 }
 0x455   : > { %v2648_v11 = vsel %vm1942_vm11, %v2638_v1, %v2639_v6 }
 0x456   : > { %v2663_v5 = vmul.f32 %v6213_v42, %v2648_v11  ;;  %v2557_v42 = vadd.f32 %v6318_v47, %v2541_v44 }
 0x458   : > { %v2497_v32 = vpop.permute.xlu1 %2496  ;;  %v2733_v10 = vpop.permute.xlu0 %2732  ;;  %2694 = vrot.lane.b32.xlu2 %v2663_v5, %s7758_s24  ;;  %v6683_v52 = vadd.f32 %v2591_v43, %v2557_v42 }
 0x459   : > { %v2524_v1 = vmul.f32 %v2497_v32, %v2409_v31  ;;  %v2778_v54 = vsel %vm1479_vm2, %v2766_v7, %v2733_v10  ;;  %v2737_v31 = vpop.permute.xlu2 %2736 }
 0x45a   : > { %v2641_v20 = vrot.slane %v6683_v52, 4 }
 0x45b   : > { %v2540_v49 = vmul.f32 %v6313_v14, %v2524_v1  ;;  %4570 = vmatmul.msk.f32.gmra.mxu2 %vm1508_vm3, %v2778_v54 }
 0x45d   : > { %v2556_v48 = vadd.f32 %v6318_v47, %v2540_v49 }
 0x460   : > { %v2589_v30 = vpop.permute.xlu1 %2588  ;;  %v2687_v12 = vpop.permute.xlu0 %2686 }
 0x461   : > { %v6687_v50 = vadd.f32 %v2589_v30, %v2556_v48  ;;  %v2767_v24 = vsel %vm1466_vm1, %v2623_v0, %v2687_v12  ;;  %v2739_v30 = vpop.permute.xlu2 %2738 }
 0x463   : > { %v2640_v17 = vrot.slane %v6687_v50, 4  ;;  %2744 = vrot.lane.b32.xlu2 %v6687_v50, %s7757_s2 }
 0x465   : > { %v2647_v37 = vsel %vm1942_vm11, %v2639_v6, %v2640_v17  ;;  %v2646_v35 = vsel %vm1942_vm11, %v2640_v17, %v2641_v20  ;;  %v2439_v6 = vsel %vm2436_vm4, %v2438_v29, %v2434_v19 }
 0x466   : > { %v2664_v11 = vmul.f32 %v6220_v53, %v2647_v37  ;;  %v2665_v40 = vmul.f32 %v6229_v4, %v2646_v35  ;;  %v6718_v4 = vsel %vm1216_vm5, 1.0, %v7776_v9 }
 0x467   : > { %v2624_v7 = vmul.f32 %v6718_v4, %v6489_v34 }
 0x468   : > { %v2735_v39 = vpop.permute.xlu1 %2734  ;;  %2696 = vrot.lane.b32.xlu1 %v2664_v11, %s7758_s24  ;;  %2698 = vrot.lane.b32.xlu0 %v2665_v40, %s7758_s24  ;;  %v2501_v5 = vpop.permute.xlu0 %2500 }
 0x469   : > { %v2526_v61 = vmul.f32 %v2501_v5, %v2439_v6  ;;  %v2779_v23 = vsel %vm1479_vm2, %v2767_v24, %v2735_v39 }
 0x46a   : > { %4571 = vmatmul.msk.f32.gmra.mxu2 %vm1508_vm3, %v2779_v23 }
 0x46b   : > { %v2542_v53 = vmul.f32 %v6313_v14, %v2526_v61 }
 0x46d   : > { %v2558_v32 = vadd.f32 %v6318_v47, %v2542_v53  ;;  %v6735_v47 = vsel %vm1217_vm6, 1.0, %v7776_v9  ;;  %v6796_v53 = vsel %vm1221_vm9, 1.0, %v7776_v9 }
 0x46e   : > { %v2625_v63 = vmul.f32 %v6735_v47, %v6500_v45 }
 0x470   : > { %v2689_v10 = vpop.permute.xlu1 %2688  ;;  %2746 = vrot.lane.b32.xlu1 %v6683_v52, %s7757_s2  ;;  %v2593_v44 = vpop.permute.xlu0 %2592 }
 0x471   : > { %v2768_v1 = vsel %vm1466_vm1, %v2624_v7, %v2689_v10  ;;  %v6726_v54 = vadd.f32 %v2593_v44, %v2558_v32  ;;  %v7799_v44 = vld [vmem:[#allocation12_spill] sm:$0xff] }
 0x472   : > { %v2780_v14 = vsel %vm1479_vm2, %v2768_v1, %v2737_v31  ;;  %vm1222_vm10 = vcmp.ge.s32.totalorder %v7799_v44, 8 }
 0x473   : > { %v2642_v18 = vrot.slane %v6726_v54, 4  ;;  %2748 = vrot.lane.b32.xlu0 %v6726_v54, %s7757_s2  ;;  %4572 = vmatmul.msk.f32.gmra.mxu2 %vm1508_vm3, %v2780_v14 }
 0x475   : > { %v2645_v34 = vsel %vm1942_vm11, %v2641_v20, %v2642_v18  ;;  %v2644_v49 = vsel %vm1942_vm11, %v2642_v18, %v2643_v36  ;;  %v6753_v36 = vsel %vm1218_vm7, 1.0, %v7776_v9  ;;  %vm1219_vm11 = vcmp.ge.s32.totalorder %v5524_v55, 8 }
 0x476   : > { %v2666_v43 = vmul.f32 %v6240_v8, %v2645_v34  ;;  %v2667_v42 = vmul.f32 %v6247_v25, %v2644_v49  ;;  %v2626_v25 = vmul.f32 %v6753_v36, %v6504_v26  ;;  %v6765_v17 = vsel %vm1219_vm11, 1.0, %v7776_v9  ;;  %v7800_v49 = vld [vmem:[#allocation11_spill] sm:$0xff] }
 0x477   : > { %v2627_v37 = vmul.f32 %v6765_v17, %v6537_v22  ;;  %v6783_v22 = vsel %vm1220_vm8, 1.0, %v7776_v9  ;;  %v6809_v18 = vsel %vm1222_vm10, 1.0, %v7776_v9  ;;  %vm1223_vm12 = vcmp.ge.s32.totalorder %v7800_v49, 8 }
 0x478   : > { %v2691_v48 = vpop.permute.xlu1 %2690  ;;  %2700 = vrot.lane.b32.xlu2 %v2666_v43, %s7758_s24  ;;  %2702 = vrot.lane.b32.xlu1 %v2667_v42, %s7758_s24  ;;  %v2693_v8 = vpop.permute.xlu0 %2692  ;;  %v2628_v39 = vmul.f32 %v6783_v22, %v6647_v2  ;;  %v2629_v2 = vmul.f32 %v6796_v53, %v6687_v50  ;;  %v2630_v50 = vmul.f32 %v6809_v18, %v6683_v52 }
 0x479   : > { %v2769_v12 = vsel %vm1466_vm1, %v2625_v63, %v2691_v48  ;;  %v2770_v45 = vsel %vm1466_vm1, %v2626_v25, %v2693_v8  ;;  %v6816_v63 = vsel %vm1223_vm12, 1.0, %v7776_v9 }
 0x47a   : > { %v2781_v16 = vsel %vm1479_vm2, %v2769_v12, %v2739_v30  ;;  %v2631_v52 = vmul.f32 %v6816_v63, %v6726_v54 }
 0x47b   : > { %4573 = vmatmul.msk.f32.gmra.mxu2 %vm1508_vm3, %v2781_v16 }
 0x480   : > { %v2741_v57 = vpop.permute.xlu1 %2740  ;;  %2750 = vrot.lane.b32.xlu2 %v6396_v59, %s7757_s2  ;;  %v6775_v59 = vld [vmem:[%s7687_s11] ss:$0 sm:$0xff] }
 0x481   : > { %v2782_v20 = vsel %vm1479_vm2, %v2770_v45, %v2741_v57 }
 0x483   : > { %4574 = vmatmul.msk.f32.gmra.mxu2 %vm1508_vm3, %v2782_v20 }
 0x4b2   : > { %v2695_v21 = vpop.permute.xlu2 %2694 }
 0x4b3   : > { %v2771_v26 = vsel %vm1466_vm1, %v2627_v37, %v2695_v21 }
 0x4bd   : > { %v2745_v5 = vpop.permute.xlu2 %2744 }
 0x4c5   : > { %v2743_v35 = vpop.permute.xlu0 %2742 }
 0x4c6   : > { %v2783_v19 = vsel %vm1479_vm2, %v2771_v26, %v2743_v35 }
 0x4c7   : > { %4575 = vmatmul.msk.f32.gmra.mxu2 %vm1508_vm3, %v2783_v19 }
 0x4ce   : > { %v2857_v0 = vpop.f32.mrf.mxu2 }
 0x4cf   : > { %v6778_v11 = vadd.f32 %v6775_v59, %v2857_v0 }
 0x4d1   : > { %7797 = vst [vmem:[#allocation15_spill] sm:$0xff] %v6778_v11  ;;  %4836 = vtanh.f32 %v6778_v11 }
 0x4d2   : > { %v2701_v34 = vpop.permute.xlu2 %2700 }
 0x4d3   : > { %v2774_v42 = vsel %vm1466_vm1, %v2630_v50, %v2701_v34  ;;  %v4580_v50 = vmul.f32 -1.442695, %v6778_v11 }
 0x4d6   : > { %v2860_v40 = vpop.f32.mrf.mxu2 }
 0x4d7   : > { %v4837_v29 = vpop.eup %4836  ;;  %v6786_v24 = vadd.f32 %v6775_v59, %v2860_v40 }
 0x4d8   : > { %3145 = vrot.lane.b32.xlu1 %v4837_v29, %s7778_s4 }
 0x4d9   : > { %7798 = vst [vmem:[#allocation13_spill] sm:$0xff] %v6786_v24  ;;  %4838 = vtanh.f32 %v6786_v24 }
 0x4da   : > { %v2697_v6 = vpop.permute.xlu1 %2696  ;;  %v2699_v31 = vpop.permute.xlu0 %2698 }
 0x4db   : > { %v2772_v61 = vsel %vm1466_vm1, %v2628_v39, %v2697_v6  ;;  %v2773_v32 = vsel %vm1466_vm1, %v2629_v2, %v2699_v31  ;;  %v2751_v25 = vpop.permute.xlu2 %2750 }
 0x4dc   : > { %v2784_v23 = vsel %vm1479_vm2, %v2772_v61, %v2745_v5 }
 0x4dd   : > { %4576 = vmatmul.msk.f32.gmra.mxu2 %vm1508_vm3, %v2784_v23 }
 0x4de   : > { %v6805_v14 = vpop.f32.mrf.mxu2 }
 0x4df   : > { %v4839_v7 = vpop.eup %4838 }
 0x4e0   : > { %3147 = vrot.lane.b32.xlu2 %v4839_v7, %s7778_s4 }
 0x4e2   : > { %v2747_v10 = vpop.permute.xlu1 %2746 }
 0x4e3   : > { %v2785_v1 = vsel %vm1479_vm2, %v2773_v32, %v2747_v10 }
 0x4e5   : > { %4577 = vmatmul.msk.f32.gmra.mxu2 %vm1508_vm3, %v2785_v1  ;;  %v2749_v43 = vpop.permute.xlu0 %2748 }
 0x4e6   : > { %v2786_v48 = vsel %vm1479_vm2, %v2774_v42, %v2749_v43 }
 0x4ea   : > { %v2703_v12 = vpop.permute.xlu1 %2702 }
 0x4eb   : > { %v2775_v8 = vsel %vm1466_vm1, %v2631_v52, %v2703_v12 }
 0x4ec   : > { %v2787_v45 = vsel %vm1479_vm2, %v2775_v8, %v2751_v25 }
 0x4ed   : > { %v2866_v30 = vpop.f32.mrf.mxu2  ;;  %4578 = vmatmul.msk.f32.gmra.mxu2 %vm1508_vm3, %v2786_v48 }
 0x4ee   : > { %v6821_v16 = vadd.f32 %v6775_v59, %v2866_v30 }
 0x4f0   : > { %4840 = vtanh.f32 %v6821_v16 }
 0x4f5   : > { %4579 = vmatmul.msk.f32.gmra.mxu2 %vm1508_vm3, %v2787_v45 }
 0x4f6   : > { %v4841_v57 = vpop.eup %4840  ;;  %v2869_v20 = vpop.f32.mrf.mxu2 }
 0x4f7   : > { %v6830_v21 = vadd.f32 %v6775_v59, %v2869_v20  ;;  %3151 = vrot.lane.b32.xlu1 %v4841_v57, %s7778_s4  ;;  %v4581_v57 = vmul.f32 -1.442695, %v6786_v24 }
 0x4f9   : > { %4842 = vtanh.f32 %v6830_v21  ;;  %v4584_v29 = vmul.f32 -1.442695, %v6830_v21 }
 0x4fe   : > { %v2872_v37 = vpop.f32.mrf.mxu2 }
 0x4ff   : > { %v4843_v54 = vpop.eup %4842  ;;  %v6835_v26 = vadd.f32 %v6775_v59, %v2872_v37 }
 0x500   : > { %3153 = vrot.lane.b32.xlu2 %v4843_v54, %s7778_s4 }
 0x501   : > { %4844 = vtanh.f32 %v6835_v26 }
 0x506   : > { %v2875_v35 = vpop.f32.mrf.mxu2 }
 0x507   : > { %v4845_v19 = vpop.eup %4844  ;;  %v6840_v0 = vadd.f32 %v6775_v59, %v2875_v35 }
 0x508   : > { %3155 = vrot.lane.b32.xlu1 %v4845_v19, %s7778_s4 }
 0x509   : > { %7801 = vst [vmem:[#allocation14_spill] sm:$0xff] %v6840_v0  ;;  %4846 = vtanh.f32 %v6840_v0  ;;  %v4586_v31 = vmul.f32 -1.442695, %v6840_v0 }
 0x50a   : > { %4848 = vpow2.f32 %v4584_v29 }
 0x50f   : > { %v4847_v40 = vpop.eup %4846 }
 0x510   : > { %3157 = vrot.lane.b32.xlu1 %v4847_v40, %s7778_s4  ;;  %v4849_v39 = vpop.eup %4848 }
 0x511   : > { %v2933_v5 = vadd.f32 1.0, %v4849_v39 }
 0x513   : > { %v3012_v12 = vand.u32 2147483648, %v2933_v5  ;;  %vm3006_vm15 = vweird.f32 %v2933_v5  ;;  %v3010_v52 = vand.u32 2147483647, %v2933_v5 }
 0x515   : > { %v3013_v37 = vor.u32 1.1754944e-38, %v3012_v12  ;;  %vm3011_vm5 = vcmp.eq.f32.partialorder %v3010_v52, 8.507059e+37 }
 0x53a   : > { %v6853_v43 = vpop.permute.xlu2 %3147 }
 0x54a   : > { %v2878_v6 = vpop.f32.mrf.mxu2  ;;  %v6863_v35 = vpop.permute.xlu1 %3145 }
 0x54b   : > { %v6847_v61 = vadd.f32 %v6775_v59, %v2878_v6  ;;  %v6870_v6 = vld [vmem:[%s7688_s12] ss:$0 sm:$0xff] }
 0x54d   : > { %7802 = vst [vmem:[#allocation16_spill] sm:$0xff] %v6847_v61  ;;  %4850 = vtanh.f32 %v6847_v61 }
 0x54e   : > { %4852 = vrcp.f32 %v2933_v5 }
 0x54f   : > { %4854 = vpow2.f32 %v4586_v31 }
 0x553   : > { %v4851_v23 = vpop.eup %4850 }
 0x554   : > { %3159 = vrot.lane.b32.xlu1 %v4851_v23, %s7778_s4  ;;  %v4853_v7 = vpop.eup %4852 }
 0x555   : > { %v3002_v2 = vmul.f32 %v4853_v7, %v2933_v5  ;;  %v4855_v10 = vpop.eup %4854  ;;  %vm3007_vm14 = vweird.f32 %v4853_v7 }
 0x556   : > { %v2935_v48 = vadd.f32 1.0, %v4855_v10  ;;  %vm3008_vm4 = vmor %vm3006_vm15, %vm3007_vm14 }
 0x557   : > { %v3003_v32 = vsub.f32 1.0, %v3002_v2 }
 0x558   : > { %vm3036_vm7 = vweird.f32 %v2935_v48 }
 0x559   : > { %v3004_v1 = vmul.f32 %v4853_v7, %v3003_v32  ;;  %v6876_v32 = vld [vmem:[%s7689_s13] ss:$0 sm:$0xff] }
 0x55a   : > { %v3154_v20 = vpop.permute.xlu2 %3153 }
 0x55b   : > { %v3005_v30 = vadd.f32 %v4853_v7, %v3004_v1 }
 0x55d   : > { %v3009_v8 = vsel %vm3008_vm4, %v4853_v7, %v3005_v30 }
 0x55e   : > { %v3014_v40 = vsel %vm3011_vm5, %v3013_v37, %v3009_v8 }
 0x55f   : > { %v3185_v39 = vmul.f32 %v3154_v20, %v3014_v40  ;;  %v3040_v40 = vand.u32 2147483647, %v2935_v48 }
 0x560   : > { %v2881_v34 = vpop.f32.mrf.mxu2 }
 0x561   : > { %v6856_v42 = vadd.f32 %v6775_v59, %v2881_v34  ;;  %v3201_v7 = vmul.f32 %v6870_v6, %v3185_v39  ;;  %vm3041_vm8 = vcmp.eq.f32.partialorder %v3040_v40, 8.507059e+37 }
 0x563   : > { %7803 = vst [vmem:[#allocation17_spill] sm:$0xff] %v6856_v42  ;;  %4856 = vtanh.f32 %v6856_v42 }
 0x564   : > { %4858 = vpow2.f32 %v4580_v50  ;;  %v6882_v50 = vadd.f32 %v6876_v32, %v3201_v7 }
 0x565   : > { %4860 = vrcp.f32 %v2935_v48 }
 0x566   : > { %v3242_v8 = vmul.f32 %v6735_v47, %v6882_v50  ;;  %v6895_v47 = vadd.f32 %v6775_v59, %v6805_v14 }
 0x568   : > { %v2884_v25 = vpop.f32.mrf.mxu2 }
 0x569   : > { %v4857_v45 = vpop.eup %4856  ;;  %v6861_v54 = vadd.f32 %v6775_v59, %v2884_v25  ;;  %v6878_v10 = vpop.permute.xlu1 %3151 }
 0x56a   : > { %3161 = vrot.lane.b32.xlu1 %v4857_v45, %s7778_s4  ;;  %v4859_v19 = vpop.eup %4858 }
 0x56b   : > { %7804 = vst [vmem:[#allocation18_spill] sm:$0xff] %v6861_v54  ;;  %4862 = vtanh.f32 %v6861_v54  ;;  %v4861_v29 = vpop.eup %4860  ;;  %v2929_v5 = vadd.f32 1.0, %v4859_v19  ;;  %v3042_v19 = vand.u32 2147483648, %v2935_v48 }
 0x56c   : > { %4864 = vpow2.f32 %v4581_v57  ;;  %v3032_v23 = vmul.f32 %v4861_v29, %v2935_v48  ;;  %vm3037_vm6 = vweird.f32 %v4861_v29 }
 0x56d   : > { %4866 = vrcp.f32 %v2929_v5  ;;  %vm3038_vm11 = vmor %vm3036_vm7, %vm3037_vm6  ;;  %v2952_v40 = vand.u32 2147483648, %v2929_v5  ;;  %vm2946_vm10 = vweird.f32 %v2929_v5 }
 0x56e   : > { %v3033_v34 = vsub.f32 1.0, %v3032_v23 }
 0x570   : > { %v2887_v31 = vpop.f32.mrf.mxu2  ;;  %v3034_v12 = vmul.f32 %v4861_v29, %v3033_v34 }
 0x571   : > { %v4863_v2 = vpop.eup %4862  ;;  %v6901_v14 = vadd.f32 %v6775_v59, %v2887_v31 }
 0x572   : > { %3163 = vrot.lane.b32.xlu1 %v4863_v2, %s7778_s4  ;;  %v4865_v1 = vpop.eup %4864  ;;  %v3035_v20 = vadd.f32 %v4861_v29, %v3034_v12  ;;  %v3043_v2 = vor.u32 1.1754944e-38, %v3042_v19 }
 0x573   : > { %v2930_v30 = vadd.f32 1.0, %v4865_v1  ;;  %v4867_v25 = vpop.eup %4866  ;;  %7806 = vst [vmem:[#allocation11_spill] sm:$0xff] %v6901_v14 }
 0x574   : > { %v2942_v37 = vmul.f32 %v4867_v25, %v2929_v5  ;;  %v3039_v39 = vsel %vm3038_vm11, %v4861_v29, %v3035_v20  ;;  %vm2947_vm9 = vweird.f32 %v4867_v25 }
 0x575   : > { %4868 = vrcp.f32 %v2930_v30  ;;  %v3044_v34 = vsel %vm3041_vm8, %v3043_v2, %v3039_v39  ;;  %v2950_v39 = vand.u32 2147483647, %v2929_v5  ;;  %vm2948_vm12 = vmor %vm2946_vm10, %vm2947_vm9  ;;  %vm2961_vm4 = vweird.f32 %v2930_v30 }
 0x576   : > { %v2943_v7 = vsub.f32 1.0, %v2942_v37 }
 0x577   : > { %vm2951_vm14 = vcmp.eq.f32.partialorder %v2950_v39, 8.507059e+37 }
 0x578   : > { %v2890_v52 = vpop.f32.mrf.mxu2  ;;  %v2944_v48 = vmul.f32 %v4867_v25, %v2943_v7  ;;  %v2953_v7 = vor.u32 1.1754944e-38, %v2952_v40 }
 0x579   : > { %v6887_v45 = vadd.f32 %v6775_v59, %v2890_v52 }
 0x57a   : > { %3271 = vrot.lane.b32.xlu1 %v3242_v8, %s7758_s24  ;;  %v6890_v57 = vpop.permute.xlu1 %3155  ;;  %v2945_v37 = vadd.f32 %v4867_v25, %v2944_v48 }
 0x57b   : > { %7805 = vst [vmem:[#allocation12_spill] sm:$0xff] %v6887_v45  ;;  %4870 = vtanh.f32 %v6887_v45  ;;  %v4869_v23 = vpop.eup %4868 }
 0x57c   : > { %4872 = vtanh.f32 %v6895_v47  ;;  %v2957_v8 = vmul.f32 %v4869_v23, %v2930_v30  ;;  %v2949_v31 = vsel %vm2948_vm12, %v4867_v25, %v2945_v37  ;;  %vm2962_vm15 = vweird.f32 %v4869_v23 }
 0x57d   : > { %4874 = vtanh.f32 %v6901_v14  ;;  %vm2963_vm5 = vmor %vm2961_vm4, %vm2962_vm15 }
 0x57e   : > { %v2958_v20 = vsub.f32 1.0, %v2957_v8 }
 0x580   : > { %v2959_v59 = vmul.f32 %v4869_v23, %v2958_v20 }
 0x581   : > { %v4871_v1 = vpop.eup %4870 }
 0x582   : > { %3167 = vrot.lane.b32.xlu0 %v4871_v1, %s7778_s4  ;;  %v3158_v12 = vpop.permute.xlu1 %3157  ;;  %v4873_v19 = vpop.eup %4872  ;;  %v2960_v2 = vadd.f32 %v4869_v23, %v2959_v59  ;;  %v4589_v59 = vmul.f32 -1.442695, %v6861_v54 }
 0x583   : > { %v3187_v52 = vmul.f32 %v3158_v12, %v3044_v34  ;;  %v4875_v34 = vpop.eup %4874  ;;  %v2967_v12 = vand.u32 2147483648, %v2930_v30 }
 0x584   : > { %v2964_v5 = vsel %vm2963_vm5, %v4869_v23, %v2960_v2 }
 0x585   : > { %v3203_v3 = vmul.f32 %v6870_v6, %v3187_v52  ;;  %v2965_v52 = vand.u32 2147483647, %v2930_v30  ;;  %v2968_v48 = vor.u32 1.1754944e-38, %v2967_v12 }
 0x587   : > { %v6904_v29 = vadd.f32 %v6876_v32, %v3203_v3  ;;  %v2954_v3 = vsel %vm2951_vm14, %v2953_v7, %v2949_v31  ;;  %vm2966_vm6 = vcmp.eq.f32.partialorder %v2965_v52, 8.507059e+37 }
 0x588   : > { %v3181_v1 = vmul.f32 %v6863_v35, %v2954_v3  ;;  %v2969_v25 = vsel %vm2966_vm6, %v2968_v48, %v2964_v5  ;;  %v4587_v35 = vmul.f32 -1.442695, %v6847_v61 }
 0x589   : > { %3321 = vrot.lane.b32.xlu1 %v6904_v29, %s7757_s2  ;;  %v3182_v20 = vmul.f32 %v6853_v43, %v2969_v25  ;;  %v4591_v25 = vmul.f32 -1.442695, %v6887_v45 }
 0x58a   : > { %3149 = vrot.lane.b32.xlu0 %v4873_v19, %s7778_s4  ;;  %v3197_v8 = vmul.f32 %v6870_v6, %v3181_v1  ;;  %4876 = vpow2.f32 %v4587_v35 }
 0x58b   : > { %v3198_v30 = vmul.f32 %v6870_v6, %v3182_v20 }
 0x58c   : > { %v6915_v37 = vadd.f32 %v6876_v32, %v3197_v8 }
 0x58d   : > { %v6922_v23 = vadd.f32 %v6876_v32, %v3198_v30 }
 0x590   : > { %v4877_v19 = vpop.eup %4876 }
 0x591   : > { %v2936_v40 = vadd.f32 1.0, %v4877_v19 }
 0x592   : > { %3165 = vrot.lane.b32.xlu0 %v4875_v34, %s7778_s4 }
 0x593   : > { %4878 = vrcp.f32 %v2936_v40  ;;  %v3057_v2 = vand.u32 2147483648, %v2936_v40  ;;  %vm3051_vm11 = vweird.f32 %v2936_v40  ;;  %v3055_v34 = vand.u32 2147483647, %v2936_v40 }
 0x594   : > { %4880 = vpow2.f32 %v4589_v59  ;;  %v4583_v59 = vmul.f32 -1.442695, %v6821_v16 }
 0x595   : > { %v3058_v5 = vor.u32 1.1754944e-38, %v3057_v2  ;;  %vm3056_vm9 = vcmp.eq.f32.partialorder %v3055_v34, 8.507059e+37  ;;  %v4590_v2 = vmul.f32 -1.442695, %v6901_v14 }
 0x599   : > { %v4879_v43 = vpop.eup %4878 }
 0x59a   : > { %3309 = vrot.lane.b32.xlu0 %v6915_v37, %s7757_s2  ;;  %v3047_v39 = vmul.f32 %v4879_v43, %v2936_v40  ;;  %vm3052_vm7 = vweird.f32 %v4879_v43  ;;  %v4881_v1 = vpop.eup %4880 }
 0x59b   : > { %vm3053_vm8 = vmor %vm3051_vm11, %vm3052_vm7  ;;  %v2938_v52 = vadd.f32 1.0, %v4881_v1 }
 0x59c   : > { %v3048_v31 = vsub.f32 1.0, %v3047_v39 }
 0x59d   : > { %4882 = vrcp.f32 %v2938_v52  ;;  %vm3081_vm12 = vweird.f32 %v2938_v52 }
 0x59e   : > { %v3049_v7 = vmul.f32 %v4879_v43, %v3048_v31  ;;  %4884 = vpow2.f32 %v4591_v25 }
 0x5a0   : > { %v3050_v3 = vadd.f32 %v4879_v43, %v3049_v7 }
 0x5a2   : > { %3311 = vrot.lane.b32.xlu0 %v6922_v23, %s7757_s2  ;;  %v3054_v12 = vsel %vm3053_vm8, %v4879_v43, %v3050_v3  ;;  %v4582_v43 = vmul.f32 -1.442695, %v6895_v47 }
 0x5a3   : > { %v3059_v8 = vsel %vm3056_vm9, %v3058_v5, %v3054_v12  ;;  %v4883_v40 = vpop.eup %4882 }
 0x5a4   : > { %v4885_v39 = vpop.eup %4884  ;;  %v3077_v31 = vmul.f32 %v4883_v40, %v2938_v52  ;;  %4886 = vpow2.f32 %v4582_v43  ;;  %vm3082_vm10 = vweird.f32 %v4883_v40 }
 0x5a5   : > { %v2940_v7 = vadd.f32 1.0, %v4885_v39  ;;  %4888 = vpow2.f32 %v4583_v59  ;;  %vm3083_vm14 = vmor %vm3081_vm12, %vm3082_vm10 }
 0x5a6   : > { %v3078_v3 = vsub.f32 1.0, %v3077_v31 }
 0x5a7   : > { %4890 = vrcp.f32 %v2940_v7  ;;  %vm3111_vm5 = vweird.f32 %v2940_v7 }
 0x5a8   : > { %v3079_v34 = vmul.f32 %v4883_v40, %v3078_v3  ;;  %4892 = vpow2.f32 %v4590_v2 }
 0x5aa   : > { %v4887_v1 = vpop.eup %4886 }
 0x5ab   : > { %v4889_v12 = vpop.eup %4888 }
 0x5ac   : > { %v6942_v25 = vadd.f32 1.0, %v4889_v12 }
 0x5ae   : > { %vm2991_vm12 = vweird.f32 %v6942_v25 }
 0x5c6   : > { %v3160_v48 = vpop.permute.xlu1 %3159 }
 0x5c7   : > { %v3188_v20 = vmul.f32 %v3160_v48, %v3059_v8  ;;  %v3080_v8 = vadd.f32 %v4883_v40, %v3079_v34  ;;  %v4891_v48 = vpop.eup %4890 }
 0x5c8   : > { %v4893_v43 = vpop.eup %4892  ;;  %v3107_v59 = vmul.f32 %v4891_v48, %v2940_v7  ;;  %vm3112_vm4 = vweird.f32 %v4891_v48 }
 0x5c9   : > { %v3204_v35 = vmul.f32 %v6870_v6, %v3188_v20  ;;  %v3087_v20 = vand.u32 2147483648, %v2938_v52  ;;  %v3084_v39 = vsel %vm3083_vm14, %v4883_v40, %v3080_v8  ;;  %v6947_v3 = vadd.f32 1.0, %v4893_v43  ;;  %vm3113_vm6 = vmor %vm3111_vm5, %vm3112_vm4 }
 0x5ca   : > { %v3108_v12 = vsub.f32 1.0, %v3107_v59 }
 0x5cb   : > { %v6930_v30 = vadd.f32 %v6876_v32, %v3204_v35  ;;  %v4585_v35 = vmul.f32 -1.442695, %v6835_v26  ;;  %v3088_v31 = vor.u32 1.1754944e-38, %v3087_v20 }
 0x5cc   : > { %v3109_v20 = vmul.f32 %v4891_v48, %v3108_v12 }
 0x5cd   : > { %v3245_v19 = vmul.f32 %v6783_v22, %v6930_v30  ;;  %v6938_v22 = vadd.f32 1.0, %v4887_v1 }
 0x5cf   : > { %3277 = vrot.lane.b32.xlu1 %v3245_v19, %s7758_s24  ;;  %v3085_v19 = vand.u32 2147483647, %v2938_v52  ;;  %4894 = vrcp.f32 %v6938_v22  ;;  %vm2976_vm8 = vweird.f32 %v6938_v22 }
 0x5d0   : > { %4896 = vrcp.f32 %v6942_v25 }
 0x5d1   : > { %4898 = vpow2.f32 %v4585_v35  ;;  %vm3086_vm15 = vcmp.eq.f32.partialorder %v3085_v19, 8.507059e+37 }
 0x5d2   : > { %v3089_v2 = vsel %vm3086_vm15, %v3088_v31, %v3084_v39  ;;  %4900 = vrcp.f32 %v6947_v3  ;;  %v3110_v39 = vadd.f32 %v4891_v48, %v3109_v20 }
 0x5d5   : > { %v4895_v61 = vpop.eup %4894 }
 0x5d6   : > { %v6950_v54 = vpop.eup %4896  ;;  %v2972_v35 = vmul.f32 %v4895_v61, %v6938_v22  ;;  %vm2977_vm11 = vweird.f32 %v4895_v61 }
 0x5d7   : > { %v4899_v40 = vpop.eup %4898  ;;  %v2987_v43 = vmul.f32 %v6950_v54, %v6942_v25  ;;  %vm2992_vm9 = vweird.f32 %v6950_v54  ;;  %vm6978_vm10 = vmor %vm2976_vm8, %vm2977_vm11 }
 0x5d8   : > { %v6959_v19 = vadd.f32 1.0, %v4899_v40  ;;  %v2973_v59 = vsub.f32 1.0, %v2972_v35  ;;  %v6963_v31 = vpop.eup %4900  ;;  %vm6992_vm14 = vmor %vm2991_vm12, %vm2992_vm9 }
 0x5d9   : > { %v2988_v12 = vsub.f32 1.0, %v2987_v43  ;;  %v3092_v0 = vmul.f32 %v6963_v31, %v6947_v3  ;;  %v2982_v43 = vand.u32 2147483648, %v6938_v22  ;;  %vm3097_vm4 = vweird.f32 %v6963_v31 }
 0x5da   : > { %4902 = vrcp.f32 %v6959_v19  ;;  %v2974_v40 = vmul.f32 %v4895_v61, %v2973_v59  ;;  %vm3021_vm9 = vweird.f32 %v6959_v19 }
 0x5db   : > { %v2989_v20 = vmul.f32 %v6950_v54, %v2988_v12 }
 0x5dc   : > { %v6940_v5 = vpop.permute.xlu1 %3161 }
 0x5dd   : > { %v2990_v59 = vadd.f32 %v6950_v54, %v2989_v20 }
 0x5e0   : > { %v6970_v45 = vpop.eup %4902 }
 0x5e1   : > { %vm3022_vm8 = vweird.f32 %v6970_v45 }
 0x5e4   : > { %v3164_v1 = vpop.permute.xlu1 %3163 }
 0x5e5   : > { %v3190_v34 = vmul.f32 %v3164_v1, %v3089_v2  ;;  %v3117_v2 = vand.u32 2147483648, %v2940_v7  ;;  %v4588_v1 = vmul.f32 -1.442695, %v6856_v42  ;;  %v2975_v42 = vadd.f32 %v4895_v61, %v2974_v40 }
 0x5e7   : > { %v3206_v52 = vmul.f32 %v6870_v6, %v3190_v34  ;;  %v3115_v34 = vand.u32 2147483647, %v2940_v7  ;;  %v3118_v11 = vor.u32 1.1754944e-38, %v3117_v2  ;;  %4904 = vpow2.f32 %v4588_v1 }
 0x5e8   : > { %v3093_v7 = vsub.f32 1.0, %v3092_v0  ;;  %v3017_v0 = vmul.f32 %v6970_v45, %v6959_v19  ;;  %v2997_v1 = vand.u32 2147483648, %v6942_v25 }
 0x5e9   : > { %v6954_v8 = vadd.f32 %v6876_v32, %v3206_v52  ;;  %v3114_v52 = vsel %vm3113_vm6, %v4891_v48, %v3110_v39  ;;  %vm3116_vm7 = vcmp.eq.f32.partialorder %v3115_v34, 8.507059e+37  ;;  %v2980_v39 = vand.u32 2147483647, %v6938_v22 }
 0x5ea   : > { %v3119_v24 = vsel %vm3116_vm7, %v3118_v11, %v3114_v52  ;;  %v3094_v22 = vmul.f32 %v6963_v31, %v3093_v7  ;;  %v2983_v34 = vor.u32 1.1754944e-38, %v2982_v43  ;;  %v2995_v52 = vand.u32 2147483647, %v6942_v25 }
 0x5eb   : > { %3327 = vrot.lane.b32.xlu1 %v6954_v8, %s7757_s2  ;;  %vm2981_vm15 = vcmp.eq.f32.partialorder %v2980_v39, 8.507059e+37  ;;  %v3018_v7 = vsub.f32 1.0, %v3017_v0  ;;  %v2998_v25 = vor.u32 1.1754944e-38, %v2997_v1  ;;  %v3102_v39 = vand.u32 2147483648, %v6947_v3 }
 0x5ec   : > { %vm2996_vm5 = vcmp.eq.f32.partialorder %v2995_v52, 8.507059e+37  ;;  %vm3096_vm6 = vweird.f32 %v6947_v3 }
 0x5ed   : > { %vm3098_vm7 = vmor %vm3096_vm6, %vm3097_vm4  ;;  %vm1248_vm6 = vcmp.ge.s32.totalorder %v5297_v27, 16 }
 0x5f4   : > { %v3168_v35 = vpop.permute.xlu0 %3167 }
 0x5f5   : > { %v3192_v14 = vmul.f32 %v3168_v35, %v3119_v24  ;;  %v4905_v24 = vpop.eup %4904 }
 0x5f6   : > { %v6999_v20 = vadd.f32 1.0, %v4905_v24  ;;  %v3019_v24 = vmul.f32 %v6970_v45, %v3018_v7 }
 0x5f7   : > { %v3208_v48 = vmul.f32 %v6870_v6, %v3192_v14  ;;  %v2979_v14 = vsel %vm6978_vm10, %v4895_v61, %v2975_v42  ;;  %v2994_v61 = vsel %vm6992_vm14, %v6950_v54, %v2990_v59  ;;  %v3100_v54 = vand.u32 2147483647, %v6947_v3  ;;  %vm3023_vm10 = vmor %vm3021_vm9, %vm3022_vm8 }
 0x5f8   : > { %v2984_v42 = vsel %vm2981_vm15, %v2983_v34, %v2979_v14  ;;  %4906 = vrcp.f32 %v6999_v20  ;;  %v2999_v59 = vsel %vm2996_vm5, %v2998_v25, %v2994_v61  ;;  %v3238_v3 = vmul.f32 %v6626_v56, %v6915_v37 }
 0x5f9   : > { %v6985_v2 = vadd.f32 %v6876_v32, %v3208_v48  ;;  %v3095_v48 = vadd.f32 %v6963_v31, %v3094_v22  ;;  %v3184_v11 = vmul.f32 %v6878_v10, %v2999_v59  ;;  %v3103_v22 = vor.u32 1.1754944e-38, %v3102_v39 }
 0x5fa   : > { %vm3101_vm11 = vcmp.eq.f32.partialorder %v3100_v54, 8.507059e+37  ;;  %v3020_v10 = vadd.f32 %v6970_v45, %v3019_v24  ;;  %v3025_v61 = vand.u32 2147483647, %v6959_v19  ;;  %vm3066_vm15 = vweird.f32 %v6999_v20 }
 0x5fb   : > { %v3237_v40 = vmul.f32 %v6610_v58, %v6985_v2  ;;  %v3099_v14 = vsel %vm3098_vm7, %v6963_v31, %v3095_v48  ;;  %v3200_v12 = vmul.f32 %v6870_v6, %v3184_v11  ;;  %v3070_v24 = vand.u32 2147483647, %v6999_v20 }
 0x5fc   : > { %v3150_v35 = vpop.permute.xlu0 %3149  ;;  %v3104_v34 = vsel %vm3101_vm11, %v3103_v22, %v3099_v14  ;;  %vm3026_vm12 = vcmp.eq.f32.partialorder %v3025_v61, 8.507059e+37  ;;  %v3369_v61 = vld [vmem:[%s7690_s14] sm:$0xff]  ;;  %vm1249_vm7 = vcmp.ge.s32.totalorder %v5308_v41, 16  ;;  %vm1250_vm11 = vcmp.ge.s32.totalorder %v5350_v38, 16 }
 0x5fd   : > { %v3183_v43 = vmul.f32 %v3150_v35, %v2984_v42  ;;  %3261 = vrot.lane.b32.xlu2 %v3237_v40, %s7758_s24  ;;  %v3027_v40 = vand.u32 2147483648, %v6959_v19  ;;  %v7031_v42 = vadd.f32 %v6876_v32, %v3200_v12  ;;  %v3024_v35 = vsel %vm3023_vm10, %v6970_v45, %v3020_v10  ;;  %v3375_v12 = vld [vmem:[%s7690_s14 + $0x30] sm:$0xff] }
 0x5fe   : > { %v4907_v31 = vpop.eup %4906  ;;  %v3239_v19 = vmul.f32 %v6656_v13, %v6922_v23  ;;  %vm3071_vm5 = vcmp.eq.f32.partialorder %v3070_v24, 8.507059e+37  ;;  %v3244_v10 = vmul.f32 %v6765_v17, %v6904_v29  ;;  %v3371_v17 = vld [vmem:[%s7690_s14 + $0x10] sm:$0xff]  ;;  %v4510_v41 = vsel %vm1250_vm11, 1.0, %v7776_v9 }
 0x5ff   : > { %v3199_v58 = vmul.f32 %v6870_v6, %v3183_v43  ;;  %v3062_v7 = vmul.f32 %v4907_v31, %v6999_v20  ;;  %v3028_v48 = vor.u32 1.1754944e-38, %v3027_v40  ;;  %vm3067_vm14 = vweird.f32 %v4907_v31  ;;  %v3370_v40 = vld [vmem:[%s7690_s14 + $0x8] sm:$0xff] }
 0x600   : > { %vm3068_vm4 = vmor %vm3066_vm15, %vm3067_vm14  ;;  %vm1251_vm8 = vcmp.ge.s32.totalorder %v5333_v60, 16  ;;  %vm1252_vm9 = vcmp.ge.s32.totalorder %v5444_v51, 16  ;;  %vm1253_vm10 = vcmp.ge.s32.totalorder %v5397_v33, 16  ;;  %vm1255_vm14 = vcmp.ge.s32.totalorder %v5524_v55, 16 }
 0x601   : > { %v7015_v0 = vadd.f32 %v6876_v32, %v3199_v58  ;;  %v3029_v39 = vsel %vm3026_vm12, %v3028_v48, %v3024_v35  ;;  %v3063_v45 = vsub.f32 1.0, %v3062_v7  ;;  %v4508_v35 = vsel %vm1248_vm6, 1.0, %v7776_v9 }
 0x602   : > { %v3186_v58 = vmul.f32 %v6890_v57, %v3029_v39  ;;  %v3072_v57 = vand.u32 2147483648, %v6999_v20  ;;  %v4512_v60 = vsel %vm1252_vm9, 1.0, %v7776_v9  ;;  %v4513_v51 = vsel %vm1253_vm10, 1.0, %v7776_v9 }
 0x603   : > { %3313 = vrot.lane.b32.xlu0 %v7015_v0, %s7757_s2  ;;  %v3064_v59 = vmul.f32 %v4907_v31, %v3063_v45  ;;  %v3240_v13 = vmul.f32 %v6694_v28, %v7015_v0  ;;  %vm1254_vm12 = vcmp.ge.s32.totalorder %v5410_v46, 16  ;;  %v4515_v46 = vsel %vm1255_vm14, 1.0, %v7776_v9 }
 0x604   : > { %v3166_v1 = vpop.permute.xlu0 %3165  ;;  %v3202_v54 = vmul.f32 %v6870_v6, %v3186_v58  ;;  %v3073_v22 = vor.u32 1.1754944e-38, %v3072_v57  ;;  %v4511_v57 = vsel %vm1251_vm8, 1.0, %v7776_v9  ;;  %vm1256_vm15 = vcmp.ge.s32.totalorder %v5469_v15, 16 }
 0x605   : > { %v3191_v52 = vmul.f32 %v3166_v1, %v3104_v34  ;;  %3263 = vrot.lane.b32.xlu2 %v3238_v3, %s7758_s24  ;;  %v3241_v3 = vmul.f32 %v6718_v4, %v7031_v42  ;;  %v3379_v34 = vld [vmem:[%s7690_s14 + $0x50] sm:$0xff]  ;;  %v3228_v24 = vmul.f32 %v4511_v57, %v6922_v23  ;;  %v4516_v55 = vsel %vm1256_vm15, 1.0, %v7776_v9 }
 0x606   : > { %v7053_v11 = vadd.f32 %v6876_v32, %v3202_v54  ;;  %v3227_v54 = vmul.f32 %v4510_v41, %v6915_v37  ;;  %vm1259_vm6 = vcmp.ge.s32.totalorder %v7800_v49, 16  ;;  %v7208_v49 = vld [vmem:[%s7691_s15] ss:$0 sm:$0xff] }
 0x607   : > { %v3207_v56 = vmul.f32 %v6870_v6, %v3191_v52  ;;  %v3374_v52 = vld [vmem:[%s7690_s14 + $0x28] sm:$0xff] }
 0x608   : > { %v3243_v28 = vmul.f32 %v6753_v36, %v7053_v11  ;;  %v3380_v36 = vld [vmem:[%s7690_s14 + $0x58] sm:$0xff] }
 0x609   : > { %v7036_v43 = vadd.f32 %v6876_v32, %v3207_v56  ;;  %3425 = vmatpush.msra.mxu3 %v3380_v36  ;;  %v3247_v56 = vmul.f32 %v6809_v18, %v6954_v8 }
 0x60b   : > { %3315 = vrot.lane.b32.xlu0 %v7031_v42, %s7757_s2  ;;  %v3248_v25 = vmul.f32 %v6816_v63, %v7036_v43  ;;  %v3065_v63 = vadd.f32 %v4907_v31, %v3064_v59  ;;  %3426 = vmatpush.msra.mxu3 %v3379_v34  ;;  %v3225_v48 = vmul.f32 %v4508_v35, %v7036_v43 }
 0x60c   : > { %v3310_v7 = vpop.permute.xlu0 %3309 }
 0x60d   : > { %3265 = vrot.lane.b32.xlu2 %v3239_v19, %s7758_s24  ;;  %3283 = vrot.lane.b32.xlu1 %v3248_v25, %s7758_s24  ;;  %v3069_v14 = vsel %vm3068_vm4, %v4907_v31, %v3065_v63  ;;  %v3372_v31 = vld [vmem:[%s7690_s14 + $0x18] sm:$0xff]  ;;  %vm1257_vm4 = vcmp.ge.s32.totalorder %v5508_v62, 16 }
 0x60e   : > { %v3074_v1 = vsel %vm3071_vm5, %v3073_v22, %v3069_v14  ;;  %v3229_v22 = vmul.f32 %v4512_v60, %v7015_v0  ;;  %v4514_v0 = vsel %vm1254_vm12, 1.0, %v7776_v9  ;;  %vm1258_vm5 = vcmp.ge.s32.totalorder %v7799_v44, 16 }
 0x60f   : > { %v4518_v62 = vsel %vm1258_vm5, 1.0, %v7776_v9  ;;  %v4519_v44 = vsel %vm1259_vm6, 1.0, %v7776_v9 }
 0x613   : > { %3317 = vrot.lane.b32.xlu0 %v6882_v50, %s7757_s2 }
 0x614   : > { %v3312_v58 = vpop.permute.xlu0 %3311 }
 0x615   : > { %3267 = vrot.lane.b32.xlu2 %v3240_v13, %s7758_s24  ;;  %3826 = vrot.lane.b32.xlu1 %v6830_v21, %s7757_s2  ;;  %v3189_v21 = vmul.f32 %v6940_v5, %v3074_v1  ;;  %v3376_v5 = vld [vmem:[%s7690_s14 + $0x38] sm:$0xff] }
 0x617   : > { %v3205_v20 = vmul.f32 %v6870_v6, %v3189_v21  ;;  %v3378_v6 = vld [vmem:[%s7690_s14 + $0x48] sm:$0xff]  ;;  %v3272_v21 = vpop.permute.xlu1 %3271 }
 0x618   : > { %3427 = vmatpush.msra.mxu3 %v3378_v6 }
 0x619   : > { %v7080_v4 = vadd.f32 %v6876_v32, %v3205_v20  ;;  %v3230_v20 = vmul.f32 %v4513_v51, %v7031_v42  ;;  %v7813_v51 = vld [vmem:[#allocation13_spill] sm:$0xff] }
 0x61b   : > { %3273 = vrot.lane.b32.xlu0 %v3243_v28, %s7758_s24  ;;  %v3246_v32 = vmul.f32 %v6796_v53, %v7080_v4  ;;  %v3373_v53 = vld [vmem:[%s7690_s14 + $0x20] sm:$0xff]  ;;  %v3350_v34 = vsel %vm1466_vm1, %v3230_v20, %v3272_v21  ;;  %v7814_v20 = vld [vmem:[#allocation15_spill] sm:$0xff] }
 0x61d   : > { %3822 = vrot.lane.b32.xlu1 %v6895_v47, %s7757_s2  ;;  %3269 = vrot.lane.b32.xlu2 %v3241_v3, %s7758_s24  ;;  %v3377_v47 = vld [vmem:[%s7690_s14 + $0x40] sm:$0xff] }
 0x61e   : > { %3428 = vmatpush.msra.mxu3 %v3377_v47  ;;  %v3231_v47 = vmul.f32 %v4514_v0, %v6882_v50  ;;  %v7815_v0 = vld [vmem:[#allocation14_spill] sm:$0xff] }
 0x620   : > { %3429 = vmatpush.msra.mxu3 %v3376_v5 }
 0x622   : > { %3430 = vmatpush.msra.mxu3 %v3375_v12 }
 0x623   : > { %3323 = vrot.lane.b32.xlu0 %v6930_v30, %s7757_s2 }
 0x624   : > { %3431 = vmatpush.msra.mxu3 %v3374_v52 }
 0x625   : > { %3319 = vrot.lane.b32.xlu2 %v7053_v11, %s7757_s2 }
 0x626   : > { %3432 = vmatpush.msra.mxu3 %v3373_v53 }
 0x628   : > { %3433 = vmatpush.msra.mxu3 %v3372_v31 }
 0x62a   : > { %3434 = vmatpush.msra.mxu3 %v3371_v17  ;;  %v3233_v17 = vmul.f32 %v4516_v55, %v6904_v29 }
 0x62b   : > { %3279 = vrot.lane.b32.xlu0 %v3246_v32, %s7758_s24  ;;  %v3322_v32 = vpop.permute.xlu1 %3321 }
 0x62c   : > { %3435 = vmatpush.msra.mxu3 %v3370_v40 }
 0x62d   : > { %3275 = vrot.lane.b32.xlu2 %v3244_v10, %s7758_s24  ;;  %v3232_v10 = vmul.f32 %v4515_v46, %v7053_v11  ;;  %v4517_v11 = vsel %vm1257_vm4, 1.0, %v7776_v9 }
 0x62e   : > { %3436 = vmatpush.msra.mxu3 %v3369_v61  ;;  %v3234_v35 = vmul.f32 %v4517_v11, %v6930_v30 }
 0x633   : > { %3329 = vrot.lane.b32.xlu0 %v7036_v43, %s7757_s2 }
 0x635   : > { %3325 = vrot.lane.b32.xlu2 %v7080_v4, %s7757_s2 }
 0x63d   : > { %3281 = vrot.lane.b32.xlu2 %v3247_v56, %s7758_s24  ;;  %s5066_s24 = smov 16  }
 0x641   : > { %v3278_v31 = vpop.permute.xlu1 %3277 }
 0x642   : > { %v3353_v61 = vsel %vm1466_vm1, %v3233_v17, %v3278_v31 }
 0x645   : > { %3331 = vrot.lane.b32.xlu2 %v6985_v2, %s7757_s2 }
 0x64d   : > { %3828 = vrot.lane.b32.xlu2 %v6835_v26, %s7757_s2  ;;  %v4509_v26 = vsel %vm1249_vm7, 1.0, %v7776_v9 }
 0x64e   : > { %v3226_v27 = vmul.f32 %v4509_v26, %v6985_v2 }
 0x655   : > { %3824 = vrot.lane.b32.xlu2 %v6821_v16, %s7757_s2 }
 0x657   : > { %v3262_v19 = vpop.permute.xlu2 %3261 }
 0x658   : > { %v3345_v18 = vsel %vm1466_vm1, %v3225_v48, %v3262_v19 }
 0x659   : > { %v3357_v25 = vsel %vm1479_vm2, %v3345_v18, %v3310_v7  ;;  %v3235_v18 = vmul.f32 %v4518_v62, %v7080_v4 }
 0x65a   : > { %4592 = vmatmul.msk.f32.vlgmr.msra.gmra.mxu3 %vm1508_vm3, %v3357_v25 }
 0x65d   : > { %v3328_v48 = vpop.permute.xlu1 %3327 }
 0x65f   : > { %v3264_v39 = vpop.permute.xlu2 %3263 }
 0x660   : > { %v3346_v16 = vsel %vm1466_vm1, %v3226_v27, %v3264_v39  ;;  %v3236_v39 = vmul.f32 %v4519_v44, %v6954_v8 }
 0x661   : > { %v3358_v45 = vsel %vm1479_vm2, %v3346_v16, %v3312_v58 }
 0x662   : > { %4593 = vmatmul.msk.f32.gmra.mxu3 %vm1508_vm3, %v3358_v45 }
 0x667   : > { %v3266_v43 = vpop.permute.xlu2 %3265 }
 0x668   : > { %v3347_v59 = vsel %vm1466_vm1, %v3227_v54, %v3266_v43 }
 0x66f   : > { %v3268_v63 = vpop.permute.xlu2 %3267 }
 0x670   : > { %v3348_v38 = vsel %vm1466_vm1, %v3228_v24, %v3268_v63 }
 0x675   : > { %v3314_v2 = vpop.permute.xlu0 %3313 }
 0x676   : > { %v3359_v13 = vsel %vm1479_vm2, %v3347_v59, %v3314_v2 }
 0x677   : > { %4594 = vmatmul.msk.f32.gmra.mxu3 %vm1508_vm3, %v3359_v13  ;;  %v3270_v28 = vpop.permute.xlu2 %3269 }
 0x678   : > { %v3349_v3 = vsel %vm1466_vm1, %v3229_v22, %v3270_v28 }
 0x67d   : > { %v3316_v14 = vpop.permute.xlu0 %3315 }
 0x67e   : > { %v3360_v37 = vsel %vm1479_vm2, %v3348_v38, %v3316_v14 }
 0x67f   : > { %4595 = vmatmul.msk.f32.gmra.mxu3 %vm1508_vm3, %v3360_v37  ;;  %v3320_v36 = vpop.permute.xlu2 %3319  ;;  %v3284_v27 = vpop.permute.xlu1 %3283  ;;  %v7811_v37 = vld [vmem:[#allocation12_spill] sm:$0xff] }
 0x680   : > { %v3362_v33 = vsel %vm1479_vm2, %v3350_v34, %v3320_v36  ;;  %v3356_v16 = vsel %vm1466_vm1, %v3236_v39, %v3284_v27 }
 0x685   : > { %v3318_v1 = vpop.permute.xlu0 %3317 }
 0x686   : > { %v3361_v23 = vsel %vm1479_vm2, %v3349_v3, %v3318_v1  ;;  %v7812_v3 = vld [vmem:[#allocation11_spill] sm:$0xff] }
 0x687   : > { %4596 = vmatmul.msk.f32.gmra.mxu3 %vm1508_vm3, %v3361_v23  ;;  %v3276_v12 = vpop.permute.xlu2 %3275 }
 0x688   : > { %v3352_v53 = vsel %vm1466_vm1, %v3232_v10, %v3276_v12 }
 0x68d   : > { %v3274_v6 = vpop.permute.xlu0 %3273 }
 0x68e   : > { %v3351_v5 = vsel %vm1466_vm1, %v3231_v47, %v3274_v6 }
 0x68f   : > { %4597 = vmatmul.msk.f32.gmra.mxu3 %vm1508_vm3, %v3362_v33  ;;  %v3363_v42 = vsel %vm1479_vm2, %v3351_v5, %v3322_v32  ;;  %v3326_v40 = vpop.permute.xlu2 %3325 }
 0x690   : > { %v3365_v15 = vsel %vm1479_vm2, %v3353_v61, %v3326_v40 }
 0x695   : > { %v3324_v52 = vpop.permute.xlu0 %3323 }
 0x696   : > { %v3364_v50 = vsel %vm1479_vm2, %v3352_v53, %v3324_v52 }
 0x697   : > { %4598 = vmatmul.msk.f32.gmra.mxu3 %vm1508_vm3, %v3363_v42  ;;  %v3282_v19 = vpop.permute.xlu2 %3281 }
 0x698   : > { %v3355_v26 = vsel %vm1466_vm1, %v3235_v18, %v3282_v19 }
 0x69d   : > { %v3280_v56 = vpop.permute.xlu0 %3279 }
 0x69e   : > { %v3354_v7 = vsel %vm1466_vm1, %v3234_v35, %v3280_v56  ;;  %v7816_v56 = vld [vmem:[#allocation17_spill] sm:$0xff] }
 0x69f   : > { %4599 = vmatmul.msk.f32.gmra.mxu3 %vm1508_vm3, %v3364_v50  ;;  %v3366_v29 = vsel %vm1479_vm2, %v3354_v7, %v3328_v48  ;;  %v3332_v58 = vpop.permute.xlu2 %3331 }
 0x6a0   : > { %v3368_v45 = vsel %vm1479_vm2, %v3356_v16, %v3332_v58 }
 0x6a5   : > { %v3330_v25 = vpop.permute.xlu0 %3329 }
 0x6a6   : > { %v3367_v30 = vsel %vm1479_vm2, %v3355_v26, %v3330_v25  ;;  %v7817_v26 = vld [vmem:[#allocation18_spill] sm:$0xff] }
 0x6a7   : > { %4600 = vmatmul.msk.f32.gmra.mxu3 %vm1508_vm3, %v3365_v15  ;;  %v7260_v15 = vpop.permute.xlu2 %3828 }
 0x6af   : > { %4601 = vmatmul.msk.f32.gmra.mxu3 %vm1508_vm3, %v3366_v29 }
 0x6b7   : > { %4602 = vmatmul.msk.f32.gmra.mxu3 %vm1508_vm3, %v3367_v30  ;;  %v3825_v30 = vpop.permute.xlu2 %3824 }
 0x6bf   : > { %4603 = vmatmul.msk.f32.gmra.mxu3 %vm1508_vm3, %v3368_v45 }
 0x6dd   : > { %v3438_v4 = vpop.f32.mrf.mxu3 }
 0x6de   : > { %v3439_v43 = vadd.f32 %v7208_v49, %v3438_v4 }
 0x6e0   : > { %4908 = vtanh.f32 %v3439_v43  ;;  %v4604_v31 = vmul.f32 -1.442695, %v3439_v43 }
 0x6e5   : > { %v3441_v9 = vpop.f32.mrf.mxu3 }
 0x6e6   : > { %v4909_v41 = vpop.eup %4908  ;;  %v3442_v8 = vadd.f32 %v7208_v49, %v3441_v9 }
 0x6e7   : > { %3726 = vrot.lane.b32.xlu1 %v4909_v41, %s7778_s4 }
 0x6e8   : > { %4910 = vtanh.f32 %v3442_v8  ;;  %v4605_v10 = vmul.f32 -1.442695, %v3442_v8  ;;  %v7289_v8 = vpop.permute.xlu1 %3826 }
 0x6ee   : > { %v4911_v54 = vpop.eup %4910 }
 0x6ef   : > { %3728 = vrot.lane.b32.xlu2 %v4911_v54, %s7778_s4 }
 0x6fa   : > { %v3444_v59 = vpop.f32.mrf.mxu3 }
 0x6fb   : > { %v3445_v2 = vadd.f32 %v7208_v49, %v3444_v59 }
 0x6fd   : > { %4912 = vtanh.f32 %v3445_v2  ;;  %v4606_v17 = vmul.f32 -1.442695, %v3445_v2 }
 0x702   : > { %v3447_v13 = vpop.f32.mrf.mxu3 }
 0x703   : > { %v4913_v63 = vpop.eup %4912  ;;  %v3448_v57 = vadd.f32 %v7208_v49, %v3447_v13 }
 0x704   : > { %3730 = vrot.lane.b32.xlu0 %v4913_v63, %s7778_s4 }
 0x705   : > { %4914 = vtanh.f32 %v3448_v57  ;;  %v4607_v5 = vmul.f32 -1.442695, %v3448_v57 }
 0x70a   : > { %v3450_v24 = vpop.f32.mrf.mxu3 }
 0x70b   : > { %v4915_v38 = vpop.eup %4914  ;;  %v7218_v14 = vadd.f32 %v7208_v49, %v3450_v24 }
 0x70c   : > { %3840 = vrot.lane.b32.xlu0 %v7811_v37, %s7757_s2  ;;  %3732 = vrot.lane.b32.xlu2 %v4915_v38, %s7778_s4  ;;  %v7818_v37 = vld [vmem:[#allocation16_spill] sm:$0xff] }
 0x70d   : > { %4916 = vtanh.f32 %v7218_v14  ;;  %v4608_v39 = vmul.f32 -1.442695, %v7218_v14 }
 0x712   : > { %v3453_v60 = vpop.f32.mrf.mxu3 }
 0x713   : > { %v4917_v28 = vpop.eup %4916  ;;  %v7225_v22 = vadd.f32 %v7208_v49, %v3453_v60 }
 0x714   : > { %3838 = vrot.lane.b32.xlu2 %v7812_v3, %s7757_s2  ;;  %3734 = vrot.lane.b32.xlu0 %v4917_v28, %s7778_s4 }
 0x715   : > { %4918 = vtanh.f32 %v7225_v22  ;;  %v4609_v54 = vmul.f32 -1.442695, %v7225_v22 }
 0x71a   : > { %v3456_v1 = vpop.f32.mrf.mxu3 }
 0x71b   : > { %v4919_v23 = vpop.eup %4918  ;;  %v7258_v40 = vadd.f32 %v7208_v49, %v3456_v1 }
 0x71c   : > { %3820 = vrot.lane.b32.xlu2 %v7813_v51, %s7757_s2  ;;  %3736 = vrot.lane.b32.xlu1 %v4919_v23, %s7778_s4  ;;  %v7303_v23 = vld [vmem:[%s7692_s16] ss:$0 sm:$0xff] }
 0x722   : > { %v3459_v21 = vpop.f32.mrf.mxu3 }
 0x723   : > { %v7269_v29 = vadd.f32 %v7208_v49, %v3459_v21 }
 0x724   : > { %3818 = vrot.lane.b32.xlu2 %v7814_v20, %s7757_s2 }
 0x72a   : > { %v3462_v36 = vpop.f32.mrf.mxu3 }
 0x72b   : > { %v7237_v34 = vadd.f32 %v7208_v49, %v3462_v36 }
 0x72c   : > { %3830 = vrot.lane.b32.xlu2 %v7815_v0, %s7757_s2 }
 0x72d   : > { %4920 = vtanh.f32 %v7237_v34 }
 0x732   : > { %v3465_v33 = vpop.f32.mrf.mxu3 }
 0x733   : > { %v4921_v6 = vpop.eup %4920  ;;  %v7243_v47 = vadd.f32 %v7208_v49, %v3465_v33  ;;  %v7311_v33 = vld [vmem:[%s7693_s17] ss:$0 sm:$0xff] }
 0x734   : > { %3742 = vrot.lane.b32.xlu0 %v4921_v6, %s7778_s4 }
 0x735   : > { %4922 = vtanh.f32 %v7243_v47 }
 0x736   : > { %4924 = vpow2.f32 %v4607_v5 }
 0x73a   : > { %v3468_v32 = vpop.f32.mrf.mxu3 }
 0x73b   : > { %v4923_v42 = vpop.eup %4922  ;;  %v7248_v46 = vadd.f32 %v7208_v49, %v3468_v32  ;;  %v3823_v32 = vpop.permute.xlu1 %3822 }
 0x73c   : > { %3744 = vrot.lane.b32.xlu0 %v4923_v42, %s7778_s4  ;;  %v4925_v12 = vpop.eup %4924 }
 0x73d   : > { %4926 = vtanh.f32 %v7248_v46  ;;  %v3513_v55 = vadd.f32 1.0, %v4925_v12 }
 0x73f   : > { %v3578_v2 = vand.u32 2147483648, %v3513_v55  ;;  %vm3572_vm3 = vweird.f32 %v3513_v55  ;;  %v3576_v63 = vand.u32 2147483647, %v3513_v55 }
 0x741   : > { %v3579_v60 = vor.u32 1.1754944e-38, %v3578_v2  ;;  %vm3577_vm11 = vcmp.eq.f32.partialorder %v3576_v63, 8.507059e+37 }
 0x742   : > { %v3471_v52 = vpop.f32.mrf.mxu3 }
 0x743   : > { %v4927_v53 = vpop.eup %4926  ;;  %v7253_v50 = vadd.f32 %v7208_v49, %v3471_v52 }
 0x744   : > { %3746 = vrot.lane.b32.xlu0 %v4927_v53, %s7778_s4 }
 0x745   : > { %4928 = vtanh.f32 %v7253_v50 }
 0x746   : > { %4930 = vpow2.f32 %v4605_v10 }
 0x747   : > { %4932 = vrcp.f32 %v3513_v55 }
 0x748   : > { %4934 = vpow2.f32 %v4604_v31 }
 0x749   : > { %4936 = vpow2.f32 %v4606_v17  ;;  %v3729_v43 = vpop.permute.xlu2 %3728 }
 0x74a   : > { %4938 = vtanh.f32 %v7258_v40 }
 0x74b   : > { %v4929_v61 = vpop.eup %4928 }
 0x74c   : > { %v4931_v11 = vpop.eup %4930  ;;  %3834 = vrot.lane.b32.xlu0 %v7816_v56, %s7757_s2  ;;  %3748 = vrot.lane.b32.xlu1 %v4929_v61, %s7778_s4 }
 0x74d   : > { %v7266_v35 = vadd.f32 1.0, %v4931_v11  ;;  %v4933_v7 = vpop.eup %4932 }
 0x74e   : > { %v4935_v48 = vpop.eup %4934  ;;  %v3568_v18 = vmul.f32 %v4933_v7, %v3513_v55  ;;  %vm3573_vm2 = vweird.f32 %v4933_v7 }
 0x74f   : > { %v4937_v62 = vpop.eup %4936  ;;  %4940 = vrcp.f32 %v7266_v35  ;;  %v7272_v25 = vadd.f32 1.0, %v4935_v48  ;;  %vm3574_vm7 = vmor %vm3572_vm3, %vm3573_vm2  ;;  %v3548_v36 = vand.u32 2147483648, %v7266_v35  ;;  %vm3542_vm9 = vweird.f32 %v7266_v35 }
 0x750   : > { %v4939_v19 = vpop.eup %4938  ;;  %4942 = vtanh.f32 %v7269_v29  ;;  %v7278_v44 = vadd.f32 1.0, %v4937_v62  ;;  %v3569_v27 = vsub.f32 1.0, %v3568_v18  ;;  %v3546_v42 = vand.u32 2147483647, %v7266_v35 }
 0x751   : > { %4944 = vrcp.f32 %v7272_v25  ;;  %v3549_v55 = vor.u32 1.1754944e-38, %v3548_v36  ;;  %vm3527_vm15 = vweird.f32 %v7272_v25  ;;  %v3533_v61 = vand.u32 2147483648, %v7272_v25 }
 0x752   : > { %4946 = vrcp.f32 %v7278_v44  ;;  %v3570_v45 = vmul.f32 %v4933_v7, %v3569_v27  ;;  %vm3547_vm14 = vcmp.eq.f32.partialorder %v3546_v42, 8.507059e+37  ;;  %vm3557_vm6 = vweird.f32 %v7278_v44 }
 0x753   : > { %4948 = vpow2.f32 %v4608_v39 }
 0x754   : > { %3738 = vrot.lane.b32.xlu0 %v4939_v19, %s7778_s4  ;;  %3836 = vrot.lane.b32.xlu1 %v7817_v26, %s7757_s2  ;;  %v3571_v9 = vadd.f32 %v4933_v7, %v3570_v45  ;;  %4950 = vpow2.f32 %v4609_v54  ;;  %v3563_v19 = vand.u32 2147483648, %v7278_v44  ;;  %v3561_v26 = vand.u32 2147483647, %v7278_v44 }
 0x755   : > { %v4941_v58 = vpop.eup %4940 }
 0x756   : > { %v4943_v16 = vpop.eup %4942  ;;  %v3538_v49 = vmul.f32 %v4941_v58, %v7266_v35  ;;  %v3575_v24 = vsel %vm3574_vm7, %v4933_v7, %v3571_v9  ;;  %vm3543_vm8 = vweird.f32 %v4941_v58  ;;  %v3531_v7 = vand.u32 2147483647, %v7272_v25 }
 0x757   : > { %v7285_v4 = vpop.eup %4944  ;;  %v3580_v3 = vsel %vm3577_vm11, %v3579_v60, %v3575_v24  ;;  %vm3544_vm10 = vmor %vm3542_vm9, %vm3543_vm8  ;;  %v3564_v45 = vor.u32 1.1754944e-38, %v3563_v19  ;;  %vm3562_vm7 = vcmp.eq.f32.partialorder %v3561_v26, 8.507059e+37 }
 0x758   : > { %v7287_v41 = vpop.eup %4946  ;;  %v3539_v59 = vsub.f32 1.0, %v3538_v49  ;;  %v3523_v13 = vmul.f32 %v7285_v4, %v7272_v25  ;;  %vm3528_vm12 = vweird.f32 %v7285_v4  ;;  %vm3532_vm3 = vcmp.eq.f32.partialorder %v3531_v7, 8.507059e+37 }
 0x759   : > { %v4949_v57 = vpop.eup %4948  ;;  %v3553_v38 = vmul.f32 %v7287_v41, %v7278_v44  ;;  %vm3558_vm4 = vweird.f32 %v7287_v41  ;;  %vm3529_vm5 = vmor %vm3527_vm15, %vm3528_vm12  ;;  %v3727_v25 = vpop.permute.xlu1 %3726 }
 0x75a   : > { %v3540_v14 = vmul.f32 %v4941_v58, %v3539_v59  ;;  %v7298_v28 = vadd.f32 1.0, %v4949_v57  ;;  %v3524_v22 = vsub.f32 1.0, %v3523_v13  ;;  %v4951_v5 = vpop.eup %4950  ;;  %vm3559_vm2 = vmor %vm3557_vm6, %vm3558_vm4 }
 0x75b   : > { %v3554_v21 = vsub.f32 1.0, %v3553_v38  ;;  %v7319_v53 = vadd.f32 1.0, %v4951_v5 }
 0x75c   : > { %3740 = vrot.lane.b32.xlu1 %v4943_v16, %s7778_s4  ;;  %v3541_v20 = vadd.f32 %v4941_v58, %v3540_v14  ;;  %4952 = vrcp.f32 %v7298_v28  ;;  %v3525_v0 = vmul.f32 %v7285_v4, %v3524_v22  ;;  %vm3587_vm11 = vweird.f32 %v7298_v28  ;;  %s676_s4 = sand.u32 1, %s5050_s30  }
 0x75d   : > { %v3555_v10 = vmul.f32 %v7287_v41, %v3554_v21  ;;  %4954 = vrcp.f32 %v7319_v53  ;;  %v3593_v5 = vand.u32 2147483648, %v7298_v28  ;;  %s677_s28 = scalar_lea.vmem [#allocation3], %s676_s4  ;;  %s4388_s21 = scalar_lea.sflag [#allocation4], %s676_s4 }
 0x75e   : > { %v3545_v52 = vsel %vm3544_vm10, %v4941_v58, %v3541_v20  ;;  %v3526_v31 = vadd.f32 %v7285_v4, %v3525_v0  ;;  %s4398_s26 = sshll.u32 %s677_s28, 4  ;;  %s4399_s26 = int_to_ptr.vmem [resolvable:$true] %s4398_s26 }
 0x75f   : > { %v3550_v35 = vsel %vm3547_vm14, %v3549_v55, %v3545_v52  ;;  %v3556_v48 = vadd.f32 %v7287_v41, %v3555_v10  ;;  %v3594_v26 = vor.u32 1.1754944e-38, %v3593_v5  ;;  %vm3602_vm14 = vweird.f32 %v7319_v53 }
 0x760   : > { %v3763_v62 = vmul.f32 %v3729_v43, %v3550_v35  ;;  %v3530_v18 = vsel %vm3529_vm5, %v7285_v4, %v3526_v31  ;;  %vm3939_vm5 = vcmask 195584  }
 0x761   : > { %v3560_v39 = vsel %vm3559_vm2, %v7287_v41, %v3556_v48 }
 0x762   : > { %v7328_v56 = vpop.eup %4952  ;;  %v3779_v58 = vmul.f32 %v7303_v23, %v3763_v62  ;;  %v3565_v4 = vsel %vm3562_vm7, %v3564_v45, %v3560_v39 }
 0x763   : > { %v3583_v27 = vmul.f32 %v7328_v56, %v7298_v28  ;;  %v7344_v44 = vpop.eup %4954  ;;  %vm3588_vm8 = vweird.f32 %v7328_v56 }
 0x764   : > { %3832 = vrot.lane.b32.xlu1 %v7818_v37, %s7757_s2  ;;  %v3795_v2 = vadd.f32 %v7311_v33, %v3779_v58  ;;  %v3598_v24 = vmul.f32 %v7344_v44, %v7319_v53  ;;  %vm7369_vm9 = vmor %vm3587_vm11, %vm3588_vm8  ;;  %vm3603_vm12 = vweird.f32 %v7344_v44 }
 0x765   : > { %v3584_v54 = vsub.f32 1.0, %v3583_v27  ;;  %vm3604_vm15 = vmor %vm3602_vm14, %vm3603_vm12 }
 0x766   : > { %v3733_v1 = vpop.permute.xlu2 %3732 }
 0x767   : > { %v3765_v51 = vmul.f32 %v3733_v1, %v3580_v3  ;;  %v3585_v57 = vmul.f32 %v7328_v56, %v3584_v54 }
 0x769   : > { %v3781_v6 = vmul.f32 %v7303_v23, %v3765_v51  ;;  %v3586_v1 = vadd.f32 %v7328_v56, %v3585_v57  ;;  %v3599_v51 = vsub.f32 1.0, %v3598_v24  ;;  %v4613_v24 = vmul.f32 -1.442695, %v7243_v47 }
 0x76b   : > { %v3797_v12 = vadd.f32 %v7311_v33, %v3781_v6  ;;  %v3591_v6 = vand.u32 2147483647, %v7298_v28  ;;  %v3590_v35 = vsel %vm7369_vm9, %v7328_v56, %v3586_v1 }
 0x76d   : > { %v7322_v17 = vadd.f32 %v3825_v30, %v3797_v12  ;;  %v3534_v30 = vor.u32 1.1754944e-38, %v3533_v61  ;;  %vm3592_vm10 = vcmp.eq.f32.partialorder %v3591_v6, 8.507059e+37 }
 0x76e   : > { %v7326_v11 = vpop.permute.xlu2 %3838  ;;  %v3595_v58 = vsel %vm3592_vm10, %v3594_v26, %v3590_v35 }
 0x76f   : > { %v3535_v16 = vsel %vm3532_vm3, %v3534_v30, %v3530_v18  ;;  %v3893_v42 = vrot.slane %v7322_v17, 6  ;;  %v3600_v18 = vmul.f32 %v7344_v44, %v3599_v51 }
 0x770   : > { %v3762_v49 = vmul.f32 %v3727_v25, %v3535_v16 }
 0x772   : > { %v3778_v13 = vmul.f32 %v7303_v23, %v3762_v49  ;;  %v3601_v49 = vadd.f32 %v7344_v44, %v3600_v18 }
 0x774   : > { %v3794_v14 = vadd.f32 %v7311_v33, %v3778_v13 }
 0x776   : > { %v3731_v43 = vpop.permute.xlu0 %3730  ;;  %v3821_v9 = vpop.permute.xlu2 %3820 }
 0x777   : > { %v3764_v59 = vmul.f32 %v3731_v43, %v3565_v4  ;;  %v3855_v41 = vadd.f32 %v3821_v9, %v3795_v2  ;;  %v3608_v4 = vand.u32 2147483648, %v7319_v53  ;;  %v3606_v9 = vand.u32 2147483647, %v7319_v53 }
 0x778   : > { %v4612_v2 = vmul.f32 -1.442695, %v7237_v34 }
 0x779   : > { %v3780_v63 = vmul.f32 %v7303_v23, %v3764_v59  ;;  %v3867_v60 = vrot.slane %v3855_v41, 7  ;;  %v3891_v21 = vrot.slane %v3855_v41, 6  ;;  %v3605_v59 = vsel %vm3604_vm15, %v7344_v44, %v3601_v49 }
 0x77a   : > { %v3609_v13 = vor.u32 1.1754944e-38, %v3608_v4  ;;  %vm3607_vm4 = vcmp.eq.f32.partialorder %v3606_v9, 8.507059e+37 }
 0x77b   : > { %v3796_v38 = vadd.f32 %v7311_v33, %v3780_v63 }
 0x77c   : > { %v3610_v57 = vsel %vm3607_vm4, %v3609_v13, %v3605_v59 }
 0x77d   : > { %v3856_v37 = vadd.f32 %v3823_v32, %v3796_v38  ;;  %v3869_v32 = vrot.slane %v7322_v17, 7 }
 0x77e   : > { %v7355_v22 = vpop.permute.xlu0 %3840  ;;  %v3819_v3 = vpop.permute.xlu2 %3818 }
 0x77f   : > { %v7359_v20 = vadd.f32 %v3819_v3, %v3794_v14  ;;  %v3868_v36 = vrot.slane %v3856_v37, 7  ;;  %v3892_v0 = vrot.slane %v3856_v37, 6 }
 0x781   : > { %v3866_v12 = vrot.slane %v7359_v20, 7  ;;  %v3890_v10 = vrot.slane %v7359_v20, 6  ;;  %v3887_v31 = vsel %vm1345_vm0, %v3867_v60, %v3868_v36  ;;  %v3911_v61 = vsel %vm1308_vm13, %v3891_v21, %v3892_v0 }
 0x782   : > { %v3916_v7 = vmax.f32 %v3887_v31, %v3911_v61  ;;  %v3886_v48 = vsel %vm1345_vm0, %v3868_v36, %v3869_v32  ;;  %v3910_v28 = vsel %vm1308_vm13, %v3892_v0, %v3893_v42  ;;  %v4611_v61 = vmul.f32 -1.442695, %v7269_v29 }
 0x783   : > { %v3888_v62 = vsel %vm1345_vm0, %v3866_v12, %v3867_v60  ;;  %v3912_v19 = vsel %vm1308_vm13, %v3890_v10, %v3891_v21  ;;  %v3917_v56 = vmax.f32 %v3886_v48, %v3910_v28  ;;  %v7445_v48 = vld [vmem:[%s7822_s1] sm:$0xff]  ;;  %s4400_s1 = sshll.u32 %s4396_s23, 4  ;;  %s4401_s1 = int_to_ptr.hbm [resolvable:$true] %s4400_s1 }
 0x784   : > { %v3928_v30 = vmax.f32 %v3856_v37, %v3916_v7  ;;  %v3915_v25 = vmax.f32 %v3888_v62, %v3912_v19  ;;  %s5010_s6 = sshra.s32 %s4401_s1, 4  ;;  %s5011_s6 = int_to_ptr.hbm [resolvable:$true] %s5010_s6 }
 0x785   : > { %v7394_v27 = vmax.f32 %v7322_v17, %v3917_v56  ;;  %v4614_v17 = vmul.f32 -1.442695, %v7248_v46  ;;  %v4615_v46 = vmul.f32 -1.442695, %v7253_v50  ;;  %v4610_v50 = vmul.f32 -1.442695, %v7258_v40  ;;  %p5017_p0 = scmp.lt.s32.totalorder %s5011_s6, %s7698_s22 }
 0x786   : > { %v3735_v39 = vpop.permute.xlu0 %3734  ;;  %3956 = vmatpush.msrb.mxu0 %v3928_v30  ;;  %v3927_v16 = vmax.f32 %v3855_v41, %v3915_v25 }
 0x787   : > { %v3766_v45 = vmul.f32 %v3735_v39, %v3595_v58  ;;  %4956 = vpow2.f32 %v4614_v17 }
 0x788   : > { %3957 = vmatpush.msrb.mxu0 %v3927_v16  ;;  %4958 = vpow2.f32 %v4612_v2 }
 0x789   : > { %v3782_v43 = vmul.f32 %v7303_v23, %v3766_v45  ;;  %4960 = vpow2.f32 %v4613_v24 }
 0x78a   : > { %4962 = vpow2.f32 %v4615_v46 }
 0x78b   : > { %v3798_v54 = vadd.f32 %v7311_v33, %v3782_v43  ;;  %4964 = vpow2.f32 %v4610_v50 }
 0x78d   : > { %v3858_v63 = vadd.f32 %v7289_v8, %v3798_v54  ;;  %v4957_v3 = vpop.eup %4956 }
 0x78e   : > { %v3737_v41 = vpop.permute.xlu1 %3736  ;;  %v4959_v51 = vpop.eup %4958  ;;  %v7419_v21 = vadd.f32 1.0, %v4957_v3 }
 0x78f   : > { %v3767_v38 = vmul.f32 %v3737_v41, %v3610_v57  ;;  %v3870_v53 = vrot.slane %v3858_v63, 7  ;;  %v3894_v14 = vrot.slane %v3858_v63, 6  ;;  %v4961_v6 = vpop.eup %4960  ;;  %v7423_v5 = vadd.f32 1.0, %v4959_v51 }
 0x790   : > { %4966 = vrcp.f32 %v7419_v21  ;;  %v7434_v52 = vadd.f32 1.0, %v4961_v6  ;;  %v3683_v41 = vand.u32 2147483648, %v7419_v21  ;;  %vm3677_vm3 = vweird.f32 %v7419_v21 }
 0x791   : > { %v3783_v37 = vmul.f32 %v7303_v23, %v3767_v38  ;;  %v3885_v34 = vsel %vm1345_vm0, %v3869_v32, %v3870_v53  ;;  %v3909_v8 = vsel %vm1308_vm13, %v3893_v42, %v3894_v14  ;;  %v4963_v42 = vpop.eup %4962  ;;  %4968 = vrcp.f32 %v7423_v5 }
 0x792   : > { %v3918_v44 = vmax.f32 %v3885_v34, %v3909_v8  ;;  %v7439_v35 = vadd.f32 1.0, %v4963_v42  ;;  %v4965_v7 = vpop.eup %4964  ;;  %4970 = vrcp.f32 %v7434_v52  ;;  %v3653_v13 = vand.u32 2147483648, %v7423_v5 }
 0x793   : > { %v3799_v60 = vadd.f32 %v7311_v33, %v3783_v37  ;;  %4972 = vpow2.f32 %v4611_v61  ;;  %v7449_v62 = vadd.f32 1.0, %v4965_v7  ;;  %v3681_v24 = vand.u32 2147483647, %v7419_v21 }
 0x794   : > { %v3930_v47 = vmax.f32 %v3858_v63, %v3918_v44  ;;  %4974 = vrcp.f32 %v7439_v35  ;;  %vm3647_vm11 = vweird.f32 %v7423_v5  ;;  %v3654_v44 = vor.u32 1.1754944e-38, %v3653_v13 }
 0x795   : > { %v7416_v1 = vadd.f32 %v7260_v15, %v3799_v60  ;;  %4976 = vrcp.f32 %v7449_v62  ;;  %v3684_v3 = vor.u32 1.1754944e-38, %v3683_v41  ;;  %vm3662_vm10 = vweird.f32 %v7434_v52 }
 0x796   : > { %v4967_v28 = vpop.eup %4966  ;;  %v3668_v51 = vand.u32 2147483648, %v7434_v52  ;;  %vm3682_vm12 = vcmp.eq.f32.partialorder %v3681_v24, 8.507059e+37 }
 0x797   : > { %v3871_v36 = vrot.slane %v7416_v1, 7  ;;  %v3895_v0 = vrot.slane %v7416_v1, 6  ;;  %v4969_v29 = vpop.eup %4968  ;;  %v3673_v19 = vmul.f32 %v4967_v28, %v7419_v21  ;;  %vm3678_vm6 = vweird.f32 %v4967_v28 }
 0x798   : > { %v7454_v18 = vpop.eup %4970  ;;  %v3643_v26 = vmul.f32 %v4969_v29, %v7423_v5  ;;  %vm3648_vm2 = vweird.f32 %v4969_v29  ;;  %vm7476_vm7 = vmor %vm3677_vm3, %vm3678_vm6  ;;  %v3666_v21 = vand.u32 2147483647, %v7434_v52  ;;  %vm3692_vm6 = vweird.f32 %v7439_v35 }
 0x799   : > { %v3884_v32 = vsel %vm1345_vm0, %v3870_v53, %v3871_v36  ;;  %v3908_v15 = vsel %vm1308_vm13, %v3894_v14, %v3895_v0  ;;  %v4973_v30 = vpop.eup %4972  ;;  %v3674_v39 = vsub.f32 1.0, %v3673_v19  ;;  %v3651_v14 = vand.u32 2147483647, %v7423_v5  ;;  %vm7487_vm8 = vmor %vm3647_vm11, %vm3648_vm2 }
 0x79a   : > { %v3919_v40 = vmax.f32 %v3884_v32, %v3908_v15  ;;  %v7458_v25 = vpop.eup %4974  ;;  %v3644_v58 = vsub.f32 1.0, %v3643_v26  ;;  %v7462_v16 = vadd.f32 1.0, %v4973_v30  ;;  %vm3663_vm9 = vweird.f32 %v7454_v18 }
 0x79b   : > { %v3688_v45 = vmul.f32 %v7458_v25, %v7439_v35  ;;  %v3675_v49 = vmul.f32 %v4967_v28, %v3674_v39  ;;  %v7466_v4 = vpop.eup %4976  ;;  %vm3693_vm14 = vweird.f32 %v7458_v25  ;;  %vm3652_vm15 = vcmp.eq.f32.partialorder %v3651_v14, 8.507059e+37  ;;  %vm3664_vm4 = vmor %vm3662_vm10, %vm3663_vm9 }
 0x79c   : > { %v3931_v31 = vmax.f32 %v7416_v1, %v3919_v40  ;;  %v3645_v9 = vmul.f32 %v4969_v29, %v3644_v58  ;;  %4978 = vrcp.f32 %v7462_v16  ;;  %v3613_v2 = vmul.f32 %v7466_v4, %v7449_v62  ;;  %vm3694_vm2 = vmor %vm3692_vm6, %vm3693_vm14 }
 0x79d   : > { %v3689_v54 = vsub.f32 1.0, %v3688_v45  ;;  %v3676_v59 = vadd.f32 %v4967_v28, %v3675_v49  ;;  %v3698_v15 = vand.u32 2147483648, %v7439_v35  ;;  %v3669_v7 = vor.u32 1.1754944e-38, %v3668_v51 }
 0x79e   : > { %4076 = vmatpush.msrb.mxu2 %v3931_v31  ;;  %v3646_v57 = vadd.f32 %v4969_v29, %v3645_v9  ;;  %v3614_v37 = vsub.f32 1.0, %v3613_v2  ;;  %vm3667_vm3 = vcmp.eq.f32.partialorder %v3666_v21, 8.507059e+37  ;;  %vm3618_vm11 = vweird.f32 %v7466_v4 }
 0x79f   : > { %v3690_v53 = vmul.f32 %v7458_v25, %v3689_v54  ;;  %v3680_v46 = vsel %vm7476_vm7, %v4967_v28, %v3676_v59  ;;  %v3699_v30 = vor.u32 1.1754944e-38, %v3698_v15  ;;  %v3621_v59 = vand.u32 2147483647, %v7449_v62 }
 0x7a0   : > { %4077 = vmatpush.msrb.mxu2 %v3930_v47  ;;  %v3650_v47 = vsel %vm7487_vm8, %v4969_v29, %v3646_v57  ;;  %v3685_v6 = vsel %vm3682_vm12, %v3684_v3, %v3680_v46  ;;  %v3615_v29 = vmul.f32 %v7466_v4, %v3614_v37  ;;  %vm3617_vm8 = vweird.f32 %v7449_v62 }
 0x7a1   : > { %v3691_v5 = vadd.f32 %v7458_v25, %v3690_v53  ;;  %v3655_v42 = vsel %vm3652_vm15, %v3654_v44, %v3650_v47  ;;  %vm3619_vm9 = vmor %vm3617_vm8, %vm3618_vm11  ;;  %v3636_v13 = vand.u32 2147483647, %v7462_v16  ;;  %vm3622_vm12 = vcmp.eq.f32.partialorder %v3621_v59, 8.507059e+37 }
 0x7a2   : > { %4078 = vmatpush.msrb.mxu2 %v7394_v27  ;;  %v3658_v27 = vmul.f32 %v7454_v18, %v7434_v52  ;;  %v7485_v34 = vpop.eup %4978  ;;  %v3696_v52 = vand.u32 2147483647, %v7439_v35  ;;  %v3616_v49 = vadd.f32 %v7466_v4, %v3615_v29  ;;  %vm3632_vm14 = vweird.f32 %v7462_v16 }
 0x7a3   : > { %4618 = vmatmul.msk.f32.vlgmr.msrb.gmra.mxu2 %vm3939_vm5, %v7445_v48  ;;  %v3628_v40 = vmul.f32 %v7485_v34, %v7462_v16  ;;  %v3695_v28 = vsel %vm3694_vm2, %v7458_v25, %v3691_v5  ;;  %v3623_v25 = vand.u32 2147483648, %v7449_v62  ;;  %vm3633_vm10 = vweird.f32 %v7485_v34 }
 0x7a4   : > { %v3659_v43 = vsub.f32 1.0, %v3658_v27  ;;  %vm3697_vm7 = vcmp.eq.f32.partialorder %v3696_v52, 8.507059e+37  ;;  %v3620_v41 = vsel %vm3619_vm9, %v7466_v4, %v3616_v49  ;;  %vm7531_vm15 = vcmp.eq.f32.partialorder %v3636_v13, 8.507059e+37  ;;  %v3966_v4 = vld [vmem:[%s7694_s18 + $0x18] sm:$0xff] }
 0x7a5   : > { %v3629_v39 = vsub.f32 1.0, %v3628_v40  ;;  %v3700_v45 = vsel %vm3697_vm7, %v3699_v30, %v3695_v28  ;;  %v3624_v57 = vor.u32 1.1754944e-38, %v3623_v25  ;;  %v3831_v28 = vpop.permute.xlu2 %3830  ;;  %4098 = vmatpush.msrb.mxu3 %v3966_v4  ;;  %3986 = vmatpush.msrb.mxu1 %v3966_v4 }
 0x7a6   : > { %v3743_v56 = vpop.permute.xlu0 %3742  ;;  %v3660_v63 = vmul.f32 %v7454_v18, %v3659_v43 }
 0x7a7   : > { %v3770_v61 = vmul.f32 %v3743_v56, %v3655_v42  ;;  %v3630_v9 = vmul.f32 %v7485_v34, %v3629_v39  ;;  %v3625_v37 = vsel %vm3622_vm12, %v3624_v57, %v3620_v41 }
 0x7a8   : > { %v3661_v60 = vadd.f32 %v7454_v18, %v3660_v63 }
 0x7a9   : > { %v3631_v53 = vadd.f32 %v7485_v34, %v3630_v9 }
 0x7aa   : > { %v3665_v31 = vsel %vm3664_vm4, %v7454_v18, %v3661_v60  ;;  %v3786_v18 = vmul.f32 %v7303_v23, %v3770_v61  ;;  %vm7536_vm4 = vmor %vm3632_vm14, %vm3633_vm10 }
 0x7ab   : > { %v3670_v19 = vsel %vm3667_vm3, %v3669_v7, %v3665_v31 }
 0x7ac   : > { %v3802_v2 = vadd.f32 %v7311_v33, %v3786_v18 }
 0x7ae   : > { %v3745_v17 = vpop.permute.xlu0 %3744 }
 0x7af   : > { %v3771_v27 = vmul.f32 %v3745_v17, %v3670_v19 }
 0x7b1   : > { %v3787_v54 = vmul.f32 %v7303_v23, %v3771_v27 }
 0x7b3   : > { %v3803_v14 = vadd.f32 %v7311_v33, %v3787_v54 }
 0x7b6   : > { %v3747_v50 = vpop.permute.xlu0 %3746 }
 0x7b7   : > { %v3772_v32 = vmul.f32 %v3747_v50, %v3685_v6  ;;  %v3635_v6 = vsel %vm7536_vm4, %v7485_v34, %v3631_v53 }
 0x7b9   : > { %v3788_v26 = vmul.f32 %v7303_v23, %v3772_v32 }
 0x7bb   : > { %v3804_v43 = vadd.f32 %v7311_v33, %v3788_v26 }
 0x7bd   : > { %v3864_v24 = vadd.f32 %v7326_v11, %v3804_v43  ;;  %v3638_v11 = vand.u32 2147483648, %v7462_v16 }
 0x7be   : > { %v3835_v58 = vpop.permute.xlu0 %3834  ;;  %v3749_v35 = vpop.permute.xlu1 %3748 }
 0x7bf   : > { %v3773_v56 = vmul.f32 %v3749_v35, %v3700_v45  ;;  %v7524_v38 = vadd.f32 %v3835_v58, %v3802_v2  ;;  %v3876_v51 = vrot.slane %v3864_v24, 7  ;;  %v3900_v50 = vrot.slane %v3864_v24, 6 }
 0x7c0   : > { %v3639_v29 = vor.u32 1.1754944e-38, %v3638_v11  ;;  %v3963_v11 = vld [vmem:[%s7694_s18] sm:$0xff] }
 0x7c1   : > { %v3789_v17 = vmul.f32 %v7303_v23, %v3773_v56  ;;  %v3874_v21 = vrot.slane %v7524_v38, 7  ;;  %v3898_v40 = vrot.slane %v7524_v38, 6 }
 0x7c2   : > { %v3640_v58 = vsel %vm7531_vm15, %v3639_v29, %v3635_v6 }
 0x7c3   : > { %v3805_v63 = vadd.f32 %v7311_v33, %v3789_v17 }
 0x7c5   : > { %v3865_v62 = vadd.f32 %v7355_v22, %v3805_v63 }
 0x7c6   : > { %v3739_v46 = vpop.permute.xlu0 %3738  ;;  %v3837_v8 = vpop.permute.xlu1 %3836 }
 0x7c7   : > { %v3768_v44 = vmul.f32 %v3739_v46, %v3625_v37  ;;  %v3863_v60 = vadd.f32 %v3837_v8, %v3803_v14  ;;  %v3877_v3 = vrot.slane %v3865_v62, 7  ;;  %v3901_v47 = vrot.slane %v3865_v62, 6  ;;  %v4689_v46 = vld [vmem:[%s7696_s20] ss:$0 sm:$0xff] }
 0x7c9   : > { %v3784_v5 = vmul.f32 %v7303_v23, %v3768_v44  ;;  %v3875_v32 = vrot.slane %v3863_v60, 7  ;;  %v3899_v16 = vrot.slane %v3863_v60, 6  ;;  %v3889_v15 = vsel %vm1345_vm0, %v3877_v3, %v3866_v12 }
 0x7ca   : > { %v3913_v42 = vsel %vm1308_vm13, %v3901_v47, %v3890_v10  ;;  %v3878_v31 = vsel %vm1345_vm0, %v3876_v51, %v3877_v3  ;;  %v3902_v34 = vsel %vm1308_vm13, %v3900_v50, %v3901_v47 }
 0x7cb   : > { %v3800_v52 = vadd.f32 %v7311_v33, %v3784_v5  ;;  %v3914_v61 = vmax.f32 %v3889_v15, %v3913_v42  ;;  %v3925_v7 = vmax.f32 %v3878_v31, %v3902_v34  ;;  %v3879_v12 = vsel %vm1345_vm0, %v3875_v32, %v3876_v51  ;;  %v4690_v5 = vld [vmem:[#allocation2] ss:$0 sm:$0xff] }
 0x7cc   : > { %v3903_v19 = vsel %vm1308_vm13, %v3899_v16, %v3900_v50  ;;  %v3880_v10 = vsel %vm1345_vm0, %v3874_v21, %v3875_v32  ;;  %v3904_v26 = vsel %vm1308_vm13, %v3898_v40, %v3899_v16 }
 0x7cd   : > { %v3860_v30 = vadd.f32 %v3831_v28, %v3800_v52  ;;  %v3926_v39 = vmax.f32 %v7359_v20, %v3914_v61  ;;  %v3937_v27 = vmax.f32 %v3865_v62, %v3925_v7  ;;  %v3924_v18 = vmax.f32 %v3879_v12, %v3903_v19 }
 0x7ce   : > { %v3741_v45 = vpop.permute.xlu1 %3740  ;;  %v3923_v35 = vmax.f32 %v3880_v10, %v3904_v26 }
 0x7cf   : > { %v3872_v56 = vrot.slane %v3860_v30, 7  ;;  %v3896_v49 = vrot.slane %v3860_v30, 6  ;;  %3958 = vmatpush.msrb.mxu0 %v3926_v39  ;;  %v3769_v25 = vmul.f32 %v3741_v45, %v3640_v58  ;;  %4280 = vmatpush.msra.mxu2 %v3937_v27  ;;  %v3936_v43 = vmax.f32 %v3864_v24, %v3924_v18  ;;  %v7623_v58 = vld [vmem:[%s7695_s19] ss:$0 sm:$0xff] }
 0x7d0   : > { %v3935_v9 = vmax.f32 %v3863_v60, %v3923_v35  ;;  %4616 = vmatmul.msk.f32.vlgmr.msrb.gmra.mxu0 %vm3939_vm5, %v7445_v48 }
 0x7d1   : > { %v3785_v54 = vmul.f32 %v7303_v23, %v3769_v25  ;;  %4281 = vmatpush.msra.mxu2 %v3936_v43  ;;  %v3883_v20 = vsel %vm1345_vm0, %v3871_v36, %v3872_v56  ;;  %v3907_v17 = vsel %vm1308_vm13, %v3895_v0, %v3896_v49 }
 0x7d2   : > { %v3920_v59 = vmax.f32 %v3883_v20, %v3907_v17 }
 0x7d3   : > { %4282 = vmatpush.msra.mxu2 %v3935_v9  ;;  %v3801_v13 = vadd.f32 %v7311_v33, %v3785_v54 }
 0x7d4   : > { %4622 = vmatmul.msk.f32.vlgmr.msra.gmra.mxu2 %vm3939_vm5, %v7445_v48  ;;  %v3932_v2 = vmax.f32 %v3860_v30, %v3920_v59 }
 0x7d6   : > { %v3833_v23 = vpop.permute.xlu1 %3832 }
 0x7d7   : > { %v3861_v63 = vadd.f32 %v3833_v23, %v3801_v13 }
 0x7d9   : > { %v3873_v41 = vrot.slane %v3861_v63, 7  ;;  %v3897_v57 = vrot.slane %v3861_v63, 6 }
 0x7db   : > { %v3881_v36 = vsel %vm1345_vm0, %v3873_v41, %v3874_v21  ;;  %v3905_v1 = vsel %vm1308_vm13, %v3897_v57, %v3898_v40  ;;  %v3882_v0 = vsel %vm1345_vm0, %v3872_v56, %v3873_v41  ;;  %v3906_v24 = vsel %vm1308_vm13, %v3896_v49, %v3897_v57 }
 0x7dc   : > { %v3922_v53 = vmax.f32 %v3881_v36, %v3905_v1  ;;  %v3921_v62 = vmax.f32 %v3882_v0, %v3906_v24  ;;  %vm4007_vm0 = vcmask 7168   ;;  %vm4032_vm13 = vcmask 64512  }
 0x7de   : > { %v3934_v33 = vmax.f32 %v7524_v38, %v3922_v53  ;;  %v3933_v14 = vmax.f32 %v3861_v63, %v3921_v62  ;;  %v3965_v38 = vld [vmem:[%s7694_s18 + $0x10] sm:$0xff] }
 0x7df   : > { %4099 = vmatpush.msrb.mxu3 %v3965_v38  ;;  %3987 = vmatpush.msrb.mxu1 %v3965_v38 }
 0x7e0   : > { %4178 = vmatpush.msra.mxu0 %v3934_v33 }
 0x7e2   : > { %4179 = vmatpush.msra.mxu0 %v3933_v14 }
 0x7e4   : > { %4180 = vmatpush.msra.mxu0 %v3932_v2 }
 0x7e5   : > { %4620 = vmatmul.msk.f32.vlgmr.msra.gmra.mxu0 %vm3939_vm5, %v7445_v48  ;;  %v3964_v48 = vld [vmem:[%s7694_s18 + $0x8] sm:$0xff] }
 0x7e6   : > { %4100 = vmatpush.msrb.mxu3 %v3964_v48  ;;  %3988 = vmatpush.msrb.mxu1 %v3964_v48 }
 0x7e8   : > { %4101 = vmatpush.msrb.mxu3 %v3963_v11  ;;  %3989 = vmatpush.msrb.mxu1 %v3963_v11 }
 0x7ea   : > { %4302 = vmatpush.msra.mxu3 %v3966_v4  ;;  %4200 = vmatpush.msra.mxu1 %v3966_v4 }
 0x7ec   : > { %4303 = vmatpush.msra.mxu3 %v3965_v38  ;;  %4201 = vmatpush.msra.mxu1 %v3965_v38 }
 0x7ee   : > { %4304 = vmatpush.msra.mxu3 %v3964_v48  ;;  %4202 = vmatpush.msra.mxu1 %v3964_v48 }
 0x7f0   : > { %4305 = vmatpush.msra.mxu3 %v3963_v11  ;;  %4203 = vmatpush.msra.mxu1 %v3963_v11 }
 0x826   : > { %v4080_v37 = vpop.f32.mrf.mxu2 }
 0x827   : > { %v4106_v8 = vmul.f32 %v4689_v46, %v4080_v37  ;;  %4619 = vmatmul.msk.f32.vlgmr.msrb.gmra.mxu3 %vm1466_vm1, %v4080_v37 }
 0x829   : > { %v4107_v55 = vsel %vm1466_vm1, %v4106_v8, 0.0 }
 0x82a   : > { %4108 = vadd.xlane.f32.xlu0 %v4107_v55 }
 0x84d   : > { %v3960_v44 = vpop.f32.mrf.mxu0 }
 0x84e   : > { %4617 = vmatmul.msk.f32.vlgmr.msrb.gmra.mxu1 %vm1466_vm1, %v3960_v44  ;;  %v3998_v22 = vmul.f32 %v4689_v46, %v3960_v44 }
 0x850   : > { %v3999_v51 = vsel %vm1466_vm1, %v3998_v22, 0.0 }
 0x857   : > { %v4284_v60 = vpop.f32.mrf.mxu2 }
 0x858   : > { %v4310_v3 = vmul.f32 %v4689_v46, %v4284_v60  ;;  %4623 = vmatmul.msk.f32.vlgmr.msra.gmra.mxu3 %vm1466_vm1, %v4284_v60 }
 0x85a   : > { %v4311_v47 = vsel %vm1466_vm1, %v4310_v3, 0.0 }
 0x85b   : > { %4312 = vadd.xlane.f32.xlu2 %v4311_v47 }
 0x862   : > { %v4182_v50 = vpop.f32.mrf.mxu0 }
 0x863   : > { %4000 = vadd.xlane.f32.xlu2 %v3999_v51  ;;  %v4208_v21 = vmul.f32 %v4689_v46, %v4182_v50  ;;  %4621 = vmatmul.msk.f32.vlgmr.msra.gmra.mxu1 %vm1466_vm1, %v4182_v50 }
 0x865   : > { %v4209_v6 = vsel %vm1466_vm1, %v4208_v21, 0.0 }
 0x866   : > { %4210 = vadd.xlane.f32.xlu1 %v4209_v6 }
 0x89d   : > { %v4109_v32 = vpop.xlane.xlu0 %4108 }
 0x89e   : > { %v4110_v16 = vadd.f32 %v4690_v5, %v4109_v32 }
 0x8a0   : > { %v4111_v15 = vsel %vm4007_vm0, %v4110_v16, -inf }
 0x8a1   : > { %v4112_v40 = vrot.slane %v4111_v15, 4 }
 0x8a3   : > { %v4113_v42 = vmax.f32 %v4111_v15, %v4112_v40 }
 0x8a5   : > { %v4114_v31 = vrot.slane %v4113_v42, 2 }
 0x8a7   : > { %v4115_v34 = vmax.f32 %v4113_v42, %v4114_v31 }
 0x8a9   : > { %v4116_v52 = vrot.slane %v4115_v34, 1 }
 0x8ab   : > { %v4117_v61 = vmax.f32 %v4115_v34, %v4116_v52 }
 0x8ad   : > { %v4118_v7 = vsub.f32 %v4110_v16, %v4117_v61 }
 0x8af   : > { %v4119_v12 = vmul.f32 1.442695, %v4118_v7 }
 0x8b1   : > { %4980 = vpow2.f32 %v4119_v12 }
 0x8b7   : > { %v4981_v28 = vpop.eup %4980 }
 0x8b8   : > { %v4121_v29 = vsel %vm4007_vm0, %v4981_v28, 0.0  ;;  %4131 = vperm.xlu2 %4674, %v4981_v28  }
 0x8b9   : > { %v4122_v19 = vrot.slane %v4121_v29, 4 }
 0x8bb   : > { %v4123_v10 = vadd.f32 %v4122_v19, %v4121_v29 }
 0x8bd   : > { %v4124_v26 = vrot.slane %v4123_v10, 2 }
 0x8bf   : > { %v4125_v30 = vadd.f32 %v4124_v26, %v4123_v10 }
 0x8c1   : > { %v4126_v39 = vrot.slane %v4125_v30, 1 }
 0x8c3   : > { %v4127_v27 = vadd.f32 %v4126_v39, %v4125_v30 }
 0x8c5   : > { %v4128_v18 = vmul.f32 8.0, %v4127_v27 }
 0x8c7   : > { %4144 = vperm.xlu2 %4674, %v4128_v18   ;;  %v4103_v18 = vpop.f32.mrf.mxu3 }
 0x8cb   : > { %v3991_v45 = vpop.f32.mrf.mxu1 }
 0x8cc   : > { %v7626_v35 = vadd.f32 %v7623_v58, %v3991_v45 }
 0x8ce   : > { %v4313_v56 = vpop.xlane.xlu2 %4312 }
 0x8cf   : > { %v4314_v49 = vadd.f32 %v4690_v5, %v4313_v56  ;;  %v4104_v56 = vadd.f32 %v7623_v58, %v4103_v18 }
 0x8d1   : > { %v4315_v25 = vsel %vm4007_vm0, %v4314_v49, -inf }
 0x8d2   : > { %v4316_v43 = vrot.slane %v4315_v25, 4 }
 0x8d4   : > { %v4317_v9 = vmax.f32 %v4315_v25, %v4316_v43 }
 0x8d6   : > { %v4318_v54 = vrot.slane %v4317_v9, 2  ;;  %v4001_v20 = vpop.xlane.xlu2 %4000 }
 0x8d7   : > { %v4006_v17 = vadd.f32 %v4690_v5, %v4001_v20 }
 0x8d8   : > { %v4319_v59 = vmax.f32 %v4317_v9, %v4318_v54 }
 0x8d9   : > { %v4008_v2 = vsel %vm4007_vm0, %v4006_v17, -inf  ;;  %v4211_v13 = vpop.xlane.xlu1 %4210 }
 0x8da   : > { %v4320_v23 = vrot.slane %v4319_v59, 1  ;;  %v4009_v63 = vrot.slane %v4008_v2, 4  ;;  %v4212_v41 = vadd.f32 %v4690_v5, %v4211_v13 }
 0x8dc   : > { %v4010_v57 = vmax.f32 %v4008_v2, %v4009_v63  ;;  %v4213_v36 = vsel %vm4007_vm0, %v4212_v41, -inf  ;;  %v4321_v1 = vmax.f32 %v4319_v59, %v4320_v23 }
 0x8dd   : > { %v4214_v0 = vrot.slane %v4213_v36, 4 }
 0x8de   : > { %v4011_v24 = vrot.slane %v4010_v57, 2  ;;  %v4322_v33 = vsub.f32 %v4314_v49, %v4321_v1 }
 0x8df   : > { %v4215_v53 = vmax.f32 %v4213_v36, %v4214_v0 }
 0x8e0   : > { %v4012_v62 = vmax.f32 %v4010_v57, %v4011_v24  ;;  %v4323_v55 = vmul.f32 1.442695, %v4322_v33 }
 0x8e1   : > { %v4216_v14 = vrot.slane %v4215_v53, 2 }
 0x8e2   : > { %v4013_v46 = vrot.slane %v4012_v62, 1  ;;  %4982 = vpow2.f32 %v4323_v55 }
 0x8e3   : > { %v4217_v37 = vmax.f32 %v4215_v53, %v4216_v14 }
 0x8e4   : > { %v4014_v8 = vmax.f32 %v4012_v62, %v4013_v46 }
 0x8e5   : > { %v4218_v4 = vrot.slane %v4217_v37, 1 }
 0x8e6   : > { %v4015_v38 = vsub.f32 %v4006_v17, %v4014_v8  ;;  %v4205_v8 = vpop.f32.mrf.mxu1 }
 0x8e7   : > { %v4219_v48 = vmax.f32 %v4217_v37, %v4218_v4 }
 0x8e8   : > { %v4016_v11 = vmul.f32 1.442695, %v4015_v38  ;;  %v4983_v3 = vpop.eup %4982  ;;  %v4206_v38 = vadd.f32 %v7623_v58, %v4205_v8 }
 0x8e9   : > { %v4220_v44 = vsub.f32 %v4212_v41, %v4219_v48  ;;  %v4325_v21 = vsel %vm4007_vm0, %v4983_v3, 0.0 }
 0x8ea   : > { %4984 = vpow2.f32 %v4016_v11  ;;  %v4326_v16 = vrot.slane %v4325_v21, 4 }
 0x8eb   : > { %v4221_v60 = vmul.f32 1.442695, %v4220_v44  ;;  %v4307_v44 = vpop.f32.mrf.mxu3 }
 0x8ec   : > { %v4327_v34 = vadd.f32 %v4326_v16, %v4325_v21 }
 0x8ed   : > { %4986 = vpow2.f32 %v4221_v60 }
 0x8ee   : > { %v4328_v29 = vrot.slane %v4327_v34, 2 }
 0x8f0   : > { %v4985_v47 = vpop.eup %4984  ;;  %v4329_v10 = vadd.f32 %v4328_v29, %v4327_v34 }
 0x8f1   : > { %v4018_v22 = vsel %vm4007_vm0, %v4985_v47, 0.0  ;;  %4028 = vperm.xlu0 %4675, %v4985_v47  }
 0x8f2   : > { %v4019_v51 = vrot.slane %v4018_v22, 4  ;;  %v4330_v30 = vrot.slane %v4329_v10, 1 }
 0x8f3   : > { %v4987_v50 = vpop.eup %4986 }
 0x8f4   : > { %v4020_v6 = vadd.f32 %v4019_v51, %v4018_v22  ;;  %v4223_v5 = vsel %vm4007_vm0, %v4987_v50, 0.0  ;;  %4233 = vperm.xlu2 %4674, %v4987_v50   ;;  %v4331_v39 = vadd.f32 %v4330_v30, %v4329_v10  ;;  %v4308_v51 = vadd.f32 %v7623_v58, %v4307_v44 }
 0x8f5   : > { %v4224_v32 = vrot.slane %v4223_v5, 4 }
 0x8f6   : > { %v4021_v15 = vrot.slane %v4020_v6, 2  ;;  %v4332_v27 = vmul.f32 8.0, %v4331_v39 }
 0x8f7   : > { %v4225_v40 = vadd.f32 %v4224_v32, %v4223_v5 }
 0x8f8   : > { %v4022_v42 = vadd.f32 %v4021_v15, %v4020_v6 }
 0x8f9   : > { %4335 = vperm.xlu0 %4675, %v4983_v3   ;;  %v4226_v31 = vrot.slane %v4225_v40, 2 }
 0x8fa   : > { %v4023_v52 = vrot.slane %v4022_v42, 1 }
 0x8fb   : > { %v4227_v61 = vadd.f32 %v4226_v31, %v4225_v40 }
 0x8fc   : > { %v4024_v7 = vadd.f32 %v4023_v52, %v4022_v42 }
 0x8fd   : > { %v4228_v28 = vrot.slane %v4227_v61, 1 }
 0x8fe   : > { %v4025_v12 = vmul.f32 8.0, %v4024_v7 }
 0x8ff   : > { %v4229_v19 = vadd.f32 %v4228_v28, %v4227_v61 }
 0x900   : > { %4042 = vperm.xlu1 %4676, %v4025_v12  }
 0x901   : > { %v4230_v26 = vmul.f32 8.0, %v4229_v19 }
 0x908   : > { %4246 = vperm.xlu1 %4676, %v4230_v26  }
 0x910   : > { %4348 = vperm.xlu1 %4676, %v4332_v27  }
 0x912   : > { %v4132_v45 = vpop.permute.xlu2 %4131 }
 0x913   : > { %v4134_v49 = vmul.f32 %v4132_v45, %v4104_v56 }
 0x915   : > { %v4135_v25 = vsel %vm4032_vm13, %v4134_v49, 0.0 }
 0x916   : > { %v4136_v43 = vrot.slane %v4135_v25, 4 }
 0x918   : > { %v4137_v9 = vadd.f32 %v4136_v43, %v4135_v25 }
 0x91a   : > { %v4138_v20 = vrot.slane %v4137_v9, 2 }
 0x91c   : > { %v4139_v59 = vadd.f32 %v4138_v20, %v4137_v9 }
 0x91e   : > { %v4140_v41 = vrot.slane %v4139_v59, 1 }
 0x920   : > { %v4141_v0 = vadd.f32 %v4140_v41, %v4139_v59 }
 0x921   : > { %v4145_v54 = vpop.permute.xlu2 %4144 }
 0x922   : > { %4988 = vrcp.f32 %v4145_v54  ;;  %v4158_v13 = vand.u32 2147483648, %v4145_v54  ;;  %vm4152_vm1 = vweird.f32 %v4145_v54  ;;  %v4156_v63 = vand.u32 2147483647, %v4145_v54 }
 0x924   : > { %v4159_v36 = vor.u32 1.1754944e-38, %v4158_v13  ;;  %vm4157_vm3 = vcmp.eq.f32.partialorder %v4156_v63, 8.507059e+37 }
 0x928   : > { %v4989_v17 = vpop.eup %4988 }
 0x929   : > { %v4148_v2 = vmul.f32 %v4989_v17, %v4145_v54  ;;  %vm4153_vm6 = vweird.f32 %v4989_v17 }
 0x92a   : > { %vm4154_vm2 = vmor %vm4152_vm1, %vm4153_vm6 }
 0x92b   : > { %v4149_v23 = vsub.f32 1.0, %v4148_v2 }
 0x92d   : > { %v4150_v57 = vmul.f32 %v4989_v17, %v4149_v23 }
 0x92f   : > { %v4151_v1 = vadd.f32 %v4989_v17, %v4150_v57 }
 0x931   : > { %v4155_v24 = vsel %vm4154_vm2, %v4989_v17, %v4151_v1 }
 0x932   : > { %v4160_v53 = vsel %vm4157_vm3, %v4159_v36, %v4155_v24 }
 0x933   : > { %v4161_v62 = vmul.f32 %v4160_v53, %v4141_v0 }
 0x935   : > { %vm4162_vm7 = vcmp.ge.f32.partialorder %v4161_v62, 0.0  ;;  %v4163_v33 = vmul.f32 0.01, %v4161_v62 }
 0x937   : > { %v4164_v14 = vsel %vm4162_vm7, %v4161_v62, %v4163_v33 }
 0x938   : > { %4370 = vrot.lane.b32.xlu1 %v4164_v14, %s5065_s27  ;;  %s5012_s27 = scalar_lea.hbm %s5011_s6, 1 }
 0x939   : > { %p5013_p11 = scmp.ne.s32.totalorder %s5011_s6, %s5012_s27  ;;  %p5018_p1 = scmp.lt.s32.totalorder %s5016_s5, %s5012_s27 }
 0x93b   : > { %p5014_p12 = pnand %p5013_p11, %p5224_p5  ;;  %p5019_p2 = por %p5018_p1, %p5017_p0 }
 0x93d   : > { %p5015_p13 = pneg %p5014_p12 }
 0x93f   : > { %p5020_p3 = pnand %p5019_p2, %p5015_p13 }
 0x94e   : > { %v4234_v55 = vpop.permute.xlu2 %4233 }
 0x94f   : > { %v4236_v48 = vmul.f32 %v4234_v55, %v4206_v38 }
 0x951   : > { %v4237_v3 = vsel %vm4032_vm13, %v4236_v48, 0.0 }
 0x952   : > { %v4238_v50 = vrot.slane %v4237_v3, 4 }
 0x954   : > { %v4239_v5 = vadd.f32 %v4238_v50, %v4237_v3 }
 0x956   : > { %v4240_v34 = vrot.slane %v4239_v5, 2 }
 0x958   : > { %v4241_v19 = vadd.f32 %v4240_v34, %v4239_v5 }
 0x95a   : > { %v4242_v43 = vrot.slane %v4241_v19, 1 }
 0x95c   : > { %v4243_v13 = vadd.f32 %v4242_v43, %v4241_v19 }
 0x963   : > { %v4029_v46 = vpop.permute.xlu0 %4028 }
 0x964   : > { %v4031_v37 = vmul.f32 %v4029_v46, %v7626_v35 }
 0x966   : > { %v4033_v4 = vsel %vm4032_vm13, %v4031_v37, 0.0 }
 0x967   : > { %v4034_v11 = vrot.slane %v4033_v4, 4 }
 0x969   : > { %v4035_v47 = vadd.f32 %v4034_v11, %v4033_v4 }
 0x96b   : > { %v4336_v22 = vpop.permute.xlu0 %4335  ;;  %v4036_v35 = vrot.slane %v4035_v47, 2 }
 0x96c   : > { %v4338_v21 = vmul.f32 %v4336_v22, %v4308_v51 }
 0x96d   : > { %v4037_v40 = vadd.f32 %v4036_v35, %v4035_v47 }
 0x96e   : > { %v4339_v32 = vsel %vm4032_vm13, %v4338_v21, 0.0 }
 0x96f   : > { %v4340_v31 = vrot.slane %v4339_v32, 4  ;;  %v4038_v7 = vrot.slane %v4037_v40, 1 }
 0x971   : > { %v4341_v29 = vadd.f32 %v4340_v31, %v4339_v32  ;;  %v4039_v27 = vadd.f32 %v4038_v7, %v4037_v40 }
 0x972   : > { %v4043_v60 = vpop.permute.xlu1 %4042 }
 0x973   : > { %4990 = vrcp.f32 %v4043_v60  ;;  %v4056_v61 = vand.u32 2147483648, %v4043_v60  ;;  %v4054_v12 = vand.u32 2147483647, %v4043_v60  ;;  %vm4050_vm8 = vweird.f32 %v4043_v60 }
 0x974   : > { %v4342_v56 = vrot.slane %v4341_v29, 2 }
 0x975   : > { %v4057_v10 = vor.u32 1.1754944e-38, %v4056_v61  ;;  %vm4055_vm10 = vcmp.eq.f32.partialorder %v4054_v12, 8.507059e+37 }
 0x976   : > { %v4343_v59 = vadd.f32 %v4342_v56, %v4341_v29 }
 0x978   : > { %v4344_v1 = vrot.slane %v4343_v59, 1 }
 0x979   : > { %v4991_v6 = vpop.eup %4990 }
 0x97a   : > { %v4046_v16 = vmul.f32 %v4991_v6, %v4043_v60  ;;  %v4247_v15 = vpop.permute.xlu1 %4246  ;;  %vm4051_vm11 = vweird.f32 %v4991_v6  ;;  %v4345_v37 = vadd.f32 %v4344_v1, %v4343_v59 }
 0x97b   : > { %4992 = vrcp.f32 %v4247_v15  ;;  %vm4052_vm9 = vmor %vm4050_vm8, %vm4051_vm11  ;;  %v4260_v49 = vand.u32 2147483648, %v4247_v15  ;;  %v4258_v54 = vand.u32 2147483647, %v4247_v15  ;;  %vm4254_vm14 = vweird.f32 %v4247_v15 }
 0x97c   : > { %v4047_v42 = vsub.f32 1.0, %v4046_v16  ;;  %vm4382_vm8 = vcmask 130048  }
 0x97d   : > { %v4261_v2 = vor.u32 1.1754944e-38, %v4260_v49  ;;  %vm4259_vm4 = vcmp.eq.f32.partialorder %v4258_v54, 8.507059e+37 }
 0x97e   : > { %v4048_v52 = vmul.f32 %v4991_v6, %v4047_v42 }
 0x980   : > { %v4049_v58 = vadd.f32 %v4991_v6, %v4048_v52 }
 0x981   : > { %v4993_v28 = vpop.eup %4992 }
 0x982   : > { %v4250_v26 = vmul.f32 %v4993_v28, %v4247_v15  ;;  %v4349_v30 = vpop.permute.xlu1 %4348  ;;  %v4053_v39 = vsel %vm4052_vm9, %v4991_v6, %v4049_v58  ;;  %vm4255_vm12 = vweird.f32 %v4993_v28  ;;  %vm4385_vm9 = vcmask 253952  }
 0x983   : > { %4994 = vrcp.f32 %v4349_v30  ;;  %v4058_v45 = vsel %vm4055_vm10, %v4057_v10, %v4053_v39  ;;  %vm4256_vm15 = vmor %vm4254_vm14, %vm4255_vm12  ;;  %v4360_v0 = vand.u32 2147483647, %v4349_v30  ;;  %v4362_v24 = vand.u32 2147483648, %v4349_v30 }
 0x984   : > { %v4251_v18 = vsub.f32 1.0, %v4250_v26  ;;  %v4059_v25 = vmul.f32 %v4058_v45, %v4039_v27  ;;  %vm4356_vm6 = vweird.f32 %v4349_v30 }
 0x985   : > { %v4363_v46 = vor.u32 1.1754944e-38, %v4362_v24  ;;  %vm4361_vm3 = vcmp.eq.f32.partialorder %v4360_v0, 8.507059e+37 }
 0x986   : > { %v4252_v9 = vmul.f32 %v4993_v28, %v4251_v18  ;;  %v4061_v11 = vmul.f32 0.01, %v4059_v25  ;;  %vm4060_vm11 = vcmp.ge.f32.partialorder %v4059_v25, 0.0 }
 0x988   : > { %v4253_v20 = vadd.f32 %v4993_v28, %v4252_v9  ;;  %v4062_v3 = vsel %vm4060_vm11, %v4059_v25, %v4061_v11 }
 0x989   : > { %v4995_v17 = vpop.eup %4994 }
 0x98a   : > { %v4352_v23 = vmul.f32 %v4995_v17, %v4349_v30  ;;  %v4257_v63 = vsel %vm4256_vm15, %v4993_v28, %v4253_v20  ;;  %vm4357_vm0 = vweird.f32 %v4995_v17 }
 0x98b   : > { %v4262_v41 = vsel %vm4259_vm4, %v4261_v2, %v4257_v63  ;;  %vm4358_vm2 = vmor %vm4356_vm6, %vm4357_vm0 }
 0x98c   : > { %v4353_v57 = vsub.f32 1.0, %v4352_v23  ;;  %v4263_v36 = vmul.f32 %v4262_v41, %v4243_v13 }
 0x98e   : > { %v4354_v53 = vmul.f32 %v4995_v17, %v4353_v57  ;;  %vm4264_vm1 = vcmp.ge.f32.partialorder %v4263_v36, 0.0  ;;  %v4265_v62 = vmul.f32 0.01, %v4263_v36 }
 0x990   : > { %v4355_v33 = vadd.f32 %v4995_v17, %v4354_v53  ;;  %v4266_v14 = vsel %vm4264_vm1, %v4263_v36, %v4265_v62 }
 0x991   : > { %4374 = vrot.lane.b32.xlu2 %v4266_v14, %s5066_s24 }
 0x992   : > { %v4359_v8 = vsel %vm4358_vm2, %v4995_v17, %v4355_v33 }
 0x993   : > { %v4364_v55 = vsel %vm4361_vm3, %v4363_v46, %v4359_v8 }
 0x994   : > { %v4365_v4 = vmul.f32 %v4364_v55, %v4345_v37 }
 0x996   : > { %vm4366_vm7 = vcmp.ge.f32.partialorder %v4365_v4, 0.0  ;;  %v4367_v38 = vmul.f32 0.01, %v4365_v4 }
 0x998   : > { %v4368_v48 = vsel %vm4366_vm7, %v4365_v4, %v4367_v38 }
 0x999   : > { %4378 = vrot.lane.b32.xlu0 %v4368_v48, %s5067_s3 }
 0x9aa   : > { %v4371_v44 = vpop.permute.xlu1 %4370 }
 0x9ab   : > { %v4381_v47 = vsel %vm4032_vm13, %v4062_v3, %v4371_v44 }
 0x9eb   : > { %v4375_v60 = vpop.permute.xlu2 %4374 }
 0x9ec   : > { %v4383_v22 = vsel %vm4382_vm8, %v4381_v47, %v4375_v60 }
 0xa0b   : > { %v4379_v51 = vpop.permute.xlu0 %4378 }
 0xa0c   : > { %v4384_v50 = vsel %vm3939_vm5, %v4383_v22, %v4379_v51 }
 0xa0d   : > { %4386 = vst.msk [vmem:[%s677_s28] sm:$0x1] %vm4385_vm9, %v4384_v50 }
 0xa0e   : > { %5023 = shalt.err (!%p5020_p3)
}
 0xa0f   : > { %4627 = dma.vmem_to_hbm [thread:$0]  (%p5224_p5), %s4399_s26, 16, %s4401_s1, %s4388_s21  }
 0xa10 PF: > { %p4633_p4 = scmp.ge.s32.totalorder %s5058_s0, 2  ;;  %s4412_s28 = sand.u32 1, %s5046_s29  }
 0xa11   : > { %s4413_s24 = scalar_lea.sflag [#allocation4], %s4412_s28 }
 0xa12   : > { %p4630_p7 = pnand %p4633_p4, %p5228_p6 }
 0xa14   : > { %p4631_p8 = pneg %p4630_p7 }
 0xa16   : > { %5041 = dma.done.wait (%p4631_p8), %s4413_s24, 16  }
 0xa17   : > { %5043 = vsyncadd (%p4631_p8), %s4413_s24, 4294967280  ;;  %s7832_s0 = sld [smem:[#allocation7_spill]]  ;;  %s7835_s29 = smov %s5050_s30 }
 0xa18   : > { %s7833_s6 = sld [smem:[#allocation6_spill]] }
 0xa19   : > { %s7834_s4 = sld [smem:[#allocation8_spill]] }
 0xa1d   : > { %p34_p9 = scmp.ge.s32.totalorder %s7832_s0, 6  }
 0xa1e   : > { %s7836_s30 = smov %s7833_s6 }
 0xa1f   :  { %36 = sbr.rel (!%p34_p9) target bundleno = 11 (0xb), region = 143 }
 0xa24   :  { %4418 = vsyncpa [#allocation4], 1 }
 0xa25   :  { %4420 = vsyncpa [#allocation4 + $0x1], 1 }

</bundles_post_ra>
